<compile_context>
chip_gen: v7x
topology: tpu7x:2x2x1
jax: 0.10.0
libtpu: 0.0.40
codegen_flags: <defaults>
</compile_context>

<pallas_src>
import functools

import jax
import jax.numpy as jnp
from jax.experimental import pallas as pl
from jax.experimental.pallas import tpu as pltpu


def _spatial_attention_kernel(x_ref, w_ref, b_ref, o_ref,
                              sum_ref, max_ref, pad_ref,
                              *, C, H, W, K, BT):
    """Grid step (n, c): pool a (BT, CT, H*W) channel chunk; conv at last c."""
    HW = H * W
    P = (K - 1) // 2
    PAD = P * W + P                       # flat zero border that absorbs dy overflow

    c_idx = pl.program_id(1)
    n_c = pl.num_programs(1)

    x = x_ref[...]                                            # (BT, CT, HW), native dtype
    part_sum = jnp.sum(x, axis=1, dtype=jnp.float32)          # (BT, HW) f32
    part_max = jnp.max(x, axis=1)                             # (BT, HW) native dtype

    @pl.when(c_idx == 0)
    def _init():
        sum_ref[...] = part_sum
        max_ref[...] = part_max

    @pl.when(c_idx > 0)
    def _accumulate():
        sum_ref[...] = sum_ref[...] + part_sum
        max_ref[...] = jnp.maximum(max_ref[...], part_max)

    @pl.when(c_idx == n_c - 1)
    def _conv_and_store():
        avg = sum_ref[...] * (1.0 / C)                        # (BT, HW) f32
        mx = max_ref[...].astype(jnp.float32)                 # (BT, HW) f32

        # Stage both pooled planes in a flat zero-bordered scratch.
        # pad[plane, b, j] == plane[b, j - PAD]; reading a window of width HW
        # starting at dy*W + dx yields tap (dy, dx) with dy-overflow already
        # zeroed by the border.  Only the tiny borders are zeroed, and only
        # here (once per batch tile), not on every grid step.
        zrow = jnp.zeros((BT, PAD), jnp.float32)
        for plane in range(2):
            pad_ref[plane, :, 0:PAD] = zrow
            pad_ref[plane, :, PAD + HW:] = zrow
        pad_ref[0, :, PAD:PAD + HW] = avg
        pad_ref[1, :, PAD:PAD + HW] = mx

        # Column index of every flat position (for dx boundary masking).
        col = jax.lax.broadcasted_iota(jnp.int32, (BT, HW), 1) % W

        # Unrolled 7x7 MAC.  w[i, dy, dx] = w_ref[i*K*K + dy*K + dx]
        # (OIHW flatten: i=0 -> avg plane, i=1 -> max plane).
        acc0 = jnp.zeros((BT, HW), jnp.float32)
        acc1 = jnp.zeros((BT, HW), jnp.float32)
        for dx in range(K):
            a0 = jnp.zeros((BT, HW), jnp.float32)
            a1 = jnp.zeros((BT, HW), jnp.float32)
            for dy in range(K):
                off = dy * W + dx
                t = dy * K + dx
                a0 = a0 + w_ref[t] * pad_ref[0, :, off:off + HW]
                a1 = a1 + w_ref[K * K + t] * pad_ref[1, :, off:off + HW]
            if dx == P:                 # in-range column shift: no mask needed
                acc0 = acc0 + a0
                acc1 = acc1 + a1
            else:                       # zero contributions that crossed a row edge
                if dx < P:
                    m = col >= (P - dx)
                else:
                    m = col < (W + P - dx)
                acc0 = acc0 + jnp.where(m, a0, 0.0)
                acc1 = acc1 + jnp.where(m, a1, 0.0)

        o_ref[...] = jax.nn.sigmoid(acc0 + acc1 + b_ref[0]).astype(o_ref.dtype)


def _largest_divisor_leq(n, limit, *, multiple_of=1):
    """Largest divisor of n that is <= limit and a multiple of `multiple_of`."""
    limit = min(n, max(1, limit))
    if n <= limit:
        return n
    for d in range(limit, 0, -1):
        if n % d == 0 and d % multiple_of == 0:
            return d
    return n  # fall back to the full dim (valid block: equals the array dim)


def spatial_attention(x, conv_w, conv_b, *, kernel_size=7):
    """x: (N, C, H, W); conv_w: (1, 2, K, K); conv_b: (1,)  ->  (N, 1, H, W)."""
    N, C, H, W = x.shape
    K = kernel_size
    P = (K - 1) // 2
    HW = H * W
    PAD = P * W + P
    dsize = jnp.dtype(x.dtype).itemsize

    # Bound the (double-buffered) x block to ~4 MiB so it fits every
    # generation's scoped VMEM (incl. v7x's 64 MiB physical) while keeping
    # per-step DMAs large enough to sit on the HBM roofline.
    block_budget = 4 * 1024 * 1024
    # CT must equal C or be a multiple of 8 (second-to-last block dim rule).
    CT = _largest_divisor_leq(C, max(1, block_budget // (HW * dsize)),
                              multiple_of=8)
    BT = _largest_divisor_leq(N, max(1, block_budget // (CT * HW * dsize)),
                              multiple_of=8)

    x2d = x.reshape(N, C, HW)                              # free metadata reshape
    w_flat = conv_w.reshape(-1).astype(jnp.float32)        # (2*K*K,) SMEM scalars
    b_flat = conv_b.reshape(-1).astype(jnp.float32)        # (1,)

    kern = functools.partial(_spatial_attention_kernel,
                             C=C, H=H, W=W, K=K, BT=BT)
    out = pl.pallas_call(
        kern,
        out_shape=jax.ShapeDtypeStruct((N, HW), x.dtype),
        grid=(N // BT, C // CT),
        in_specs=[
            pl.BlockSpec((BT, CT, HW), lambda n, c: (n, c, 0)),
            pl.BlockSpec(memory_space=pltpu.MemorySpace.SMEM),   # conv weights
            pl.BlockSpec(memory_space=pltpu.MemorySpace.SMEM),   # conv bias
        ],
        out_specs=pl.BlockSpec((BT, HW), lambda n, c: (n, 0)),
        scratch_shapes=[
            pltpu.VMEM((BT, HW), jnp.float32),               # channel-sum accum
            pltpu.VMEM((BT, HW), x.dtype),                   # running-max accum
            pltpu.VMEM((2, BT, HW + 2 * PAD), jnp.float32),  # conv staging (flat, bordered)
        ],
        compiler_params=pltpu.CompilerParams(
            dimension_semantics=("parallel", "arbitrary"),
            vmem_limit_bytes=48 * 1024 * 1024),
    )(x2d, w_flat, b_flat)
    return out.reshape(N, 1, H, W)


# ----------------------------------------------------------------------------
# Pure-JAX reference (correctness check only).
# ----------------------------------------------------------------------------
def _spatial_attention_ref(x, conv_w, conv_b, kernel_size=7):
    K = kernel_size
    P = (K - 1) // 2
    avg = jnp.mean(x, axis=1, keepdims=True)
    mx = jnp.max(x, axis=1, keepdims=True)
    inp = jnp.concatenate([avg, mx], axis=1)               # (N, 2, H, W)
    conv = jax.lax.conv_general_dilated(
        inp, conv_w, (1, 1), [(P, P), (P, P)],
        dimension_numbers=("NCHW", "OIHW", "NCHW"))
    return jax.nn.sigmoid(conv + conv_b.reshape(1, 1, 1, 1))


if __name__ == "__main__":
    key = jax.random.PRNGKey(0)
    kx, kw, kb = jax.random.split(key, 3)

    N, C, H, W = 2, 4, 16, 16        # NCHW, matching the PyTorch module
    K = 7
    x = jax.random.normal(kx, (N, C, H, W), jnp.float32)
    conv_w = jax.random.normal(kw, (1, 2, K, K), jnp.float32) * 0.2
    conv_b = jax.random.normal(kb, (1,), jnp.float32) * 0.1

    out = jax.block_until_ready(
        spatial_attention(x, conv_w, conv_b, kernel_size=K))
    ref = jax.block_until_ready(
        _spatial_attention_ref(x, conv_w, conv_b, kernel_size=K))

    assert out.shape == (N, 1, H, W), out.shape
    assert jnp.allclose(out, ref, rtol=1e-4, atol=1e-5), (
        float(jnp.max(jnp.abs(out - ref))))
    print("KERNEL_OK")
</pallas_src>

<mosaic_0001>
module attributes {stable_mosaic.version = 11 : i64} {
  func.func @_spatial_attention_kernel(%arg0: i32, %arg1: i32, %arg2: memref<2x4x256xf32, #tpu.memory_space<vmem>>, %arg3: memref<98xf32, #tpu.memory_space<smem>>, %arg4: memref<1xf32, #tpu.memory_space<smem>>, %arg5: memref<2x256xf32, #tpu.memory_space<vmem>>, %arg6: memref<2x256xf32, #tpu.memory_space<vmem>>, %arg7: memref<2x256xf32, #tpu.memory_space<vmem>>, %arg8: memref<2x2x358xf32, #tpu.memory_space<vmem>>) attributes {dimension_semantics = [#tpu.dimension_semantics<parallel>, #tpu.dimension_semantics<arbitrary>], iteration_bounds = array<i64: 1, 1>, scalar_prefetch = 0 : i64, scratch_operands = 3 : i64, tpu.core_type = #tpu.core_type<tc>, window_params = [{transform_indices = @transform_0, window_bounds = array<i64: 2, 4, 256>}, {transform_indices = @transform_1, window_bounds = array<i64: 98>}, {transform_indices = @transform_2, window_bounds = array<i64: 1>}, {transform_indices = @transform_3, window_bounds = array<i64: 2, 256>}]} {
    %c0 = arith.constant 0 : index
    %c0_0 = arith.constant 0 : index
    %c0_1 = arith.constant 0 : index
    %0 = vector.load %arg2[%c0, %c0_0, %c0_1] : memref<2x4x256xf32, #tpu.memory_space<vmem>>, vector<2x4x256xf32>
    %cst = arith.constant dense<0.000000e+00> : vector<2x256xf32>
    %1 = vector.multi_reduction <add>, %0, %cst [1] : vector<2x4x256xf32> to vector<2x256xf32>
    %cst_2 = arith.constant dense<0xFF800000> : vector<2x256xf32>
    %2 = vector.multi_reduction <maximumf>, %0, %cst_2 [1] : vector<2x4x256xf32> to vector<2x256xf32>
    %c0_i32 = arith.constant 0 : i32
    %3 = arith.cmpi eq, %arg1, %c0_i32 : i32
    %4 = arith.extui %3 : i1 to i32
    %c0_i32_3 = arith.constant 0 : i32
    %5 = arith.cmpi ne, %4, %c0_i32_3 : i32
    scf.if %5 {
      %c0_8 = arith.constant 0 : index
      %c0_9 = arith.constant 0 : index
      %12 = vector.load %arg6[%c0_8, %c0_9] : memref<2x256xf32, #tpu.memory_space<vmem>>, vector<2x256xf32>
      tpu.vector_store %arg6[%c0_8, %c0_9], %1 {strides = array<i32>} : memref<2x256xf32, #tpu.memory_space<vmem>>, vector<2x256xf32>,
      %c0_10 = arith.constant 0 : index
      %c0_11 = arith.constant 0 : index
      %13 = vector.load %arg7[%c0_10, %c0_11] : memref<2x256xf32, #tpu.memory_space<vmem>>, vector<2x256xf32>
      tpu.vector_store %arg7[%c0_10, %c0_11], %2 {strides = array<i32>} : memref<2x256xf32, #tpu.memory_space<vmem>>, vector<2x256xf32>,
    } else {
    }
    %c0_i32_4 = arith.constant 0 : i32
    %6 = arith.cmpi sgt, %arg1, %c0_i32_4 : i32
    %7 = arith.extui %6 : i1 to i32
    %c0_i32_5 = arith.constant 0 : i32
    %8 = arith.cmpi ne, %7, %c0_i32_5 : i32
    scf.if %8 {
      %c0_8 = arith.constant 0 : index
      %c0_9 = arith.constant 0 : index
      %12 = vector.load %arg6[%c0_8, %c0_9] : memref<2x256xf32, #tpu.memory_space<vmem>>, vector<2x256xf32>
      %13 = arith.addf %12, %1 : vector<2x256xf32>
      %c0_10 = arith.constant 0 : index
      %c0_11 = arith.constant 0 : index
      %14 = vector.load %arg6[%c0_10, %c0_11] : memref<2x256xf32, #tpu.memory_space<vmem>>, vector<2x256xf32>
      tpu.vector_store %arg6[%c0_10, %c0_11], %13 {strides = array<i32>} : memref<2x256xf32, #tpu.memory_space<vmem>>, vector<2x256xf32>,
      %c0_12 = arith.constant 0 : index
      %c0_13 = arith.constant 0 : index
      %15 = vector.load %arg7[%c0_12, %c0_13] : memref<2x256xf32, #tpu.memory_space<vmem>>, vector<2x256xf32>
      %16 = arith.maximumf %15, %2 : vector<2x256xf32>
      %c0_14 = arith.constant 0 : index
      %c0_15 = arith.constant 0 : index
      %17 = vector.load %arg7[%c0_14, %c0_15] : memref<2x256xf32, #tpu.memory_space<vmem>>, vector<2x256xf32>
      tpu.vector_store %arg7[%c0_14, %c0_15], %16 {strides = array<i32>} : memref<2x256xf32, #tpu.memory_space<vmem>>, vector<2x256xf32>,
    } else {
    }
    %c0_i32_6 = arith.constant 0 : i32
    %9 = arith.cmpi eq, %arg1, %c0_i32_6 : i32
    %10 = arith.extui %9 : i1 to i32
    %c0_i32_7 = arith.constant 0 : i32
    %11 = arith.cmpi ne, %10, %c0_i32_7 : i32
    scf.if %11 {
      %c0_8 = arith.constant 0 : index
      %c0_9 = arith.constant 0 : index
      %12 = vector.load %arg6[%c0_8, %c0_9] : memref<2x256xf32, #tpu.memory_space<vmem>>, vector<2x256xf32>
      %cst_10 = arith.constant 2.500000e-01 : f32
      %13 = vector.broadcast %cst_10 : f32 to vector<2x256xf32>
      %14 = arith.mulf %12, %13 : vector<2x256xf32>
      %c0_11 = arith.constant 0 : index
      %c0_12 = arith.constant 0 : index
      %15 = vector.load %arg7[%c0_11, %c0_12] : memref<2x256xf32, #tpu.memory_space<vmem>>, vector<2x256xf32>
      %cst_13 = arith.constant 0.000000e+00 : f32
      %16 = vector.broadcast %cst_13 : f32 to vector<2x51xf32>
      %c0_14 = arith.constant 0 : index
      %c0_15 = arith.constant 0 : index
      %c0_16 = arith.constant 0 : index
      %17 = vector.load %arg8[%c0_14, %c0_15, %c0_16] : memref<2x2x358xf32, #tpu.memory_space<vmem>>, vector<1x2x51xf32>
      %18 = vector.shape_cast %17 : vector<1x2x51xf32> to vector<2x51xf32>
      %19 = vector.shape_cast %16 : vector<2x51xf32> to vector<1x2x51xf32>
      tpu.vector_store %arg8[%c0_14, %c0_15, %c0_16], %19 {strides = array<i32>} : memref<2x2x358xf32, #tpu.memory_space<vmem>>, vector<1x2x51xf32>,
      %c0_17 = arith.constant 0 : index
      %c0_18 = arith.constant 0 : index
      %c307 = arith.constant 307 : index
      %20 = vector.load %arg8[%c0_17, %c0_18, %c307] : memref<2x2x358xf32, #tpu.memory_space<vmem>>, vector<1x2x51xf32>
      %21 = vector.shape_cast %20 : vector<1x2x51xf32> to vector<2x51xf32>
      %22 = vector.shape_cast %16 : vector<2x51xf32> to vector<1x2x51xf32>
      tpu.vector_store %arg8[%c0_17, %c0_18, %c307], %22 {strides = array<i32>} : memref<2x2x358xf32, #tpu.memory_space<vmem>>, vector<1x2x51xf32>,
      %c1 = arith.constant 1 : index
      %c0_19 = arith.constant 0 : index
      %c0_20 = arith.constant 0 : index
      %23 = vector.load %arg8[%c1, %c0_19, %c0_20] : memref<2x2x358xf32, #tpu.memory_space<vmem>>, vector<1x2x51xf32>
      %24 = vector.shape_cast %23 : vector<1x2x51xf32> to vector<2x51xf32>
      %25 = vector.shape_cast %16 : vector<2x51xf32> to vector<1x2x51xf32>
      tpu.vector_store %arg8[%c1, %c0_19, %c0_20], %25 {strides = array<i32>} : memref<2x2x358xf32, #tpu.memory_space<vmem>>, vector<1x2x51xf32>,
      %c1_21 = arith.constant 1 : index
      %c0_22 = arith.constant 0 : index
      %c307_23 = arith.constant 307 : index
      %26 = vector.load %arg8[%c1_21, %c0_22, %c307_23] : memref<2x2x358xf32, #tpu.memory_space<vmem>>, vector<1x2x51xf32>
      %27 = vector.shape_cast %26 : vector<1x2x51xf32> to vector<2x51xf32>
      %28 = vector.shape_cast %16 : vector<2x51xf32> to vector<1x2x51xf32>
      tpu.vector_store %arg8[%c1_21, %c0_22, %c307_23], %28 {strides = array<i32>} : memref<2x2x358xf32, #tpu.memory_space<vmem>>, vector<1x2x51xf32>,
      %c0_24 = arith.constant 0 : index
      %c0_25 = arith.constant 0 : index
      %c51 = arith.constant 51 : index
      %29 = vector.load %arg8[%c0_24, %c0_25, %c51] : memref<2x2x358xf32, #tpu.memory_space<vmem>>, vector<1x2x256xf32>
      %30 = vector.shape_cast %29 : vector<1x2x256xf32> to vector<2x256xf32>
      %31 = vector.shape_cast %14 : vector<2x256xf32> to vector<1x2x256xf32>
      tpu.vector_store %arg8[%c0_24, %c0_25, %c51], %31 {strides = array<i32>} : memref<2x2x358xf32, #tpu.memory_space<vmem>>, vector<1x2x256xf32>,
      %c1_26 = arith.constant 1 : index
      %c0_27 = arith.constant 0 : index
      %c51_28 = arith.constant 51 : index
      %32 = vector.load %arg8[%c1_26, %c0_27, %c51_28] : memref<2x2x358xf32, #tpu.memory_space<vmem>>, vector<1x2x256xf32>
      %33 = vector.shape_cast %32 : vector<1x2x256xf32> to vector<2x256xf32>
      %34 = vector.shape_cast %15 : vector<2x256xf32> to vector<1x2x256xf32>
      tpu.vector_store %arg8[%c1_26, %c0_27, %c51_28], %34 {strides = array<i32>} : memref<2x2x358xf32, #tpu.memory_space<vmem>>, vector<1x2x256xf32>,
      %35 = tpu.iota {dimensions = array<i32: 1>} : vector<2x256xi32>
      %c16_i32 = arith.constant 16 : i32
      %c0_i32_29 = arith.constant 0 : i32
      %36 = arith.cmpi eq, %c16_i32, %c0_i32_29 : i32
      %c1_i32 = arith.constant 1 : i32
      %37 = arith.select %36, %c1_i32, %c16_i32 : i32
      %38 = vector.broadcast %37 : i32 to vector<2x256xi32>
      %39 = arith.remsi %35, %38 : vector<2x256xi32>
      %c0_i32_30 = arith.constant 0 : i32
      %40 = vector.broadcast %c0_i32_30 : i32 to vector<2x256xi32>
      %41 = arith.cmpi ne, %39, %40 : vector<2x256xi32>
      %c0_i32_31 = arith.constant 0 : i32
      %42 = vector.broadcast %c0_i32_31 : i32 to vector<2x256xi32>
      %43 = arith.cmpi slt, %39, %42 : vector<2x256xi32>
      %c0_i32_32 = arith.constant 0 : i32
      %44 = arith.cmpi slt, %37, %c0_i32_32 : i32
      %45 = vector.broadcast %44 : i1 to vector<2x256xi1>
      %46 = vector.broadcast %45 : vector<2x256xi1> to vector<2x256xi1>
      %47 = arith.xori %43, %46 : vector<2x256xi1>
      %48 = arith.andi %47, %41 : vector<2x256xi1>
      %49 = vector.broadcast %37 : i32 to vector<2x256xi32>
      %50 = arith.addi %39, %49 : vector<2x256xi32>
      %51 = arith.select %48, %50, %39 : vector<2x256xi1>, vector<2x256xi32>
      %cst_33 = arith.constant 0.000000e+00 : f32
      %52 = vector.broadcast %cst_33 : f32 to vector<2x256xf32>
      %cst_34 = arith.constant 0.000000e+00 : f32
      %53 = vector.broadcast %cst_34 : f32 to vector<2x256xf32>
      %cst_35 = arith.constant 0.000000e+00 : f32
      %54 = vector.broadcast %cst_35 : f32 to vector<2x256xf32>
      %cst_36 = arith.constant 0.000000e+00 : f32
      %55 = vector.broadcast %cst_36 : f32 to vector<2x256xf32>
      %c0_37 = arith.constant 0 : index
      %56 = memref.load %arg3[%c0_37] : memref<98xf32, #tpu.memory_space<smem>>
      %c0_38 = arith.constant 0 : index
      %c0_39 = arith.constant 0 : index
      %c0_40 = arith.constant 0 : index
      %57 = vector.load %arg8[%c0_38, %c0_39, %c0_40] : memref<2x2x358xf32, #tpu.memory_space<vmem>>, vector<1x2x256xf32>
      %58 = vector.shape_cast %57 : vector<1x2x256xf32> to vector<2x256xf32>
      %59 = vector.broadcast %56 : f32 to vector<2x256xf32>
      %60 = arith.mulf %59, %58 : vector<2x256xf32>
      %61 = arith.addf %54, %60 : vector<2x256xf32>
      %c49 = arith.constant 49 : index
      %62 = memref.load %arg3[%c49] : memref<98xf32, #tpu.memory_space<smem>>
      %c1_41 = arith.constant 1 : index
      %c0_42 = arith.constant 0 : index
      %c0_43 = arith.constant 0 : index
      %63 = vector.load %arg8[%c1_41, %c0_42, %c0_43] : memref<2x2x358xf32, #tpu.memory_space<vmem>>, vector<1x2x256xf32>
      %64 = vector.shape_cast %63 : vector<1x2x256xf32> to vector<2x256xf32>
      %65 = vector.broadcast %62 : f32 to vector<2x256xf32>
      %66 = arith.mulf %65, %64 : vector<2x256xf32>
      %67 = arith.addf %55, %66 : vector<2x256xf32>
      %c7 = arith.constant 7 : index
      %68 = memref.load %arg3[%c7] : memref<98xf32, #tpu.memory_space<smem>>
      %c0_44 = arith.constant 0 : index
      %c0_45 = arith.constant 0 : index
      %c16 = arith.constant 16 : index
      %69 = vector.load %arg8[%c0_44, %c0_45, %c16] : memref<2x2x358xf32, #tpu.memory_space<vmem>>, vector<1x2x256xf32>
      %70 = vector.shape_cast %69 : vector<1x2x256xf32> to vector<2x256xf32>
      %71 = vector.broadcast %68 : f32 to vector<2x256xf32>
      %72 = arith.mulf %71, %70 : vector<2x256xf32>
      %73 = arith.addf %61, %72 : vector<2x256xf32>
      %c56 = arith.constant 56 : index
      %74 = memref.load %arg3[%c56] : memref<98xf32, #tpu.memory_space<smem>>
      %c1_46 = arith.constant 1 : index
      %c0_47 = arith.constant 0 : index
      %c16_48 = arith.constant 16 : index
      %75 = vector.load %arg8[%c1_46, %c0_47, %c16_48] : memref<2x2x358xf32, #tpu.memory_space<vmem>>, vector<1x2x256xf32>
      %76 = vector.shape_cast %75 : vector<1x2x256xf32> to vector<2x256xf32>
      %77 = vector.broadcast %74 : f32 to vector<2x256xf32>
      %78 = arith.mulf %77, %76 : vector<2x256xf32>
      %79 = arith.addf %67, %78 : vector<2x256xf32>
      %c14 = arith.constant 14 : index
      %80 = memref.load %arg3[%c14] : memref<98xf32, #tpu.memory_space<smem>>
      %c0_49 = arith.constant 0 : index
      %c0_50 = arith.constant 0 : index
      %c32 = arith.constant 32 : index
      %81 = vector.load %arg8[%c0_49, %c0_50, %c32] : memref<2x2x358xf32, #tpu.memory_space<vmem>>, vector<1x2x256xf32>
      %82 = vector.shape_cast %81 : vector<1x2x256xf32> to vector<2x256xf32>
      %83 = vector.broadcast %80 : f32 to vector<2x256xf32>
      %84 = arith.mulf %83, %82 : vector<2x256xf32>
      %85 = arith.addf %73, %84 : vector<2x256xf32>
      %c63 = arith.constant 63 : index
      %86 = memref.load %arg3[%c63] : memref<98xf32, #tpu.memory_space<smem>>
      %c1_51 = arith.constant 1 : index
      %c0_52 = arith.constant 0 : index
      %c32_53 = arith.constant 32 : index
      %87 = vector.load %arg8[%c1_51, %c0_52, %c32_53] : memref<2x2x358xf32, #tpu.memory_space<vmem>>, vector<1x2x256xf32>
      %88 = vector.shape_cast %87 : vector<1x2x256xf32> to vector<2x256xf32>
      %89 = vector.broadcast %86 : f32 to vector<2x256xf32>
      %90 = arith.mulf %89, %88 : vector<2x256xf32>
      %91 = arith.addf %79, %90 : vector<2x256xf32>
      %c21 = arith.constant 21 : index
      %92 = memref.load %arg3[%c21] : memref<98xf32, #tpu.memory_space<smem>>
      %c0_54 = arith.constant 0 : index
      %c0_55 = arith.constant 0 : index
      %c48 = arith.constant 48 : index
      %93 = vector.load %arg8[%c0_54, %c0_55, %c48] : memref<2x2x358xf32, #tpu.memory_space<vmem>>, vector<1x2x256xf32>
      %94 = vector.shape_cast %93 : vector<1x2x256xf32> to vector<2x256xf32>
      %95 = vector.broadcast %92 : f32 to vector<2x256xf32>
      %96 = arith.mulf %95, %94 : vector<2x256xf32>
      %97 = arith.addf %85, %96 : vector<2x256xf32>
      %c70 = arith.constant 70 : index
      %98 = memref.load %arg3[%c70] : memref<98xf32, #tpu.memory_space<smem>>
      %c1_56 = arith.constant 1 : index
      %c0_57 = arith.constant 0 : index
      %c48_58 = arith.constant 48 : index
      %99 = vector.load %arg8[%c1_56, %c0_57, %c48_58] : memref<2x2x358xf32, #tpu.memory_space<vmem>>, vector<1x2x256xf32>
      %100 = vector.shape_cast %99 : vector<1x2x256xf32> to vector<2x256xf32>
      %101 = vector.broadcast %98 : f32 to vector<2x256xf32>
      %102 = arith.mulf %101, %100 : vector<2x256xf32>
      %103 = arith.addf %91, %102 : vector<2x256xf32>
      %c28 = arith.constant 28 : index
      %104 = memref.load %arg3[%c28] : memref<98xf32, #tpu.memory_space<smem>>
      %c0_59 = arith.constant 0 : index
      %c0_60 = arith.constant 0 : index
      %c64 = arith.constant 64 : index
      %105 = vector.load %arg8[%c0_59, %c0_60, %c64] : memref<2x2x358xf32, #tpu.memory_space<vmem>>, vector<1x2x256xf32>
      %106 = vector.shape_cast %105 : vector<1x2x256xf32> to vector<2x256xf32>
      %107 = vector.broadcast %104 : f32 to vector<2x256xf32>
      %108 = arith.mulf %107, %106 : vector<2x256xf32>
      %109 = arith.addf %97, %108 : vector<2x256xf32>
      %c77 = arith.constant 77 : index
      %110 = memref.load %arg3[%c77] : memref<98xf32, #tpu.memory_space<smem>>
      %c1_61 = arith.constant 1 : index
      %c0_62 = arith.constant 0 : index
      %c64_63 = arith.constant 64 : index
      %111 = vector.load %arg8[%c1_61, %c0_62, %c64_63] : memref<2x2x358xf32, #tpu.memory_space<vmem>>, vector<1x2x256xf32>
      %112 = vector.shape_cast %111 : vector<1x2x256xf32> to vector<2x256xf32>
      %113 = vector.broadcast %110 : f32 to vector<2x256xf32>
      %114 = arith.mulf %113, %112 : vector<2x256xf32>
      %115 = arith.addf %103, %114 : vector<2x256xf32>
      %c35 = arith.constant 35 : index
      %116 = memref.load %arg3[%c35] : memref<98xf32, #tpu.memory_space<smem>>
      %c0_64 = arith.constant 0 : index
      %c0_65 = arith.constant 0 : index
      %c80 = arith.constant 80 : index
      %117 = vector.load %arg8[%c0_64, %c0_65, %c80] : memref<2x2x358xf32, #tpu.memory_space<vmem>>, vector<1x2x256xf32>
      %118 = vector.shape_cast %117 : vector<1x2x256xf32> to vector<2x256xf32>
      %119 = vector.broadcast %116 : f32 to vector<2x256xf32>
      %120 = arith.mulf %119, %118 : vector<2x256xf32>
      %121 = arith.addf %109, %120 : vector<2x256xf32>
      %c84 = arith.constant 84 : index
      %122 = memref.load %arg3[%c84] : memref<98xf32, #tpu.memory_space<smem>>
      %c1_66 = arith.constant 1 : index
      %c0_67 = arith.constant 0 : index
      %c80_68 = arith.constant 80 : index
      %123 = vector.load %arg8[%c1_66, %c0_67, %c80_68] : memref<2x2x358xf32, #tpu.memory_space<vmem>>, vector<1x2x256xf32>
      %124 = vector.shape_cast %123 : vector<1x2x256xf32> to vector<2x256xf32>
      %125 = vector.broadcast %122 : f32 to vector<2x256xf32>
      %126 = arith.mulf %125, %124 : vector<2x256xf32>
      %127 = arith.addf %115, %126 : vector<2x256xf32>
      %c42 = arith.constant 42 : index
      %128 = memref.load %arg3[%c42] : memref<98xf32, #tpu.memory_space<smem>>
      %c0_69 = arith.constant 0 : index
      %c0_70 = arith.constant 0 : index
      %c96 = arith.constant 96 : index
      %129 = vector.load %arg8[%c0_69, %c0_70, %c96] : memref<2x2x358xf32, #tpu.memory_space<vmem>>, vector<1x2x256xf32>
      %130 = vector.shape_cast %129 : vector<1x2x256xf32> to vector<2x256xf32>
      %131 = vector.broadcast %128 : f32 to vector<2x256xf32>
      %132 = arith.mulf %131, %130 : vector<2x256xf32>
      %133 = arith.addf %121, %132 : vector<2x256xf32>
      %c91 = arith.constant 91 : index
      %134 = memref.load %arg3[%c91] : memref<98xf32, #tpu.memory_space<smem>>
      %c1_71 = arith.constant 1 : index
      %c0_72 = arith.constant 0 : index
      %c96_73 = arith.constant 96 : index
      %135 = vector.load %arg8[%c1_71, %c0_72, %c96_73] : memref<2x2x358xf32, #tpu.memory_space<vmem>>, vector<1x2x256xf32>
      %136 = vector.shape_cast %135 : vector<1x2x256xf32> to vector<2x256xf32>
      %137 = vector.broadcast %134 : f32 to vector<2x256xf32>
      %138 = arith.mulf %137, %136 : vector<2x256xf32>
      %139 = arith.addf %127, %138 : vector<2x256xf32>
      %c3_i32 = arith.constant 3 : i32
      %140 = vector.broadcast %c3_i32 : i32 to vector<2x256xi32>
      %141 = arith.cmpi sge, %51, %140 : vector<2x256xi32>
      %cst_74 = arith.constant 0.000000e+00 : f32
      %142 = vector.broadcast %cst_74 : f32 to vector<2x256xf32>
      %143 = arith.select %141, %133, %142 : vector<2x256xi1>, vector<2x256xf32>
      %144 = arith.addf %52, %143 : vector<2x256xf32>
      %cst_75 = arith.constant 0.000000e+00 : f32
      %145 = vector.broadcast %cst_75 : f32 to vector<2x256xf32>
      %146 = arith.select %141, %139, %145 : vector<2x256xi1>, vector<2x256xf32>
      %147 = arith.addf %53, %146 : vector<2x256xf32>
      %cst_76 = arith.constant 0.000000e+00 : f32
      %148 = vector.broadcast %cst_76 : f32 to vector<2x256xf32>
      %cst_77 = arith.constant 0.000000e+00 : f32
      %149 = vector.broadcast %cst_77 : f32 to vector<2x256xf32>
      %c1_78 = arith.constant 1 : index
      %150 = memref.load %arg3[%c1_78] : memref<98xf32, #tpu.memory_space<smem>>
      %c0_79 = arith.constant 0 : index
      %c0_80 = arith.constant 0 : index
      %c1_81 = arith.constant 1 : index
      %151 = vector.load %arg8[%c0_79, %c0_80, %c1_81] : memref<2x2x358xf32, #tpu.memory_space<vmem>>, vector<1x2x256xf32>
      %152 = vector.shape_cast %151 : vector<1x2x256xf32> to vector<2x256xf32>
      %153 = vector.broadcast %150 : f32 to vector<2x256xf32>
      %154 = arith.mulf %153, %152 : vector<2x256xf32>
      %155 = arith.addf %148, %154 : vector<2x256xf32>
      %c50 = arith.constant 50 : index
      %156 = memref.load %arg3[%c50] : memref<98xf32, #tpu.memory_space<smem>>
      %c1_82 = arith.constant 1 : index
      %c0_83 = arith.constant 0 : index
      %c1_84 = arith.constant 1 : index
      %157 = vector.load %arg8[%c1_82, %c0_83, %c1_84] : memref<2x2x358xf32, #tpu.memory_space<vmem>>, vector<1x2x256xf32>
      %158 = vector.shape_cast %157 : vector<1x2x256xf32> to vector<2x256xf32>
      %159 = vector.broadcast %156 : f32 to vector<2x256xf32>
      %160 = arith.mulf %159, %158 : vector<2x256xf32>
      %161 = arith.addf %149, %160 : vector<2x256xf32>
      %c8 = arith.constant 8 : index
      %162 = memref.load %arg3[%c8] : memref<98xf32, #tpu.memory_space<smem>>
      %c0_85 = arith.constant 0 : index
      %c0_86 = arith.constant 0 : index
      %c17 = arith.constant 17 : index
      %163 = vector.load %arg8[%c0_85, %c0_86, %c17] : memref<2x2x358xf32, #tpu.memory_space<vmem>>, vector<1x2x256xf32>
      %164 = vector.shape_cast %163 : vector<1x2x256xf32> to vector<2x256xf32>
      %165 = vector.broadcast %162 : f32 to vector<2x256xf32>
      %166 = arith.mulf %165, %164 : vector<2x256xf32>
      %167 = arith.addf %155, %166 : vector<2x256xf32>
      %c57 = arith.constant 57 : index
      %168 = memref.load %arg3[%c57] : memref<98xf32, #tpu.memory_space<smem>>
      %c1_87 = arith.constant 1 : index
      %c0_88 = arith.constant 0 : index
      %c17_89 = arith.constant 17 : index
      %169 = vector.load %arg8[%c1_87, %c0_88, %c17_89] : memref<2x2x358xf32, #tpu.memory_space<vmem>>, vector<1x2x256xf32>
      %170 = vector.shape_cast %169 : vector<1x2x256xf32> to vector<2x256xf32>
      %171 = vector.broadcast %168 : f32 to vector<2x256xf32>
      %172 = arith.mulf %171, %170 : vector<2x256xf32>
      %173 = arith.addf %161, %172 : vector<2x256xf32>
      %c15 = arith.constant 15 : index
      %174 = memref.load %arg3[%c15] : memref<98xf32, #tpu.memory_space<smem>>
      %c0_90 = arith.constant 0 : index
      %c0_91 = arith.constant 0 : index
      %c33 = arith.constant 33 : index
      %175 = vector.load %arg8[%c0_90, %c0_91, %c33] : memref<2x2x358xf32, #tpu.memory_space<vmem>>, vector<1x2x256xf32>
      %176 = vector.shape_cast %175 : vector<1x2x256xf32> to vector<2x256xf32>
      %177 = vector.broadcast %174 : f32 to vector<2x256xf32>
      %178 = arith.mulf %177, %176 : vector<2x256xf32>
      %179 = arith.addf %167, %178 : vector<2x256xf32>
      %c64_92 = arith.constant 64 : index
      %180 = memref.load %arg3[%c64_92] : memref<98xf32, #tpu.memory_space<smem>>
      %c1_93 = arith.constant 1 : index
      %c0_94 = arith.constant 0 : index
      %c33_95 = arith.constant 33 : index
      %181 = vector.load %arg8[%c1_93, %c0_94, %c33_95] : memref<2x2x358xf32, #tpu.memory_space<vmem>>, vector<1x2x256xf32>
      %182 = vector.shape_cast %181 : vector<1x2x256xf32> to vector<2x256xf32>
      %183 = vector.broadcast %180 : f32 to vector<2x256xf32>
      %184 = arith.mulf %183, %182 : vector<2x256xf32>
      %185 = arith.addf %173, %184 : vector<2x256xf32>
      %c22 = arith.constant 22 : index
      %186 = memref.load %arg3[%c22] : memref<98xf32, #tpu.memory_space<smem>>
      %c0_96 = arith.constant 0 : index
      %c0_97 = arith.constant 0 : index
      %c49_98 = arith.constant 49 : index
      %187 = vector.load %arg8[%c0_96, %c0_97, %c49_98] : memref<2x2x358xf32, #tpu.memory_space<vmem>>, vector<1x2x256xf32>
      %188 = vector.shape_cast %187 : vector<1x2x256xf32> to vector<2x256xf32>
      %189 = vector.broadcast %186 : f32 to vector<2x256xf32>
      %190 = arith.mulf %189, %188 : vector<2x256xf32>
      %191 = arith.addf %179, %190 : vector<2x256xf32>
      %c71 = arith.constant 71 : index
      %192 = memref.load %arg3[%c71] : memref<98xf32, #tpu.memory_space<smem>>
      %c1_99 = arith.constant 1 : index
      %c0_100 = arith.constant 0 : index
      %c49_101 = arith.constant 49 : index
      %193 = vector.load %arg8[%c1_99, %c0_100, %c49_101] : memref<2x2x358xf32, #tpu.memory_space<vmem>>, vector<1x2x256xf32>
      %194 = vector.shape_cast %193 : vector<1x2x256xf32> to vector<2x256xf32>
      %195 = vector.broadcast %192 : f32 to vector<2x256xf32>
      %196 = arith.mulf %195, %194 : vector<2x256xf32>
      %197 = arith.addf %185, %196 : vector<2x256xf32>
      %c29 = arith.constant 29 : index
      %198 = memref.load %arg3[%c29] : memref<98xf32, #tpu.memory_space<smem>>
      %c0_102 = arith.constant 0 : index
      %c0_103 = arith.constant 0 : index
      %c65 = arith.constant 65 : index
      %199 = vector.load %arg8[%c0_102, %c0_103, %c65] : memref<2x2x358xf32, #tpu.memory_space<vmem>>, vector<1x2x256xf32>
      %200 = vector.shape_cast %199 : vector<1x2x256xf32> to vector<2x256xf32>
      %201 = vector.broadcast %198 : f32 to vector<2x256xf32>
      %202 = arith.mulf %201, %200 : vector<2x256xf32>
      %203 = arith.addf %191, %202 : vector<2x256xf32>
      %c78 = arith.constant 78 : index
      %204 = memref.load %arg3[%c78] : memref<98xf32, #tpu.memory_space<smem>>
      %c1_104 = arith.constant 1 : index
      %c0_105 = arith.constant 0 : index
      %c65_106 = arith.constant 65 : index
      %205 = vector.load %arg8[%c1_104, %c0_105, %c65_106] : memref<2x2x358xf32, #tpu.memory_space<vmem>>, vector<1x2x256xf32>
      %206 = vector.shape_cast %205 : vector<1x2x256xf32> to vector<2x256xf32>
      %207 = vector.broadcast %204 : f32 to vector<2x256xf32>
      %208 = arith.mulf %207, %206 : vector<2x256xf32>
      %209 = arith.addf %197, %208 : vector<2x256xf32>
      %c36 = arith.constant 36 : index
      %210 = memref.load %arg3[%c36] : memref<98xf32, #tpu.memory_space<smem>>
      %c0_107 = arith.constant 0 : index
      %c0_108 = arith.constant 0 : index
      %c81 = arith.constant 81 : index
      %211 = vector.load %arg8[%c0_107, %c0_108, %c81] : memref<2x2x358xf32, #tpu.memory_space<vmem>>, vector<1x2x256xf32>
      %212 = vector.shape_cast %211 : vector<1x2x256xf32> to vector<2x256xf32>
      %213 = vector.broadcast %210 : f32 to vector<2x256xf32>
      %214 = arith.mulf %213, %212 : vector<2x256xf32>
      %215 = arith.addf %203, %214 : vector<2x256xf32>
      %c85 = arith.constant 85 : index
      %216 = memref.load %arg3[%c85] : memref<98xf32, #tpu.memory_space<smem>>
      %c1_109 = arith.constant 1 : index
      %c0_110 = arith.constant 0 : index
      %c81_111 = arith.constant 81 : index
      %217 = vector.load %arg8[%c1_109, %c0_110, %c81_111] : memref<2x2x358xf32, #tpu.memory_space<vmem>>, vector<1x2x256xf32>
      %218 = vector.shape_cast %217 : vector<1x2x256xf32> to vector<2x256xf32>
      %219 = vector.broadcast %216 : f32 to vector<2x256xf32>
      %220 = arith.mulf %219, %218 : vector<2x256xf32>
      %221 = arith.addf %209, %220 : vector<2x256xf32>
      %c43 = arith.constant 43 : index
      %222 = memref.load %arg3[%c43] : memref<98xf32, #tpu.memory_space<smem>>
      %c0_112 = arith.constant 0 : index
      %c0_113 = arith.constant 0 : index
      %c97 = arith.constant 97 : index
      %223 = vector.load %arg8[%c0_112, %c0_113, %c97] : memref<2x2x358xf32, #tpu.memory_space<vmem>>, vector<1x2x256xf32>
      %224 = vector.shape_cast %223 : vector<1x2x256xf32> to vector<2x256xf32>
      %225 = vector.broadcast %222 : f32 to vector<2x256xf32>
      %226 = arith.mulf %225, %224 : vector<2x256xf32>
      %227 = arith.addf %215, %226 : vector<2x256xf32>
      %c92 = arith.constant 92 : index
      %228 = memref.load %arg3[%c92] : memref<98xf32, #tpu.memory_space<smem>>
      %c1_114 = arith.constant 1 : index
      %c0_115 = arith.constant 0 : index
      %c97_116 = arith.constant 97 : index
      %229 = vector.load %arg8[%c1_114, %c0_115, %c97_116] : memref<2x2x358xf32, #tpu.memory_space<vmem>>, vector<1x2x256xf32>
      %230 = vector.shape_cast %229 : vector<1x2x256xf32> to vector<2x256xf32>
      %231 = vector.broadcast %228 : f32 to vector<2x256xf32>
      %232 = arith.mulf %231, %230 : vector<2x256xf32>
      %233 = arith.addf %221, %232 : vector<2x256xf32>
      %c2_i32 = arith.constant 2 : i32
      %234 = vector.broadcast %c2_i32 : i32 to vector<2x256xi32>
      %235 = arith.cmpi sge, %51, %234 : vector<2x256xi32>
      %cst_117 = arith.constant 0.000000e+00 : f32
      %236 = vector.broadcast %cst_117 : f32 to vector<2x256xf32>
      %237 = arith.select %235, %227, %236 : vector<2x256xi1>, vector<2x256xf32>
      %238 = arith.addf %144, %237 : vector<2x256xf32>
      %cst_118 = arith.constant 0.000000e+00 : f32
      %239 = vector.broadcast %cst_118 : f32 to vector<2x256xf32>
      %240 = arith.select %235, %233, %239 : vector<2x256xi1>, vector<2x256xf32>
      %241 = arith.addf %147, %240 : vector<2x256xf32>
      %cst_119 = arith.constant 0.000000e+00 : f32
      %242 = vector.broadcast %cst_119 : f32 to vector<2x256xf32>
      %cst_120 = arith.constant 0.000000e+00 : f32
      %243 = vector.broadcast %cst_120 : f32 to vector<2x256xf32>
      %c2 = arith.constant 2 : index
      %244 = memref.load %arg3[%c2] : memref<98xf32, #tpu.memory_space<smem>>
      %c0_121 = arith.constant 0 : index
      %c0_122 = arith.constant 0 : index
      %c2_123 = arith.constant 2 : index
      %245 = vector.load %arg8[%c0_121, %c0_122, %c2_123] : memref<2x2x358xf32, #tpu.memory_space<vmem>>, vector<1x2x256xf32>
      %246 = vector.shape_cast %245 : vector<1x2x256xf32> to vector<2x256xf32>
      %247 = vector.broadcast %244 : f32 to vector<2x256xf32>
      %248 = arith.mulf %247, %246 : vector<2x256xf32>
      %249 = arith.addf %242, %248 : vector<2x256xf32>
      %c51_124 = arith.constant 51 : index
      %250 = memref.load %arg3[%c51_124] : memref<98xf32, #tpu.memory_space<smem>>
      %c1_125 = arith.constant 1 : index
      %c0_126 = arith.constant 0 : index
      %c2_127 = arith.constant 2 : index
      %251 = vector.load %arg8[%c1_125, %c0_126, %c2_127] : memref<2x2x358xf32, #tpu.memory_space<vmem>>, vector<1x2x256xf32>
      %252 = vector.shape_cast %251 : vector<1x2x256xf32> to vector<2x256xf32>
      %253 = vector.broadcast %250 : f32 to vector<2x256xf32>
      %254 = arith.mulf %253, %252 : vector<2x256xf32>
      %255 = arith.addf %243, %254 : vector<2x256xf32>
      %c9 = arith.constant 9 : index
      %256 = memref.load %arg3[%c9] : memref<98xf32, #tpu.memory_space<smem>>
      %c0_128 = arith.constant 0 : index
      %c0_129 = arith.constant 0 : index
      %c18 = arith.constant 18 : index
      %257 = vector.load %arg8[%c0_128, %c0_129, %c18] : memref<2x2x358xf32, #tpu.memory_space<vmem>>, vector<1x2x256xf32>
      %258 = vector.shape_cast %257 : vector<1x2x256xf32> to vector<2x256xf32>
      %259 = vector.broadcast %256 : f32 to vector<2x256xf32>
      %260 = arith.mulf %259, %258 : vector<2x256xf32>
      %261 = arith.addf %249, %260 : vector<2x256xf32>
      %c58 = arith.constant 58 : index
      %262 = memref.load %arg3[%c58] : memref<98xf32, #tpu.memory_space<smem>>
      %c1_130 = arith.constant 1 : index
      %c0_131 = arith.constant 0 : index
      %c18_132 = arith.constant 18 : index
      %263 = vector.load %arg8[%c1_130, %c0_131, %c18_132] : memref<2x2x358xf32, #tpu.memory_space<vmem>>, vector<1x2x256xf32>
      %264 = vector.shape_cast %263 : vector<1x2x256xf32> to vector<2x256xf32>
      %265 = vector.broadcast %262 : f32 to vector<2x256xf32>
      %266 = arith.mulf %265, %264 : vector<2x256xf32>
      %267 = arith.addf %255, %266 : vector<2x256xf32>
      %c16_133 = arith.constant 16 : index
      %268 = memref.load %arg3[%c16_133] : memref<98xf32, #tpu.memory_space<smem>>
      %c0_134 = arith.constant 0 : index
      %c0_135 = arith.constant 0 : index
      %c34 = arith.constant 34 : index
      %269 = vector.load %arg8[%c0_134, %c0_135, %c34] : memref<2x2x358xf32, #tpu.memory_space<vmem>>, vector<1x2x256xf32>
      %270 = vector.shape_cast %269 : vector<1x2x256xf32> to vector<2x256xf32>
      %271 = vector.broadcast %268 : f32 to vector<2x256xf32>
      %272 = arith.mulf %271, %270 : vector<2x256xf32>
      %273 = arith.addf %261, %272 : vector<2x256xf32>
      %c65_136 = arith.constant 65 : index
      %274 = memref.load %arg3[%c65_136] : memref<98xf32, #tpu.memory_space<smem>>
      %c1_137 = arith.constant 1 : index
      %c0_138 = arith.constant 0 : index
      %c34_139 = arith.constant 34 : index
      %275 = vector.load %arg8[%c1_137, %c0_138, %c34_139] : memref<2x2x358xf32, #tpu.memory_space<vmem>>, vector<1x2x256xf32>
      %276 = vector.shape_cast %275 : vector<1x2x256xf32> to vector<2x256xf32>
      %277 = vector.broadcast %274 : f32 to vector<2x256xf32>
      %278 = arith.mulf %277, %276 : vector<2x256xf32>
      %279 = arith.addf %267, %278 : vector<2x256xf32>
      %c23 = arith.constant 23 : index
      %280 = memref.load %arg3[%c23] : memref<98xf32, #tpu.memory_space<smem>>
      %c0_140 = arith.constant 0 : index
      %c0_141 = arith.constant 0 : index
      %c50_142 = arith.constant 50 : index
      %281 = vector.load %arg8[%c0_140, %c0_141, %c50_142] : memref<2x2x358xf32, #tpu.memory_space<vmem>>, vector<1x2x256xf32>
      %282 = vector.shape_cast %281 : vector<1x2x256xf32> to vector<2x256xf32>
      %283 = vector.broadcast %280 : f32 to vector<2x256xf32>
      %284 = arith.mulf %283, %282 : vector<2x256xf32>
      %285 = arith.addf %273, %284 : vector<2x256xf32>
      %c72 = arith.constant 72 : index
      %286 = memref.load %arg3[%c72] : memref<98xf32, #tpu.memory_space<smem>>
      %c1_143 = arith.constant 1 : index
      %c0_144 = arith.constant 0 : index
      %c50_145 = arith.constant 50 : index
      %287 = vector.load %arg8[%c1_143, %c0_144, %c50_145] : memref<2x2x358xf32, #tpu.memory_space<vmem>>, vector<1x2x256xf32>
      %288 = vector.shape_cast %287 : vector<1x2x256xf32> to vector<2x256xf32>
      %289 = vector.broadcast %286 : f32 to vector<2x256xf32>
      %290 = arith.mulf %289, %288 : vector<2x256xf32>
      %291 = arith.addf %279, %290 : vector<2x256xf32>
      %c30 = arith.constant 30 : index
      %292 = memref.load %arg3[%c30] : memref<98xf32, #tpu.memory_space<smem>>
      %c0_146 = arith.constant 0 : index
      %c0_147 = arith.constant 0 : index
      %c66 = arith.constant 66 : index
      %293 = vector.load %arg8[%c0_146, %c0_147, %c66] : memref<2x2x358xf32, #tpu.memory_space<vmem>>, vector<1x2x256xf32>
      %294 = vector.shape_cast %293 : vector<1x2x256xf32> to vector<2x256xf32>
      %295 = vector.broadcast %292 : f32 to vector<2x256xf32>
      %296 = arith.mulf %295, %294 : vector<2x256xf32>
      %297 = arith.addf %285, %296 : vector<2x256xf32>
      %c79 = arith.constant 79 : index
      %298 = memref.load %arg3[%c79] : memref<98xf32, #tpu.memory_space<smem>>
      %c1_148 = arith.constant 1 : index
      %c0_149 = arith.constant 0 : index
      %c66_150 = arith.constant 66 : index
      %299 = vector.load %arg8[%c1_148, %c0_149, %c66_150] : memref<2x2x358xf32, #tpu.memory_space<vmem>>, vector<1x2x256xf32>
      %300 = vector.shape_cast %299 : vector<1x2x256xf32> to vector<2x256xf32>
      %301 = vector.broadcast %298 : f32 to vector<2x256xf32>
      %302 = arith.mulf %301, %300 : vector<2x256xf32>
      %303 = arith.addf %291, %302 : vector<2x256xf32>
      %c37 = arith.constant 37 : index
      %304 = memref.load %arg3[%c37] : memref<98xf32, #tpu.memory_space<smem>>
      %c0_151 = arith.constant 0 : index
      %c0_152 = arith.constant 0 : index
      %c82 = arith.constant 82 : index
      %305 = vector.load %arg8[%c0_151, %c0_152, %c82] : memref<2x2x358xf32, #tpu.memory_space<vmem>>, vector<1x2x256xf32>
      %306 = vector.shape_cast %305 : vector<1x2x256xf32> to vector<2x256xf32>
      %307 = vector.broadcast %304 : f32 to vector<2x256xf32>
      %308 = arith.mulf %307, %306 : vector<2x256xf32>
      %309 = arith.addf %297, %308 : vector<2x256xf32>
      %c86 = arith.constant 86 : index
      %310 = memref.load %arg3[%c86] : memref<98xf32, #tpu.memory_space<smem>>
      %c1_153 = arith.constant 1 : index
      %c0_154 = arith.constant 0 : index
      %c82_155 = arith.constant 82 : index
      %311 = vector.load %arg8[%c1_153, %c0_154, %c82_155] : memref<2x2x358xf32, #tpu.memory_space<vmem>>, vector<1x2x256xf32>
      %312 = vector.shape_cast %311 : vector<1x2x256xf32> to vector<2x256xf32>
      %313 = vector.broadcast %310 : f32 to vector<2x256xf32>
      %314 = arith.mulf %313, %312 : vector<2x256xf32>
      %315 = arith.addf %303, %314 : vector<2x256xf32>
      %c44 = arith.constant 44 : index
      %316 = memref.load %arg3[%c44] : memref<98xf32, #tpu.memory_space<smem>>
      %c0_156 = arith.constant 0 : index
      %c0_157 = arith.constant 0 : index
      %c98 = arith.constant 98 : index
      %317 = vector.load %arg8[%c0_156, %c0_157, %c98] : memref<2x2x358xf32, #tpu.memory_space<vmem>>, vector<1x2x256xf32>
      %318 = vector.shape_cast %317 : vector<1x2x256xf32> to vector<2x256xf32>
      %319 = vector.broadcast %316 : f32 to vector<2x256xf32>
      %320 = arith.mulf %319, %318 : vector<2x256xf32>
      %321 = arith.addf %309, %320 : vector<2x256xf32>
      %c93 = arith.constant 93 : index
      %322 = memref.load %arg3[%c93] : memref<98xf32, #tpu.memory_space<smem>>
      %c1_158 = arith.constant 1 : index
      %c0_159 = arith.constant 0 : index
      %c98_160 = arith.constant 98 : index
      %323 = vector.load %arg8[%c1_158, %c0_159, %c98_160] : memref<2x2x358xf32, #tpu.memory_space<vmem>>, vector<1x2x256xf32>
      %324 = vector.shape_cast %323 : vector<1x2x256xf32> to vector<2x256xf32>
      %325 = vector.broadcast %322 : f32 to vector<2x256xf32>
      %326 = arith.mulf %325, %324 : vector<2x256xf32>
      %327 = arith.addf %315, %326 : vector<2x256xf32>
      %c1_i32_161 = arith.constant 1 : i32
      %328 = vector.broadcast %c1_i32_161 : i32 to vector<2x256xi32>
      %329 = arith.cmpi sge, %51, %328 : vector<2x256xi32>
      %cst_162 = arith.constant 0.000000e+00 : f32
      %330 = vector.broadcast %cst_162 : f32 to vector<2x256xf32>
      %331 = arith.select %329, %321, %330 : vector<2x256xi1>, vector<2x256xf32>
      %332 = arith.addf %238, %331 : vector<2x256xf32>
      %cst_163 = arith.constant 0.000000e+00 : f32
      %333 = vector.broadcast %cst_163 : f32 to vector<2x256xf32>
      %334 = arith.select %329, %327, %333 : vector<2x256xi1>, vector<2x256xf32>
      %335 = arith.addf %241, %334 : vector<2x256xf32>
      %cst_164 = arith.constant 0.000000e+00 : f32
      %336 = vector.broadcast %cst_164 : f32 to vector<2x256xf32>
      %cst_165 = arith.constant 0.000000e+00 : f32
      %337 = vector.broadcast %cst_165 : f32 to vector<2x256xf32>
      %c3 = arith.constant 3 : index
      %338 = memref.load %arg3[%c3] : memref<98xf32, #tpu.memory_space<smem>>
      %c0_166 = arith.constant 0 : index
      %c0_167 = arith.constant 0 : index
      %c3_168 = arith.constant 3 : index
      %339 = vector.load %arg8[%c0_166, %c0_167, %c3_168] : memref<2x2x358xf32, #tpu.memory_space<vmem>>, vector<1x2x256xf32>
      %340 = vector.shape_cast %339 : vector<1x2x256xf32> to vector<2x256xf32>
      %341 = vector.broadcast %338 : f32 to vector<2x256xf32>
      %342 = arith.mulf %341, %340 : vector<2x256xf32>
      %343 = arith.addf %336, %342 : vector<2x256xf32>
      %c52 = arith.constant 52 : index
      %344 = memref.load %arg3[%c52] : memref<98xf32, #tpu.memory_space<smem>>
      %c1_169 = arith.constant 1 : index
      %c0_170 = arith.constant 0 : index
      %c3_171 = arith.constant 3 : index
      %345 = vector.load %arg8[%c1_169, %c0_170, %c3_171] : memref<2x2x358xf32, #tpu.memory_space<vmem>>, vector<1x2x256xf32>
      %346 = vector.shape_cast %345 : vector<1x2x256xf32> to vector<2x256xf32>
      %347 = vector.broadcast %344 : f32 to vector<2x256xf32>
      %348 = arith.mulf %347, %346 : vector<2x256xf32>
      %349 = arith.addf %337, %348 : vector<2x256xf32>
      %c10 = arith.constant 10 : index
      %350 = memref.load %arg3[%c10] : memref<98xf32, #tpu.memory_space<smem>>
      %c0_172 = arith.constant 0 : index
      %c0_173 = arith.constant 0 : index
      %c19 = arith.constant 19 : index
      %351 = vector.load %arg8[%c0_172, %c0_173, %c19] : memref<2x2x358xf32, #tpu.memory_space<vmem>>, vector<1x2x256xf32>
      %352 = vector.shape_cast %351 : vector<1x2x256xf32> to vector<2x256xf32>
      %353 = vector.broadcast %350 : f32 to vector<2x256xf32>
      %354 = arith.mulf %353, %352 : vector<2x256xf32>
      %355 = arith.addf %343, %354 : vector<2x256xf32>
      %c59 = arith.constant 59 : index
      %356 = memref.load %arg3[%c59] : memref<98xf32, #tpu.memory_space<smem>>
      %c1_174 = arith.constant 1 : index
      %c0_175 = arith.constant 0 : index
      %c19_176 = arith.constant 19 : index
      %357 = vector.load %arg8[%c1_174, %c0_175, %c19_176] : memref<2x2x358xf32, #tpu.memory_space<vmem>>, vector<1x2x256xf32>
      %358 = vector.shape_cast %357 : vector<1x2x256xf32> to vector<2x256xf32>
      %359 = vector.broadcast %356 : f32 to vector<2x256xf32>
      %360 = arith.mulf %359, %358 : vector<2x256xf32>
      %361 = arith.addf %349, %360 : vector<2x256xf32>
      %c17_177 = arith.constant 17 : index
      %362 = memref.load %arg3[%c17_177] : memref<98xf32, #tpu.memory_space<smem>>
      %c0_178 = arith.constant 0 : index
      %c0_179 = arith.constant 0 : index
      %c35_180 = arith.constant 35 : index
      %363 = vector.load %arg8[%c0_178, %c0_179, %c35_180] : memref<2x2x358xf32, #tpu.memory_space<vmem>>, vector<1x2x256xf32>
      %364 = vector.shape_cast %363 : vector<1x2x256xf32> to vector<2x256xf32>
      %365 = vector.broadcast %362 : f32 to vector<2x256xf32>
      %366 = arith.mulf %365, %364 : vector<2x256xf32>
      %367 = arith.addf %355, %366 : vector<2x256xf32>
      %c66_181 = arith.constant 66 : index
      %368 = memref.load %arg3[%c66_181] : memref<98xf32, #tpu.memory_space<smem>>
      %c1_182 = arith.constant 1 : index
      %c0_183 = arith.constant 0 : index
      %c35_184 = arith.constant 35 : index
      %369 = vector.load %arg8[%c1_182, %c0_183, %c35_184] : memref<2x2x358xf32, #tpu.memory_space<vmem>>, vector<1x2x256xf32>
      %370 = vector.shape_cast %369 : vector<1x2x256xf32> to vector<2x256xf32>
      %371 = vector.broadcast %368 : f32 to vector<2x256xf32>
      %372 = arith.mulf %371, %370 : vector<2x256xf32>
      %373 = arith.addf %361, %372 : vector<2x256xf32>
      %c24 = arith.constant 24 : index
      %374 = memref.load %arg3[%c24] : memref<98xf32, #tpu.memory_space<smem>>
      %c0_185 = arith.constant 0 : index
      %c0_186 = arith.constant 0 : index
      %c51_187 = arith.constant 51 : index
      %375 = vector.load %arg8[%c0_185, %c0_186, %c51_187] : memref<2x2x358xf32, #tpu.memory_space<vmem>>, vector<1x2x256xf32>
      %376 = vector.shape_cast %375 : vector<1x2x256xf32> to vector<2x256xf32>
      %377 = vector.broadcast %374 : f32 to vector<2x256xf32>
      %378 = arith.mulf %377, %376 : vector<2x256xf32>
      %379 = arith.addf %367, %378 : vector<2x256xf32>
      %c73 = arith.constant 73 : index
      %380 = memref.load %arg3[%c73] : memref<98xf32, #tpu.memory_space<smem>>
      %c1_188 = arith.constant 1 : index
      %c0_189 = arith.constant 0 : index
      %c51_190 = arith.constant 51 : index
      %381 = vector.load %arg8[%c1_188, %c0_189, %c51_190] : memref<2x2x358xf32, #tpu.memory_space<vmem>>, vector<1x2x256xf32>
      %382 = vector.shape_cast %381 : vector<1x2x256xf32> to vector<2x256xf32>
      %383 = vector.broadcast %380 : f32 to vector<2x256xf32>
      %384 = arith.mulf %383, %382 : vector<2x256xf32>
      %385 = arith.addf %373, %384 : vector<2x256xf32>
      %c31 = arith.constant 31 : index
      %386 = memref.load %arg3[%c31] : memref<98xf32, #tpu.memory_space<smem>>
      %c0_191 = arith.constant 0 : index
      %c0_192 = arith.constant 0 : index
      %c67 = arith.constant 67 : index
      %387 = vector.load %arg8[%c0_191, %c0_192, %c67] : memref<2x2x358xf32, #tpu.memory_space<vmem>>, vector<1x2x256xf32>
      %388 = vector.shape_cast %387 : vector<1x2x256xf32> to vector<2x256xf32>
      %389 = vector.broadcast %386 : f32 to vector<2x256xf32>
      %390 = arith.mulf %389, %388 : vector<2x256xf32>
      %391 = arith.addf %379, %390 : vector<2x256xf32>
      %c80_193 = arith.constant 80 : index
      %392 = memref.load %arg3[%c80_193] : memref<98xf32, #tpu.memory_space<smem>>
      %c1_194 = arith.constant 1 : index
      %c0_195 = arith.constant 0 : index
      %c67_196 = arith.constant 67 : index
      %393 = vector.load %arg8[%c1_194, %c0_195, %c67_196] : memref<2x2x358xf32, #tpu.memory_space<vmem>>, vector<1x2x256xf32>
      %394 = vector.shape_cast %393 : vector<1x2x256xf32> to vector<2x256xf32>
      %395 = vector.broadcast %392 : f32 to vector<2x256xf32>
      %396 = arith.mulf %395, %394 : vector<2x256xf32>
      %397 = arith.addf %385, %396 : vector<2x256xf32>
      %c38 = arith.constant 38 : index
      %398 = memref.load %arg3[%c38] : memref<98xf32, #tpu.memory_space<smem>>
      %c0_197 = arith.constant 0 : index
      %c0_198 = arith.constant 0 : index
      %c83 = arith.constant 83 : index
      %399 = vector.load %arg8[%c0_197, %c0_198, %c83] : memref<2x2x358xf32, #tpu.memory_space<vmem>>, vector<1x2x256xf32>
      %400 = vector.shape_cast %399 : vector<1x2x256xf32> to vector<2x256xf32>
      %401 = vector.broadcast %398 : f32 to vector<2x256xf32>
      %402 = arith.mulf %401, %400 : vector<2x256xf32>
      %403 = arith.addf %391, %402 : vector<2x256xf32>
      %c87 = arith.constant 87 : index
      %404 = memref.load %arg3[%c87] : memref<98xf32, #tpu.memory_space<smem>>
      %c1_199 = arith.constant 1 : index
      %c0_200 = arith.constant 0 : index
      %c83_201 = arith.constant 83 : index
      %405 = vector.load %arg8[%c1_199, %c0_200, %c83_201] : memref<2x2x358xf32, #tpu.memory_space<vmem>>, vector<1x2x256xf32>
      %406 = vector.shape_cast %405 : vector<1x2x256xf32> to vector<2x256xf32>
      %407 = vector.broadcast %404 : f32 to vector<2x256xf32>
      %408 = arith.mulf %407, %406 : vector<2x256xf32>
      %409 = arith.addf %397, %408 : vector<2x256xf32>
      %c45 = arith.constant 45 : index
      %410 = memref.load %arg3[%c45] : memref<98xf32, #tpu.memory_space<smem>>
      %c0_202 = arith.constant 0 : index
      %c0_203 = arith.constant 0 : index
      %c99 = arith.constant 99 : index
      %411 = vector.load %arg8[%c0_202, %c0_203, %c99] : memref<2x2x358xf32, #tpu.memory_space<vmem>>, vector<1x2x256xf32>
      %412 = vector.shape_cast %411 : vector<1x2x256xf32> to vector<2x256xf32>
      %413 = vector.broadcast %410 : f32 to vector<2x256xf32>
      %414 = arith.mulf %413, %412 : vector<2x256xf32>
      %415 = arith.addf %403, %414 : vector<2x256xf32>
      %c94 = arith.constant 94 : index
      %416 = memref.load %arg3[%c94] : memref<98xf32, #tpu.memory_space<smem>>
      %c1_204 = arith.constant 1 : index
      %c0_205 = arith.constant 0 : index
      %c99_206 = arith.constant 99 : index
      %417 = vector.load %arg8[%c1_204, %c0_205, %c99_206] : memref<2x2x358xf32, #tpu.memory_space<vmem>>, vector<1x2x256xf32>
      %418 = vector.shape_cast %417 : vector<1x2x256xf32> to vector<2x256xf32>
      %419 = vector.broadcast %416 : f32 to vector<2x256xf32>
      %420 = arith.mulf %419, %418 : vector<2x256xf32>
      %421 = arith.addf %409, %420 : vector<2x256xf32>
      %422 = arith.addf %332, %415 : vector<2x256xf32>
      %423 = arith.addf %335, %421 : vector<2x256xf32>
      %cst_207 = arith.constant 0.000000e+00 : f32
      %424 = vector.broadcast %cst_207 : f32 to vector<2x256xf32>
      %cst_208 = arith.constant 0.000000e+00 : f32
      %425 = vector.broadcast %cst_208 : f32 to vector<2x256xf32>
      %c4 = arith.constant 4 : index
      %426 = memref.load %arg3[%c4] : memref<98xf32, #tpu.memory_space<smem>>
      %c0_209 = arith.constant 0 : index
      %c0_210 = arith.constant 0 : index
      %c4_211 = arith.constant 4 : index
      %427 = vector.load %arg8[%c0_209, %c0_210, %c4_211] : memref<2x2x358xf32, #tpu.memory_space<vmem>>, vector<1x2x256xf32>
      %428 = vector.shape_cast %427 : vector<1x2x256xf32> to vector<2x256xf32>
      %429 = vector.broadcast %426 : f32 to vector<2x256xf32>
      %430 = arith.mulf %429, %428 : vector<2x256xf32>
      %431 = arith.addf %424, %430 : vector<2x256xf32>
      %c53 = arith.constant 53 : index
      %432 = memref.load %arg3[%c53] : memref<98xf32, #tpu.memory_space<smem>>
      %c1_212 = arith.constant 1 : index
      %c0_213 = arith.constant 0 : index
      %c4_214 = arith.constant 4 : index
      %433 = vector.load %arg8[%c1_212, %c0_213, %c4_214] : memref<2x2x358xf32, #tpu.memory_space<vmem>>, vector<1x2x256xf32>
      %434 = vector.shape_cast %433 : vector<1x2x256xf32> to vector<2x256xf32>
      %435 = vector.broadcast %432 : f32 to vector<2x256xf32>
      %436 = arith.mulf %435, %434 : vector<2x256xf32>
      %437 = arith.addf %425, %436 : vector<2x256xf32>
      %c11 = arith.constant 11 : index
      %438 = memref.load %arg3[%c11] : memref<98xf32, #tpu.memory_space<smem>>
      %c0_215 = arith.constant 0 : index
      %c0_216 = arith.constant 0 : index
      %c20 = arith.constant 20 : index
      %439 = vector.load %arg8[%c0_215, %c0_216, %c20] : memref<2x2x358xf32, #tpu.memory_space<vmem>>, vector<1x2x256xf32>
      %440 = vector.shape_cast %439 : vector<1x2x256xf32> to vector<2x256xf32>
      %441 = vector.broadcast %438 : f32 to vector<2x256xf32>
      %442 = arith.mulf %441, %440 : vector<2x256xf32>
      %443 = arith.addf %431, %442 : vector<2x256xf32>
      %c60 = arith.constant 60 : index
      %444 = memref.load %arg3[%c60] : memref<98xf32, #tpu.memory_space<smem>>
      %c1_217 = arith.constant 1 : index
      %c0_218 = arith.constant 0 : index
      %c20_219 = arith.constant 20 : index
      %445 = vector.load %arg8[%c1_217, %c0_218, %c20_219] : memref<2x2x358xf32, #tpu.memory_space<vmem>>, vector<1x2x256xf32>
      %446 = vector.shape_cast %445 : vector<1x2x256xf32> to vector<2x256xf32>
      %447 = vector.broadcast %444 : f32 to vector<2x256xf32>
      %448 = arith.mulf %447, %446 : vector<2x256xf32>
      %449 = arith.addf %437, %448 : vector<2x256xf32>
      %c18_220 = arith.constant 18 : index
      %450 = memref.load %arg3[%c18_220] : memref<98xf32, #tpu.memory_space<smem>>
      %c0_221 = arith.constant 0 : index
      %c0_222 = arith.constant 0 : index
      %c36_223 = arith.constant 36 : index
      %451 = vector.load %arg8[%c0_221, %c0_222, %c36_223] : memref<2x2x358xf32, #tpu.memory_space<vmem>>, vector<1x2x256xf32>
      %452 = vector.shape_cast %451 : vector<1x2x256xf32> to vector<2x256xf32>
      %453 = vector.broadcast %450 : f32 to vector<2x256xf32>
      %454 = arith.mulf %453, %452 : vector<2x256xf32>
      %455 = arith.addf %443, %454 : vector<2x256xf32>
      %c67_224 = arith.constant 67 : index
      %456 = memref.load %arg3[%c67_224] : memref<98xf32, #tpu.memory_space<smem>>
      %c1_225 = arith.constant 1 : index
      %c0_226 = arith.constant 0 : index
      %c36_227 = arith.constant 36 : index
      %457 = vector.load %arg8[%c1_225, %c0_226, %c36_227] : memref<2x2x358xf32, #tpu.memory_space<vmem>>, vector<1x2x256xf32>
      %458 = vector.shape_cast %457 : vector<1x2x256xf32> to vector<2x256xf32>
      %459 = vector.broadcast %456 : f32 to vector<2x256xf32>
      %460 = arith.mulf %459, %458 : vector<2x256xf32>
      %461 = arith.addf %449, %460 : vector<2x256xf32>
      %c25 = arith.constant 25 : index
      %462 = memref.load %arg3[%c25] : memref<98xf32, #tpu.memory_space<smem>>
      %c0_228 = arith.constant 0 : index
      %c0_229 = arith.constant 0 : index
      %c52_230 = arith.constant 52 : index
      %463 = vector.load %arg8[%c0_228, %c0_229, %c52_230] : memref<2x2x358xf32, #tpu.memory_space<vmem>>, vector<1x2x256xf32>
      %464 = vector.shape_cast %463 : vector<1x2x256xf32> to vector<2x256xf32>
      %465 = vector.broadcast %462 : f32 to vector<2x256xf32>
      %466 = arith.mulf %465, %464 : vector<2x256xf32>
      %467 = arith.addf %455, %466 : vector<2x256xf32>
      %c74 = arith.constant 74 : index
      %468 = memref.load %arg3[%c74] : memref<98xf32, #tpu.memory_space<smem>>
      %c1_231 = arith.constant 1 : index
      %c0_232 = arith.constant 0 : index
      %c52_233 = arith.constant 52 : index
      %469 = vector.load %arg8[%c1_231, %c0_232, %c52_233] : memref<2x2x358xf32, #tpu.memory_space<vmem>>, vector<1x2x256xf32>
      %470 = vector.shape_cast %469 : vector<1x2x256xf32> to vector<2x256xf32>
      %471 = vector.broadcast %468 : f32 to vector<2x256xf32>
      %472 = arith.mulf %471, %470 : vector<2x256xf32>
      %473 = arith.addf %461, %472 : vector<2x256xf32>
      %c32_234 = arith.constant 32 : index
      %474 = memref.load %arg3[%c32_234] : memref<98xf32, #tpu.memory_space<smem>>
      %c0_235 = arith.constant 0 : index
      %c0_236 = arith.constant 0 : index
      %c68 = arith.constant 68 : index
      %475 = vector.load %arg8[%c0_235, %c0_236, %c68] : memref<2x2x358xf32, #tpu.memory_space<vmem>>, vector<1x2x256xf32>
      %476 = vector.shape_cast %475 : vector<1x2x256xf32> to vector<2x256xf32>
      %477 = vector.broadcast %474 : f32 to vector<2x256xf32>
      %478 = arith.mulf %477, %476 : vector<2x256xf32>
      %479 = arith.addf %467, %478 : vector<2x256xf32>
      %c81_237 = arith.constant 81 : index
      %480 = memref.load %arg3[%c81_237] : memref<98xf32, #tpu.memory_space<smem>>
      %c1_238 = arith.constant 1 : index
      %c0_239 = arith.constant 0 : index
      %c68_240 = arith.constant 68 : index
      %481 = vector.load %arg8[%c1_238, %c0_239, %c68_240] : memref<2x2x358xf32, #tpu.memory_space<vmem>>, vector<1x2x256xf32>
      %482 = vector.shape_cast %481 : vector<1x2x256xf32> to vector<2x256xf32>
      %483 = vector.broadcast %480 : f32 to vector<2x256xf32>
      %484 = arith.mulf %483, %482 : vector<2x256xf32>
      %485 = arith.addf %473, %484 : vector<2x256xf32>
      %c39 = arith.constant 39 : index
      %486 = memref.load %arg3[%c39] : memref<98xf32, #tpu.memory_space<smem>>
      %c0_241 = arith.constant 0 : index
      %c0_242 = arith.constant 0 : index
      %c84_243 = arith.constant 84 : index
      %487 = vector.load %arg8[%c0_241, %c0_242, %c84_243] : memref<2x2x358xf32, #tpu.memory_space<vmem>>, vector<1x2x256xf32>
      %488 = vector.shape_cast %487 : vector<1x2x256xf32> to vector<2x256xf32>
      %489 = vector.broadcast %486 : f32 to vector<2x256xf32>
      %490 = arith.mulf %489, %488 : vector<2x256xf32>
      %491 = arith.addf %479, %490 : vector<2x256xf32>
      %c88 = arith.constant 88 : index
      %492 = memref.load %arg3[%c88] : memref<98xf32, #tpu.memory_space<smem>>
      %c1_244 = arith.constant 1 : index
      %c0_245 = arith.constant 0 : index
      %c84_246 = arith.constant 84 : index
      %493 = vector.load %arg8[%c1_244, %c0_245, %c84_246] : memref<2x2x358xf32, #tpu.memory_space<vmem>>, vector<1x2x256xf32>
      %494 = vector.shape_cast %493 : vector<1x2x256xf32> to vector<2x256xf32>
      %495 = vector.broadcast %492 : f32 to vector<2x256xf32>
      %496 = arith.mulf %495, %494 : vector<2x256xf32>
      %497 = arith.addf %485, %496 : vector<2x256xf32>
      %c46 = arith.constant 46 : index
      %498 = memref.load %arg3[%c46] : memref<98xf32, #tpu.memory_space<smem>>
      %c0_247 = arith.constant 0 : index
      %c0_248 = arith.constant 0 : index
      %c100 = arith.constant 100 : index
      %499 = vector.load %arg8[%c0_247, %c0_248, %c100] : memref<2x2x358xf32, #tpu.memory_space<vmem>>, vector<1x2x256xf32>
      %500 = vector.shape_cast %499 : vector<1x2x256xf32> to vector<2x256xf32>
      %501 = vector.broadcast %498 : f32 to vector<2x256xf32>
      %502 = arith.mulf %501, %500 : vector<2x256xf32>
      %503 = arith.addf %491, %502 : vector<2x256xf32>
      %c95 = arith.constant 95 : index
      %504 = memref.load %arg3[%c95] : memref<98xf32, #tpu.memory_space<smem>>
      %c1_249 = arith.constant 1 : index
      %c0_250 = arith.constant 0 : index
      %c100_251 = arith.constant 100 : index
      %505 = vector.load %arg8[%c1_249, %c0_250, %c100_251] : memref<2x2x358xf32, #tpu.memory_space<vmem>>, vector<1x2x256xf32>
      %506 = vector.shape_cast %505 : vector<1x2x256xf32> to vector<2x256xf32>
      %507 = vector.broadcast %504 : f32 to vector<2x256xf32>
      %508 = arith.mulf %507, %506 : vector<2x256xf32>
      %509 = arith.addf %497, %508 : vector<2x256xf32>
      %c15_i32 = arith.constant 15 : i32
      %510 = vector.broadcast %c15_i32 : i32 to vector<2x256xi32>
      %511 = arith.cmpi slt, %51, %510 : vector<2x256xi32>
      %cst_252 = arith.constant 0.000000e+00 : f32
      %512 = vector.broadcast %cst_252 : f32 to vector<2x256xf32>
      %513 = arith.select %511, %503, %512 : vector<2x256xi1>, vector<2x256xf32>
      %514 = arith.addf %422, %513 : vector<2x256xf32>
      %cst_253 = arith.constant 0.000000e+00 : f32
      %515 = vector.broadcast %cst_253 : f32 to vector<2x256xf32>
      %516 = arith.select %511, %509, %515 : vector<2x256xi1>, vector<2x256xf32>
      %517 = arith.addf %423, %516 : vector<2x256xf32>
      %cst_254 = arith.constant 0.000000e+00 : f32
      %518 = vector.broadcast %cst_254 : f32 to vector<2x256xf32>
      %cst_255 = arith.constant 0.000000e+00 : f32
      %519 = vector.broadcast %cst_255 : f32 to vector<2x256xf32>
      %c5 = arith.constant 5 : index
      %520 = memref.load %arg3[%c5] : memref<98xf32, #tpu.memory_space<smem>>
      %c0_256 = arith.constant 0 : index
      %c0_257 = arith.constant 0 : index
      %c5_258 = arith.constant 5 : index
      %521 = vector.load %arg8[%c0_256, %c0_257, %c5_258] : memref<2x2x358xf32, #tpu.memory_space<vmem>>, vector<1x2x256xf32>
      %522 = vector.shape_cast %521 : vector<1x2x256xf32> to vector<2x256xf32>
      %523 = vector.broadcast %520 : f32 to vector<2x256xf32>
      %524 = arith.mulf %523, %522 : vector<2x256xf32>
      %525 = arith.addf %518, %524 : vector<2x256xf32>
      %c54 = arith.constant 54 : index
      %526 = memref.load %arg3[%c54] : memref<98xf32, #tpu.memory_space<smem>>
      %c1_259 = arith.constant 1 : index
      %c0_260 = arith.constant 0 : index
      %c5_261 = arith.constant 5 : index
      %527 = vector.load %arg8[%c1_259, %c0_260, %c5_261] : memref<2x2x358xf32, #tpu.memory_space<vmem>>, vector<1x2x256xf32>
      %528 = vector.shape_cast %527 : vector<1x2x256xf32> to vector<2x256xf32>
      %529 = vector.broadcast %526 : f32 to vector<2x256xf32>
      %530 = arith.mulf %529, %528 : vector<2x256xf32>
      %531 = arith.addf %519, %530 : vector<2x256xf32>
      %c12 = arith.constant 12 : index
      %532 = memref.load %arg3[%c12] : memref<98xf32, #tpu.memory_space<smem>>
      %c0_262 = arith.constant 0 : index
      %c0_263 = arith.constant 0 : index
      %c21_264 = arith.constant 21 : index
      %533 = vector.load %arg8[%c0_262, %c0_263, %c21_264] : memref<2x2x358xf32, #tpu.memory_space<vmem>>, vector<1x2x256xf32>
      %534 = vector.shape_cast %533 : vector<1x2x256xf32> to vector<2x256xf32>
      %535 = vector.broadcast %532 : f32 to vector<2x256xf32>
      %536 = arith.mulf %535, %534 : vector<2x256xf32>
      %537 = arith.addf %525, %536 : vector<2x256xf32>
      %c61 = arith.constant 61 : index
      %538 = memref.load %arg3[%c61] : memref<98xf32, #tpu.memory_space<smem>>
      %c1_265 = arith.constant 1 : index
      %c0_266 = arith.constant 0 : index
      %c21_267 = arith.constant 21 : index
      %539 = vector.load %arg8[%c1_265, %c0_266, %c21_267] : memref<2x2x358xf32, #tpu.memory_space<vmem>>, vector<1x2x256xf32>
      %540 = vector.shape_cast %539 : vector<1x2x256xf32> to vector<2x256xf32>
      %541 = vector.broadcast %538 : f32 to vector<2x256xf32>
      %542 = arith.mulf %541, %540 : vector<2x256xf32>
      %543 = arith.addf %531, %542 : vector<2x256xf32>
      %c19_268 = arith.constant 19 : index
      %544 = memref.load %arg3[%c19_268] : memref<98xf32, #tpu.memory_space<smem>>
      %c0_269 = arith.constant 0 : index
      %c0_270 = arith.constant 0 : index
      %c37_271 = arith.constant 37 : index
      %545 = vector.load %arg8[%c0_269, %c0_270, %c37_271] : memref<2x2x358xf32, #tpu.memory_space<vmem>>, vector<1x2x256xf32>
      %546 = vector.shape_cast %545 : vector<1x2x256xf32> to vector<2x256xf32>
      %547 = vector.broadcast %544 : f32 to vector<2x256xf32>
      %548 = arith.mulf %547, %546 : vector<2x256xf32>
      %549 = arith.addf %537, %548 : vector<2x256xf32>
      %c68_272 = arith.constant 68 : index
      %550 = memref.load %arg3[%c68_272] : memref<98xf32, #tpu.memory_space<smem>>
      %c1_273 = arith.constant 1 : index
      %c0_274 = arith.constant 0 : index
      %c37_275 = arith.constant 37 : index
      %551 = vector.load %arg8[%c1_273, %c0_274, %c37_275] : memref<2x2x358xf32, #tpu.memory_space<vmem>>, vector<1x2x256xf32>
      %552 = vector.shape_cast %551 : vector<1x2x256xf32> to vector<2x256xf32>
      %553 = vector.broadcast %550 : f32 to vector<2x256xf32>
      %554 = arith.mulf %553, %552 : vector<2x256xf32>
      %555 = arith.addf %543, %554 : vector<2x256xf32>
      %c26 = arith.constant 26 : index
      %556 = memref.load %arg3[%c26] : memref<98xf32, #tpu.memory_space<smem>>
      %c0_276 = arith.constant 0 : index
      %c0_277 = arith.constant 0 : index
      %c53_278 = arith.constant 53 : index
      %557 = vector.load %arg8[%c0_276, %c0_277, %c53_278] : memref<2x2x358xf32, #tpu.memory_space<vmem>>, vector<1x2x256xf32>
      %558 = vector.shape_cast %557 : vector<1x2x256xf32> to vector<2x256xf32>
      %559 = vector.broadcast %556 : f32 to vector<2x256xf32>
      %560 = arith.mulf %559, %558 : vector<2x256xf32>
      %561 = arith.addf %549, %560 : vector<2x256xf32>
      %c75 = arith.constant 75 : index
      %562 = memref.load %arg3[%c75] : memref<98xf32, #tpu.memory_space<smem>>
      %c1_279 = arith.constant 1 : index
      %c0_280 = arith.constant 0 : index
      %c53_281 = arith.constant 53 : index
      %563 = vector.load %arg8[%c1_279, %c0_280, %c53_281] : memref<2x2x358xf32, #tpu.memory_space<vmem>>, vector<1x2x256xf32>
      %564 = vector.shape_cast %563 : vector<1x2x256xf32> to vector<2x256xf32>
      %565 = vector.broadcast %562 : f32 to vector<2x256xf32>
      %566 = arith.mulf %565, %564 : vector<2x256xf32>
      %567 = arith.addf %555, %566 : vector<2x256xf32>
      %c33_282 = arith.constant 33 : index
      %568 = memref.load %arg3[%c33_282] : memref<98xf32, #tpu.memory_space<smem>>
      %c0_283 = arith.constant 0 : index
      %c0_284 = arith.constant 0 : index
      %c69 = arith.constant 69 : index
      %569 = vector.load %arg8[%c0_283, %c0_284, %c69] : memref<2x2x358xf32, #tpu.memory_space<vmem>>, vector<1x2x256xf32>
      %570 = vector.shape_cast %569 : vector<1x2x256xf32> to vector<2x256xf32>
      %571 = vector.broadcast %568 : f32 to vector<2x256xf32>
      %572 = arith.mulf %571, %570 : vector<2x256xf32>
      %573 = arith.addf %561, %572 : vector<2x256xf32>
      %c82_285 = arith.constant 82 : index
      %574 = memref.load %arg3[%c82_285] : memref<98xf32, #tpu.memory_space<smem>>
      %c1_286 = arith.constant 1 : index
      %c0_287 = arith.constant 0 : index
      %c69_288 = arith.constant 69 : index
      %575 = vector.load %arg8[%c1_286, %c0_287, %c69_288] : memref<2x2x358xf32, #tpu.memory_space<vmem>>, vector<1x2x256xf32>
      %576 = vector.shape_cast %575 : vector<1x2x256xf32> to vector<2x256xf32>
      %577 = vector.broadcast %574 : f32 to vector<2x256xf32>
      %578 = arith.mulf %577, %576 : vector<2x256xf32>
      %579 = arith.addf %567, %578 : vector<2x256xf32>
      %c40 = arith.constant 40 : index
      %580 = memref.load %arg3[%c40] : memref<98xf32, #tpu.memory_space<smem>>
      %c0_289 = arith.constant 0 : index
      %c0_290 = arith.constant 0 : index
      %c85_291 = arith.constant 85 : index
      %581 = vector.load %arg8[%c0_289, %c0_290, %c85_291] : memref<2x2x358xf32, #tpu.memory_space<vmem>>, vector<1x2x256xf32>
      %582 = vector.shape_cast %581 : vector<1x2x256xf32> to vector<2x256xf32>
      %583 = vector.broadcast %580 : f32 to vector<2x256xf32>
      %584 = arith.mulf %583, %582 : vector<2x256xf32>
      %585 = arith.addf %573, %584 : vector<2x256xf32>
      %c89 = arith.constant 89 : index
      %586 = memref.load %arg3[%c89] : memref<98xf32, #tpu.memory_space<smem>>
      %c1_292 = arith.constant 1 : index
      %c0_293 = arith.constant 0 : index
      %c85_294 = arith.constant 85 : index
      %587 = vector.load %arg8[%c1_292, %c0_293, %c85_294] : memref<2x2x358xf32, #tpu.memory_space<vmem>>, vector<1x2x256xf32>
      %588 = vector.shape_cast %587 : vector<1x2x256xf32> to vector<2x256xf32>
      %589 = vector.broadcast %586 : f32 to vector<2x256xf32>
      %590 = arith.mulf %589, %588 : vector<2x256xf32>
      %591 = arith.addf %579, %590 : vector<2x256xf32>
      %c47 = arith.constant 47 : index
      %592 = memref.load %arg3[%c47] : memref<98xf32, #tpu.memory_space<smem>>
      %c0_295 = arith.constant 0 : index
      %c0_296 = arith.constant 0 : index
      %c101 = arith.constant 101 : index
      %593 = vector.load %arg8[%c0_295, %c0_296, %c101] : memref<2x2x358xf32, #tpu.memory_space<vmem>>, vector<1x2x256xf32>
      %594 = vector.shape_cast %593 : vector<1x2x256xf32> to vector<2x256xf32>
      %595 = vector.broadcast %592 : f32 to vector<2x256xf32>
      %596 = arith.mulf %595, %594 : vector<2x256xf32>
      %597 = arith.addf %585, %596 : vector<2x256xf32>
      %c96_297 = arith.constant 96 : index
      %598 = memref.load %arg3[%c96_297] : memref<98xf32, #tpu.memory_space<smem>>
      %c1_298 = arith.constant 1 : index
      %c0_299 = arith.constant 0 : index
      %c101_300 = arith.constant 101 : index
      %599 = vector.load %arg8[%c1_298, %c0_299, %c101_300] : memref<2x2x358xf32, #tpu.memory_space<vmem>>, vector<1x2x256xf32>
      %600 = vector.shape_cast %599 : vector<1x2x256xf32> to vector<2x256xf32>
      %601 = vector.broadcast %598 : f32 to vector<2x256xf32>
      %602 = arith.mulf %601, %600 : vector<2x256xf32>
      %603 = arith.addf %591, %602 : vector<2x256xf32>
      %c14_i32 = arith.constant 14 : i32
      %604 = vector.broadcast %c14_i32 : i32 to vector<2x256xi32>
      %605 = arith.cmpi slt, %51, %604 : vector<2x256xi32>
      %cst_301 = arith.constant 0.000000e+00 : f32
      %606 = vector.broadcast %cst_301 : f32 to vector<2x256xf32>
      %607 = arith.select %605, %597, %606 : vector<2x256xi1>, vector<2x256xf32>
      %608 = arith.addf %514, %607 : vector<2x256xf32>
      %cst_302 = arith.constant 0.000000e+00 : f32
      %609 = vector.broadcast %cst_302 : f32 to vector<2x256xf32>
      %610 = arith.select %605, %603, %609 : vector<2x256xi1>, vector<2x256xf32>
      %611 = arith.addf %517, %610 : vector<2x256xf32>
      %cst_303 = arith.constant 0.000000e+00 : f32
      %612 = vector.broadcast %cst_303 : f32 to vector<2x256xf32>
      %cst_304 = arith.constant 0.000000e+00 : f32
      %613 = vector.broadcast %cst_304 : f32 to vector<2x256xf32>
      %c6 = arith.constant 6 : index
      %614 = memref.load %arg3[%c6] : memref<98xf32, #tpu.memory_space<smem>>
      %c0_305 = arith.constant 0 : index
      %c0_306 = arith.constant 0 : index
      %c6_307 = arith.constant 6 : index
      %615 = vector.load %arg8[%c0_305, %c0_306, %c6_307] : memref<2x2x358xf32, #tpu.memory_space<vmem>>, vector<1x2x256xf32>
      %616 = vector.shape_cast %615 : vector<1x2x256xf32> to vector<2x256xf32>
      %617 = vector.broadcast %614 : f32 to vector<2x256xf32>
      %618 = arith.mulf %617, %616 : vector<2x256xf32>
      %619 = arith.addf %612, %618 : vector<2x256xf32>
      %c55 = arith.constant 55 : index
      %620 = memref.load %arg3[%c55] : memref<98xf32, #tpu.memory_space<smem>>
      %c1_308 = arith.constant 1 : index
      %c0_309 = arith.constant 0 : index
      %c6_310 = arith.constant 6 : index
      %621 = vector.load %arg8[%c1_308, %c0_309, %c6_310] : memref<2x2x358xf32, #tpu.memory_space<vmem>>, vector<1x2x256xf32>
      %622 = vector.shape_cast %621 : vector<1x2x256xf32> to vector<2x256xf32>
      %623 = vector.broadcast %620 : f32 to vector<2x256xf32>
      %624 = arith.mulf %623, %622 : vector<2x256xf32>
      %625 = arith.addf %613, %624 : vector<2x256xf32>
      %c13 = arith.constant 13 : index
      %626 = memref.load %arg3[%c13] : memref<98xf32, #tpu.memory_space<smem>>
      %c0_311 = arith.constant 0 : index
      %c0_312 = arith.constant 0 : index
      %c22_313 = arith.constant 22 : index
      %627 = vector.load %arg8[%c0_311, %c0_312, %c22_313] : memref<2x2x358xf32, #tpu.memory_space<vmem>>, vector<1x2x256xf32>
      %628 = vector.shape_cast %627 : vector<1x2x256xf32> to vector<2x256xf32>
      %629 = vector.broadcast %626 : f32 to vector<2x256xf32>
      %630 = arith.mulf %629, %628 : vector<2x256xf32>
      %631 = arith.addf %619, %630 : vector<2x256xf32>
      %c62 = arith.constant 62 : index
      %632 = memref.load %arg3[%c62] : memref<98xf32, #tpu.memory_space<smem>>
      %c1_314 = arith.constant 1 : index
      %c0_315 = arith.constant 0 : index
      %c22_316 = arith.constant 22 : index
      %633 = vector.load %arg8[%c1_314, %c0_315, %c22_316] : memref<2x2x358xf32, #tpu.memory_space<vmem>>, vector<1x2x256xf32>
      %634 = vector.shape_cast %633 : vector<1x2x256xf32> to vector<2x256xf32>
      %635 = vector.broadcast %632 : f32 to vector<2x256xf32>
      %636 = arith.mulf %635, %634 : vector<2x256xf32>
      %637 = arith.addf %625, %636 : vector<2x256xf32>
      %c20_317 = arith.constant 20 : index
      %638 = memref.load %arg3[%c20_317] : memref<98xf32, #tpu.memory_space<smem>>
      %c0_318 = arith.constant 0 : index
      %c0_319 = arith.constant 0 : index
      %c38_320 = arith.constant 38 : index
      %639 = vector.load %arg8[%c0_318, %c0_319, %c38_320] : memref<2x2x358xf32, #tpu.memory_space<vmem>>, vector<1x2x256xf32>
      %640 = vector.shape_cast %639 : vector<1x2x256xf32> to vector<2x256xf32>
      %641 = vector.broadcast %638 : f32 to vector<2x256xf32>
      %642 = arith.mulf %641, %640 : vector<2x256xf32>
      %643 = arith.addf %631, %642 : vector<2x256xf32>
      %c69_321 = arith.constant 69 : index
      %644 = memref.load %arg3[%c69_321] : memref<98xf32, #tpu.memory_space<smem>>
      %c1_322 = arith.constant 1 : index
      %c0_323 = arith.constant 0 : index
      %c38_324 = arith.constant 38 : index
      %645 = vector.load %arg8[%c1_322, %c0_323, %c38_324] : memref<2x2x358xf32, #tpu.memory_space<vmem>>, vector<1x2x256xf32>
      %646 = vector.shape_cast %645 : vector<1x2x256xf32> to vector<2x256xf32>
      %647 = vector.broadcast %644 : f32 to vector<2x256xf32>
      %648 = arith.mulf %647, %646 : vector<2x256xf32>
      %649 = arith.addf %637, %648 : vector<2x256xf32>
      %c27 = arith.constant 27 : index
      %650 = memref.load %arg3[%c27] : memref<98xf32, #tpu.memory_space<smem>>
      %c0_325 = arith.constant 0 : index
      %c0_326 = arith.constant 0 : index
      %c54_327 = arith.constant 54 : index
      %651 = vector.load %arg8[%c0_325, %c0_326, %c54_327] : memref<2x2x358xf32, #tpu.memory_space<vmem>>, vector<1x2x256xf32>
      %652 = vector.shape_cast %651 : vector<1x2x256xf32> to vector<2x256xf32>
      %653 = vector.broadcast %650 : f32 to vector<2x256xf32>
      %654 = arith.mulf %653, %652 : vector<2x256xf32>
      %655 = arith.addf %643, %654 : vector<2x256xf32>
      %c76 = arith.constant 76 : index
      %656 = memref.load %arg3[%c76] : memref<98xf32, #tpu.memory_space<smem>>
      %c1_328 = arith.constant 1 : index
      %c0_329 = arith.constant 0 : index
      %c54_330 = arith.constant 54 : index
      %657 = vector.load %arg8[%c1_328, %c0_329, %c54_330] : memref<2x2x358xf32, #tpu.memory_space<vmem>>, vector<1x2x256xf32>
      %658 = vector.shape_cast %657 : vector<1x2x256xf32> to vector<2x256xf32>
      %659 = vector.broadcast %656 : f32 to vector<2x256xf32>
      %660 = arith.mulf %659, %658 : vector<2x256xf32>
      %661 = arith.addf %649, %660 : vector<2x256xf32>
      %c34_331 = arith.constant 34 : index
      %662 = memref.load %arg3[%c34_331] : memref<98xf32, #tpu.memory_space<smem>>
      %c0_332 = arith.constant 0 : index
      %c0_333 = arith.constant 0 : index
      %c70_334 = arith.constant 70 : index
      %663 = vector.load %arg8[%c0_332, %c0_333, %c70_334] : memref<2x2x358xf32, #tpu.memory_space<vmem>>, vector<1x2x256xf32>
      %664 = vector.shape_cast %663 : vector<1x2x256xf32> to vector<2x256xf32>
      %665 = vector.broadcast %662 : f32 to vector<2x256xf32>
      %666 = arith.mulf %665, %664 : vector<2x256xf32>
      %667 = arith.addf %655, %666 : vector<2x256xf32>
      %c83_335 = arith.constant 83 : index
      %668 = memref.load %arg3[%c83_335] : memref<98xf32, #tpu.memory_space<smem>>
      %c1_336 = arith.constant 1 : index
      %c0_337 = arith.constant 0 : index
      %c70_338 = arith.constant 70 : index
      %669 = vector.load %arg8[%c1_336, %c0_337, %c70_338] : memref<2x2x358xf32, #tpu.memory_space<vmem>>, vector<1x2x256xf32>
      %670 = vector.shape_cast %669 : vector<1x2x256xf32> to vector<2x256xf32>
      %671 = vector.broadcast %668 : f32 to vector<2x256xf32>
      %672 = arith.mulf %671, %670 : vector<2x256xf32>
      %673 = arith.addf %661, %672 : vector<2x256xf32>
      %c41 = arith.constant 41 : index
      %674 = memref.load %arg3[%c41] : memref<98xf32, #tpu.memory_space<smem>>
      %c0_339 = arith.constant 0 : index
      %c0_340 = arith.constant 0 : index
      %c86_341 = arith.constant 86 : index
      %675 = vector.load %arg8[%c0_339, %c0_340, %c86_341] : memref<2x2x358xf32, #tpu.memory_space<vmem>>, vector<1x2x256xf32>
      %676 = vector.shape_cast %675 : vector<1x2x256xf32> to vector<2x256xf32>
      %677 = vector.broadcast %674 : f32 to vector<2x256xf32>
      %678 = arith.mulf %677, %676 : vector<2x256xf32>
      %679 = arith.addf %667, %678 : vector<2x256xf32>
      %c90 = arith.constant 90 : index
      %680 = memref.load %arg3[%c90] : memref<98xf32, #tpu.memory_space<smem>>
      %c1_342 = arith.constant 1 : index
      %c0_343 = arith.constant 0 : index
      %c86_344 = arith.constant 86 : index
      %681 = vector.load %arg8[%c1_342, %c0_343, %c86_344] : memref<2x2x358xf32, #tpu.memory_space<vmem>>, vector<1x2x256xf32>
      %682 = vector.shape_cast %681 : vector<1x2x256xf32> to vector<2x256xf32>
      %683 = vector.broadcast %680 : f32 to vector<2x256xf32>
      %684 = arith.mulf %683, %682 : vector<2x256xf32>
      %685 = arith.addf %673, %684 : vector<2x256xf32>
      %c48_345 = arith.constant 48 : index
      %686 = memref.load %arg3[%c48_345] : memref<98xf32, #tpu.memory_space<smem>>
      %c0_346 = arith.constant 0 : index
      %c0_347 = arith.constant 0 : index
      %c102 = arith.constant 102 : index
      %687 = vector.load %arg8[%c0_346, %c0_347, %c102] : memref<2x2x358xf32, #tpu.memory_space<vmem>>, vector<1x2x256xf32>
      %688 = vector.shape_cast %687 : vector<1x2x256xf32> to vector<2x256xf32>
      %689 = vector.broadcast %686 : f32 to vector<2x256xf32>
      %690 = arith.mulf %689, %688 : vector<2x256xf32>
      %691 = arith.addf %679, %690 : vector<2x256xf32>
      %c97_348 = arith.constant 97 : index
      %692 = memref.load %arg3[%c97_348] : memref<98xf32, #tpu.memory_space<smem>>
      %c1_349 = arith.constant 1 : index
      %c0_350 = arith.constant 0 : index
      %c102_351 = arith.constant 102 : index
      %693 = vector.load %arg8[%c1_349, %c0_350, %c102_351] : memref<2x2x358xf32, #tpu.memory_space<vmem>>, vector<1x2x256xf32>
      %694 = vector.shape_cast %693 : vector<1x2x256xf32> to vector<2x256xf32>
      %695 = vector.broadcast %692 : f32 to vector<2x256xf32>
      %696 = arith.mulf %695, %694 : vector<2x256xf32>
      %697 = arith.addf %685, %696 : vector<2x256xf32>
      %c13_i32 = arith.constant 13 : i32
      %698 = vector.broadcast %c13_i32 : i32 to vector<2x256xi32>
      %699 = arith.cmpi slt, %51, %698 : vector<2x256xi32>
      %cst_352 = arith.constant 0.000000e+00 : f32
      %700 = vector.broadcast %cst_352 : f32 to vector<2x256xf32>
      %701 = arith.select %699, %691, %700 : vector<2x256xi1>, vector<2x256xf32>
      %702 = arith.addf %608, %701 : vector<2x256xf32>
      %cst_353 = arith.constant 0.000000e+00 : f32
      %703 = vector.broadcast %cst_353 : f32 to vector<2x256xf32>
      %704 = arith.select %699, %697, %703 : vector<2x256xi1>, vector<2x256xf32>
      %705 = arith.addf %611, %704 : vector<2x256xf32>
      %706 = arith.addf %702, %705 : vector<2x256xf32>
      %c0_354 = arith.constant 0 : index
      %707 = memref.load %arg4[%c0_354] : memref<1xf32, #tpu.memory_space<smem>>
      %708 = vector.broadcast %707 : f32 to vector<2x256xf32>
      %709 = arith.addf %706, %708 : vector<2x256xf32>
      %710 = arith.negf %709 : vector<2x256xf32>
      %711 = math.exp %710 : vector<2x256xf32>
      %cst_355 = arith.constant 1.000000e+00 : f32
      %712 = vector.broadcast %cst_355 : f32 to vector<2x256xf32>
      %713 = arith.addf %712, %711 : vector<2x256xf32>
      %714 = arith.divf %712, %713 : vector<2x256xf32>
      %c0_356 = arith.constant 0 : index
      %c0_357 = arith.constant 0 : index
      %715 = vector.load %arg5[%c0_356, %c0_357] : memref<2x256xf32, #tpu.memory_space<vmem>>, vector<2x256xf32>
      tpu.vector_store %arg5[%c0_356, %c0_357], %714 {strides = array<i32>} : memref<2x256xf32, #tpu.memory_space<vmem>>, vector<2x256xf32>,
    } else {
    }
    return
  }
  func.func @transform_0(%arg0: i32, %arg1: i32) -> (i32, i32, i32) {
    %c0_i32 = arith.constant 0 : i32
    %c0_i32_0 = arith.constant 0 : i32
    return %arg0, %arg1, %c0_i32 : i32, i32, i32
  }
  func.func @transform_1(%arg0: i32, %arg1: i32) -> i32 {
    %c0_i32 = arith.constant 0 : i32
    %c0_i32_0 = arith.constant 0 : i32
    return %c0_i32 : i32
  }
  func.func @transform_2(%arg0: i32, %arg1: i32) -> i32 {
    %c0_i32 = arith.constant 0 : i32
    %c0_i32_0 = arith.constant 0 : i32
    return %c0_i32 : i32
  }
  func.func @transform_3(%arg0: i32, %arg1: i32) -> (i32, i32) {
    %c0_i32 = arith.constant 0 : i32
    %c0_i32_0 = arith.constant 0 : i32
    return %arg0, %c0_i32 : i32, i32
  }
}

</mosaic_0001>

<bundles_post_ra>
// kernel: tpu_custom_call.1
= control target key start
LH: loop header
LB: loop body
LE: loop exit
PB: predicated region body
PF: predicated region fallthrough
CT: control target
= control target key end

     0   :  { %9 = vsyncpa [#allocation7], 0  ;;  %s2782_s0 = inlined_call_operand.hbm [shape: f32[2,4,256], index: 0, kind: input, shape index: {}]   ;;  %s2783_s1 = inlined_call_operand.vmem [shape: f32[98], index: 1, kind: input, shape index: {}]   ;;  %s2784_s2 = inlined_call_operand.<no memory space> [shape: f32[1], index: 2, kind: input, shape index: {}]   ;;  %s2785_s3 = inlined_call_operand.hbm [shape: f32[2,256], index: 3, kind: output, shape index: {}]  }
   0x1   :  { %10 = vsyncpa [#allocation9], 0 }
   0x2   :  { %11 = vsyncpa [#allocation8], 0  ;;  %s1880_s12 = smov [#allocation6]   ;;  %s30_s16 = sshll.u32 %s2783_s1, 4  ;;  %s31_s16 = int_to_ptr.vmem [resolvable:$true] %s30_s16 }
   0x3   :  { %s17_s13 = sshll.u32 %s1880_s12, 4  ;;  %s1818_s19 = scalar_lea.hbm %s2782_s0, 256  ;;  %s18_s13 = int_to_ptr.vmem [resolvable:$true] %s17_s13 }
   0x4   :  { %p1819_p0 = scmp.ne.s32.totalorder %s2782_s0, %s1818_s19  ;;  %p1822_p1 = scmp.lt.u32.totalorder %s1818_s19, %s2782_s0 }
   0x6   :  { %p1824_p2 = pnand %p1822_p1, %p1819_p0 }
   0x8   :  { %1827 = shalt.err (!%p1824_p2)
}
   0x9   :  { %s1828_s24 = scalar_lea.vmem %s18_s13, 256  ;;  %p1833_p4 = scmp.lt.s32.totalorder %s18_s13, %s18_s13 }
   0xa   :  { %p1829_p3 = scmp.ne.s32.totalorder %s18_s13, %s1828_s24  ;;  %p1834_p5 = scmp.lt.s32.totalorder %s1828_s24, %s1828_s24 }
   0xc   :  { %p1835_p6 = por %p1834_p5, %p1833_p4 }
   0xe   :  { %p1836_p7 = pnand %p1835_p6, %p1829_p3 }
  0x10   :  { %1839 = shalt.err (!%p1836_p7)
}
  0x11   :  { %s1881_s1 = smov 128   ;;  %s1882_s25 = smov 8  }
  0x12   :  { %23 = dma.hbm_to_vmem [thread:$0]  %s2782_s0, 256, %s18_s13, [#allocation7], %s1881_s1, %s1881_s1, %s1882_s25  }
  0x13   :  { %s1840_s28 = scalar_lea.vmem %s31_s16, 16  ;;  %p1845_p9 = scmp.lt.s32.totalorder %s31_s16, %s31_s16 }
  0x14   :  { %p1841_p8 = scmp.ne.s32.totalorder %s31_s16, %s1840_s28  ;;  %p1846_p10 = scmp.lt.s32.totalorder %s1840_s28, %s1840_s28 }
  0x16   :  { %p1847_p11 = por %p1846_p10, %p1845_p9 }
  0x18   :  { %p1848_p12 = pnand %p1847_p11, %p1841_p8 }
  0x1a   :  { %1851 = shalt.err (!%p1848_p12)
}
  0x1b   :  { %s1883_s29 = smov [#allocation10]  }
  0x1c   :  { %33 = dma.vmem_to_smem %s31_s16, 16, %s1883_s29, [#allocation9]  }
  0x1d   :  { %1874 = dma.done.wait [#allocation7], 256  }
  0x1e   :  { %1875 = vsyncadd [#allocation7], 4294967040 }
  0x1f   :  { %1876 = dma.done.wait [#allocation9], 16  }
  0x20   :  { %1877 = vsyncadd [#allocation9], 4294967280 }
  0x21   :  { %42 = sfence }
  0x22   :  { %v43_v0 = vld [vmem:[#allocation6] sm:$0xff]  ;;  %v44_v1 = vld [vmem:[#allocation6 + $0x8] sm:$0xff]  ;;  %vm51_vm0 = vcmask 1043456   ;;  %v2786_v2 = vlaneseq  ;;  %v1884_v9 = vmov 1983009808   ;;  %vm254_vm1 = vcmask 410624  }
  0x23   :  { %v47_v3 = vcombine.high %v43_v0, %v43_v0  ;;  %v48_v4 = vcombine.high %v44_v1, %v44_v1  ;;  %v80_v5 = vsel %vm51_vm0, %v43_v0, -inf  ;;  %v94_v6 = vsel %vm51_vm0, %v44_v1, -inf  ;;  %s1886_s0 = smov 51   ;;  %s1690_s30 = sld [smem:[#allocation10 + $0x38]] }
  0x24   :  { %v81_v7 = vrot.slane %v80_v5, 4  ;;  %v95_v8 = vrot.slane %v94_v6, 4  ;;  %v118_v10 = vunpack.c.l.s4 %v1884_v9  ;;  %v121_v13 = vshrl.u32 %v2786_v2, 7  ;;  %s1692_s4 = sld [smem:[#allocation10 + $0x3f]]  ;;  %s1694_s5 = sld [smem:[#allocation10 + $0x46]] }
  0x25   :  { %v87_v11 = vsel %vm51_vm0, %v47_v3, -inf  ;;  %v101_v12 = vsel %vm51_vm0, %v48_v4, -inf  ;;  %v52_v19 = vsel %vm51_vm0, %v43_v0, 0.0  ;;  %v59_v20 = vsel %vm51_vm0, %v47_v3, 0.0  ;;  %s1691_s6 = sld [smem:[#allocation10 + $0xe]]  ;;  %s1693_s7 = sld [smem:[#allocation10 + $0x15]] }
  0x26   :  { %v82_v14 = vmax.f32 %v80_v5, %v81_v7  ;;  %v88_v15 = vrot.slane %v87_v11, 4  ;;  %v96_v16 = vmax.f32 %v94_v6, %v95_v8  ;;  %v102_v17 = vrot.slane %v101_v12, 4  ;;  %s1696_s8 = sld [smem:[#allocation10 + $0x4d]]  ;;  %s1887_s9 = smov 112  }
  0x27   :  { %v119_v18 = vunpack.c.0.s8 %v118_v10  ;;  %v53_v26 = vrot.slane %v52_v19, 4  ;;  %v60_v27 = vrot.slane %v59_v20, 4  ;;  %v66_v28 = vsel %vm51_vm0, %v44_v1, 0.0  ;;  %s1695_s10 = sld [smem:[#allocation10 + $0x1c]]  ;;  %s1888_s12 = smov 96  }
  0x28   :  { %v83_v21 = vrot.slane %v82_v14, 2  ;;  %v89_v22 = vmax.f32 %v87_v11, %v88_v15  ;;  %v97_v23 = vrot.slane %v96_v16, 2  ;;  %v103_v24 = vmax.f32 %v101_v12, %v102_v17  ;;  %s1698_s11 = sld [smem:[#allocation10 + $0x54]]  ;;  %s1697_s13 = sld [smem:[#allocation10 + $0x23]] }
  0x29   :  { %v1942_v25 = vsub.s32 %v119_v18, %v121_v13  ;;  %v54_v33 = vadd.f32 %v53_v26, %v52_v19  ;;  %v61_v34 = vadd.f32 %v60_v27, %v59_v20  ;;  %v67_v35 = vrot.slane %v66_v28, 4  ;;  %s1700_s14 = sld [smem:[#allocation10 + $0x5b]]  ;;  %s1889_s15 = smov 80  }
  0x2a   :  { %v84_v29 = vmax.f32 %v82_v14, %v83_v21  ;;  %v90_v30 = vrot.slane %v89_v22, 2  ;;  %v98_v31 = vmax.f32 %v96_v16, %v97_v23  ;;  %v104_v32 = vrot.slane %v103_v24, 2  ;;  %s1699_s16 = sld [smem:[#allocation10 + $0x2a]]  ;;  %s1704_s17 = sld [smem:[#allocation10 + $0x39]] }
  0x2b   :  { %v73_v36 = vsel %vm51_vm0, %v48_v4, 0.0  ;;  %v55_v41 = vrot.slane %v54_v33, 2  ;;  %v62_v42 = vrot.slane %v61_v34, 2  ;;  %v68_v43 = vadd.f32 %v67_v35, %v66_v28  ;;  %s1890_s18 = smov 64   ;;  %s1703_s19 = sld [smem:[#allocation10 + $0x8]] }
  0x2c   :  { %v85_v37 = vrot.slane %v84_v29, 1  ;;  %v91_v38 = vmax.f32 %v89_v22, %v90_v30  ;;  %v99_v39 = vrot.slane %v98_v31, 1  ;;  %v105_v40 = vmax.f32 %v103_v24, %v104_v32  ;;  %s1706_s20 = sld [smem:[#allocation10 + $0x40]]  ;;  %s1891_s21 = smov 48  }
  0x2d   :  { %v74_v44 = vrot.slane %v73_v36, 4  ;;  %v56_v49 = vadd.f32 %v55_v41, %v54_v33  ;;  %v63_v50 = vadd.f32 %v62_v42, %v61_v34  ;;  %v69_v51 = vrot.slane %v68_v43, 2  ;;  %s1708_s22 = sld [smem:[#allocation10 + $0x47]]  ;;  %s1892_s23 = smov 32  }
  0x2e   :  { %v86_v45 = vmax.f32 %v84_v29, %v85_v37  ;;  %v92_v46 = vrot.slane %v91_v38, 1  ;;  %v100_v47 = vmax.f32 %v98_v31, %v99_v39  ;;  %v106_v48 = vrot.slane %v105_v40, 1  ;;  %s1705_s24 = sld [smem:[#allocation10 + $0xf]]  ;;  %s1710_s1 = sld [smem:[#allocation10 + $0x4e]] }
  0x2f   :  { %v75_v52 = vadd.f32 %v74_v44, %v73_v36  ;;  %v57_v55 = vrot.slane %v56_v49, 1  ;;  %v64_v56 = vrot.slane %v63_v50, 1  ;;  %v70_v57 = vadd.f32 %v69_v51, %v68_v43  ;;  %s1707_s25 = sld [smem:[#allocation10 + $0x16]]  ;;  %s1712_s26 = sld [smem:[#allocation10 + $0x55]] }
  0x30   :  { %v93_v53 = vmax.f32 %v91_v38, %v92_v46  ;;  %v107_v54 = vmax.f32 %v105_v40, %v106_v48  ;;  %v1885_v59 = vmov 0.0   ;;  %vm256_vm2 = vcmask 828824   ;;  %s1709_s27 = sld [smem:[#allocation10 + $0x1d]]  ;;  %s1714_s28 = sld [smem:[#allocation10 + $0x5c]] }
  0x31   :  { %v76_v58 = vrot.slane %v75_v52, 2  ;;  %259 = vst.msk [vmem:[#allocation4 + $0x6] sm:$0x3] %vm254_vm1, %v1885_v59  ;;  %255 = vst.msk [vmem:[#allocation4] sm:$0x3] %vm254_vm1, %v1885_v59  ;;  %v58_v62 = vadd.f32 %v57_v55, %v56_v49  ;;  %v65_v63 = vadd.f32 %v64_v56, %v63_v50  ;;  %v71_v0 = vrot.slane %v70_v57, 1 }
  0x32   :  { %v151_v60 = vcombine.low %v86_v45, %v93_v53  ;;  %v159_v61 = vcombine.low %v100_v47, %v107_v54  ;;  %260 = vst.msk [vmem:[#allocation4 + $0xa] sm:$0x3] %vm256_vm2, %v1885_v59  ;;  %257 = vst.msk [vmem:[#allocation4 + $0x4] sm:$0x3] %vm256_vm2, %v1885_v59  ;;  %vm137_vm3 = vcmask 1041409   ;;  %vm139_vm4 = vcmask 1043459  }
  0x33   :  { %v77_v1 = vadd.f32 %v76_v58, %v75_v52  ;;  %v72_v5 = vadd.f32 %v71_v0, %v70_v57  ;;  %vm141_vm5 = vcmask 1045509   ;;  %v116_v9 = vcombine.low %v58_v62, %v65_v63  ;;  %s1711_s29 = sld [smem:[#allocation10 + $0x24]] }
  0x34   :  { %v158_v3 = vrot.slane %v151_v60, %v1942_v25  ;;  %v166_v4 = vrot.slane %v159_v61, %v1942_v25  ;;  %vm143_vm6 = vcmask 1047559   ;;  %vm268_vm7 = vcmask 1041816  }
  0x35   :  { %v78_v6 = vrot.slane %v77_v1, 1  ;;  %v123_v15 = vrot.slane %v116_v9, %v1942_v25  ;;  %vm269_vm8 = vcmask 1043458   ;;  %vm271_vm10 = vcmask 414724  }
  0x36   :  { %v169_v7 = vrot.slane %v166_v4, 7  ;;  %vm270_vm9 = vmor %vm269_vm8, %vm268_vm7  ;;  %vm265_vm11 = vcmask 416768   ;;  %v332_v30 = vstv %s1690_s30  ;;  %v353_v35 = vstv %s1692_s4  ;;  %s1713_s30 = sld [smem:[#allocation10 + $0x2b]]  ;;  %s1720_s4 = sld [smem:[#allocation10 + $0x41]] }
  0x37   :  { %v79_v8 = vadd.f32 %v78_v6, %v77_v1  ;;  %vm272_vm12 = vmor %vm271_vm10, %vm270_vm9  ;;  %v374_v37 = vstv %s1694_s5  ;;  %v342_v38 = vstv %s1691_s6  ;;  %v363_v41 = vstv %s1693_s7  ;;  %s1717_s5 = sld [smem:[#allocation10 + $0x9]]  ;;  %s1732_s6 = sld [smem:[#allocation10 + $0x3b]] }
  0x38   :  { %v170_v10 = vsel %vm137_vm3, %v169_v7, %v158_v3  ;;  %v395_v43 = vstv %s1696_s8  ;;  %v384_v46 = vstv %s1695_s10  ;;  %v416_v47 = vstv %s1698_s11  ;;  %s1719_s7 = sld [smem:[#allocation10 + $0x10]]  ;;  %s1731_s10 = sld [smem:[#allocation10 + $0xa]] }
  0x39   :  { %v171_v11 = vsel %vm139_vm4, %v169_v7, %v170_v10  ;;  %v124_v12 = vcombine.low %v72_v5, %v79_v8  ;;  %v405_v50 = vstv %s1697_s13  ;;  %v437_v51 = vstv %s1700_s14  ;;  %s1722_s8 = sld [smem:[#allocation10 + $0x48]]  ;;  %s1746_s11 = sld [smem:[#allocation10 + $0x3c]] }
  0x3a   :  { %v172_v13 = vsel %vm141_vm5, %v169_v7, %v171_v11  ;;  %v426_v54 = vstv %s1699_s16  ;;  %v499_v56 = vstv %s1704_s17  ;;  %v489_v60 = vstv %s1703_s19  ;;  %s1721_s13 = sld [smem:[#allocation10 + $0x17]]  ;;  %s1734_s14 = sld [smem:[#allocation10 + $0x42]] }
  0x3b   :  { %v173_v14 = vsel %vm143_vm6, %v169_v7, %v172_v13  ;;  %v131_v16 = vrot.slane %v124_v12, %v1942_v25  ;;  %v519_v61 = vstv %s1706_s20  ;;  %v539_v0 = vstv %s1708_s22  ;;  %s1745_s16 = sld [smem:[#allocation10 + $0xb]]  ;;  %s1724_s17 = sld [smem:[#allocation10 + $0x4f]] }
  0x3c   :  { %175 = vst [vmem:[#allocation3] sm:$0xf] %v173_v14  ;;  %v509_v1 = vstv %s1705_s24  ;;  %v559_v5 = vstv %s1710_s1  ;;  %v529_v6 = vstv %s1707_s25  ;;  %v579_v9 = vstv %s1712_s26  ;;  %s1733_s19 = sld [smem:[#allocation10 + $0x11]]  ;;  %s1748_s20 = sld [smem:[#allocation10 + $0x43]] }
  0x3d   :  { %v136_v17 = vrot.slane %v131_v16, 7  ;;  %v549_v10 = vstv %s1709_s27  ;;  %v599_v13 = vstv %s1714_s28  ;;  %v569_v14 = vstv %s1711_s29  ;;  %s1723_s22 = sld [smem:[#allocation10 + $0x1e]]  ;;  %s1760_s24 = sld [smem:[#allocation10 + $0x3d]] }
  0x3e   :  { %s1747_s1 = sld [smem:[#allocation10 + $0x12]]  ;;  %s1736_s25 = sld [smem:[#allocation10 + $0x49]]  ;;  %vm326_vm13 = vcmask 916480   ;;  %vm348_vm14 = vcmask 785408   ;;  %vm369_vm15 = vcmask 654336   ;;  %vm390_vm0 = vcmask 523264  }
  0x3f   :  { %v138_v18 = vsel %vm137_vm3, %v136_v17, %v123_v15  ;;  %s1759_s26 = sld [smem:[#allocation10 + $0xc]]  ;;  %s1726_s27 = sld [smem:[#allocation10 + $0x56]]  ;;  %vm411_vm1 = vcmask 392192   ;;  %vm432_vm2 = vcmask 261120   ;;  %vm633_vm3 = vcmask 1039360  }
  0x40   :  { %v140_v19 = vsel %vm139_vm4, %v136_v17, %v138_v18  ;;  %s1735_s28 = sld [smem:[#allocation10 + $0x18]]  ;;  %s1750_s29 = sld [smem:[#allocation10 + $0x4a]]  ;;  %vm828_vm7 = vcmask 1031168   ;;  %vm1021_vm9 = vcmask 1022976  }
  0x41   :  { %v142_v20 = vsel %vm141_vm5, %v136_v17, %v140_v19  ;;  %v589_v19 = vstv %s1713_s30  ;;  %s1762_s30 = sld [smem:[#allocation10 + $0x44]] }
  0x42   :  { %v144_v21 = vsel %vm143_vm6, %v136_v17, %v142_v20 }
  0x43   :  { %v253_v22 = vld [vmem:[#allocation3] sm:$0xf]  ;;  %146 = vst [vmem:[#allocation2] sm:$0xf] %v144_v21 }
  0x44   :  { %275 = vrot.lane.b32.xlu0 %v253_v22, %s1886_s0  ;;  %v714_v22 = vstv %s1720_s4  ;;  %s1749_s4 = sld [smem:[#allocation10 + $0x19]] }
  0x4a   :  { %v251_v23 = vld [vmem:[#allocation2] sm:$0xf] }
  0x4b   :  { %v252_v24 = vmul.f32 0.25, %v251_v23 }
  0x4d   :  { %262 = vrot.lane.b32.xlu0 %v252_v24, %s1886_s0  ;;  %s1718_s0 = sld [smem:[#allocation10 + $0x3a]]  ;;  %v684_v24 = vstv %s1717_s5  ;;  %s1774_s5 = sld [smem:[#allocation10 + $0x3e]] }
  0x53   :  { %v694_v18 = vstv %s1718_s0  ;;  %s1725_s0 = sld [smem:[#allocation10 + $0x25]] }
  0xb6   :  { %v276_v26 = vpop.permute.xlu0 %275 }
  0xb7   :  { %v277_v27 = vrot.slane %v276_v26, 6 }
  0xb9   :  { %v278_v28 = vsel %vm265_vm11, %v277_v27, %v276_v26 }
  0xba   :  { %280 = vst.msk [vmem:[#allocation4 + $0x6] sm:$0x3f] %vm272_vm12, %v278_v28 }
  0xbf   :  { %v263_v29 = vpop.permute.xlu0 %262 }
  0xc0   :  { %v264_v31 = vrot.slane %v263_v29, 6 }
  0xc1   :  { %v331_v32 = vld [vmem:[#allocation4 + $0x6] sm:$0x3f] }
  0xc2   :  { %v266_v33 = vsel %vm265_vm11, %v264_v31, %v263_v29  ;;  %v333_v34 = vmul.f32 %v332_v30, %v331_v32  ;;  %v354_v36 = vmul.f32 %v353_v35, %v331_v32  ;;  %v375_v40 = vmul.f32 %v374_v37, %v331_v32  ;;  %v1968_v55 = vld [vmem:[#allocation4 + $0x6] sm:$0x3f] }
  0xc3   :  { %273 = vst.msk [vmem:[#allocation4] sm:$0x3f] %vm272_vm12, %v266_v33  ;;  %v396_v45 = vmul.f32 %v395_v43, %v331_v32  ;;  %v417_v49 = vmul.f32 %v416_v47, %v331_v32  ;;  %v438_v53 = vmul.f32 %v437_v51, %v331_v32  ;;  %v500_v58 = vmul.f32 %v499_v56, %v1968_v55  ;;  %v1996_v17 = vld [vmem:[#allocation4 + $0x6] sm:$0x3f] }
  0xc4   :  { %335 = vrot.lane.b32.xlu1 %v333_v34, %s1887_s9  ;;  %v520_v63 = vmul.f32 %v519_v61, %v1968_v55  ;;  %v540_v3 = vmul.f32 %v539_v0, %v1968_v55  ;;  %v560_v7 = vmul.f32 %v559_v5, %v1968_v55  ;;  %v580_v11 = vmul.f32 %v579_v9, %v1968_v55  ;;  %v2008_v28 = vld [vmem:[#allocation4 + $0x6] sm:$0x3f] }
  0xc5   :  { %v600_v15 = vmul.f32 %v599_v13, %v1968_v55  ;;  %v695_v20 = vmul.f32 %v694_v18, %v1996_v17  ;;  %v715_v26 = vmul.f32 %v714_v22, %v1996_v17  ;;  %v889_v29 = vstv %s1732_s6  ;;  %s1761_s6 = sld [smem:[#allocation10 + $0x13]] }
  0xc6   :  { %v704_v30 = vstv %s1719_s7  ;;  %v890_v31 = vmul.f32 %v889_v29, %v2008_v28  ;;  %v734_v33 = vstv %s1722_s8  ;;  %v879_v35 = vstv %s1731_s10  ;;  %s1738_s7 = sld [smem:[#allocation10 + $0x50]]  ;;  %s1773_s8 = sld [smem:[#allocation10 + $0xd]] }
  0xc7   :  { %v1088_v61 = vstv %s1747_s1  ;;  %v929_v0 = vstv %s1736_s25  ;;  %s1728_s10 = sld [smem:[#allocation10 + $0x5d]]  ;;  %s1754_s1 = sld [smem:[#allocation10 + $0x58]]  ;;  %vm1212_vm11 = vcmask 1014784  }
  0xc8   :  { %356 = vrot.lane.b32.xlu1 %v354_v36, %s1888_s12  ;;  %v735_v36 = vmul.f32 %v734_v33, %v1996_v17  ;;  %s1739_s25 = sld [smem:[#allocation10 + $0x26]] }
  0xca   :  { %v1956_v39 = vld [vmem:[#allocation4] sm:$0x3f] }
  0xcb   :  { %v343_v42 = vmul.f32 %v342_v38, %v1956_v39  ;;  %v364_v44 = vmul.f32 %v363_v41, %v1956_v39  ;;  %v385_v48 = vmul.f32 %v384_v46, %v1956_v39  ;;  %v406_v52 = vmul.f32 %v405_v50, %v1956_v39  ;;  %v1974_v59 = vld [vmem:[#allocation4] sm:$0x3f]  ;;  %v2020_v38 = vld [vmem:[#allocation4 + $0x6] sm:$0x3f] }
  0xcc   :  { %377 = vrot.lane.b32.xlu1 %v375_v40, %s1889_s15  ;;  %v427_v57 = vmul.f32 %v426_v54, %v1956_v39  ;;  %v490_v62 = vmul.f32 %v489_v60, %v1974_v59  ;;  %v510_v4 = vmul.f32 %v509_v1, %v1974_v59  ;;  %v530_v8 = vmul.f32 %v529_v6, %v1974_v59  ;;  %v2003_v23 = vld [vmem:[#allocation4] sm:$0x3f] }
  0xcd   :  { %345 = vrot.lane.b32.xlu0 %v343_v42, %s1888_s12  ;;  %v550_v12 = vmul.f32 %v549_v10, %v1974_v59  ;;  %v570_v16 = vmul.f32 %v569_v14, %v1974_v59  ;;  %v590_v21 = vmul.f32 %v589_v19, %v1974_v59  ;;  %v685_v27 = vmul.f32 %v684_v24, %v2003_v23  ;;  %v2015_v34 = vld [vmem:[#allocation4] sm:$0x3f]  ;;  %v2064_v19 = vld [vmem:[#allocation4 + $0x6] sm:$0x3f] }
  0xce   :  { %v705_v32 = vmul.f32 %v704_v30, %v2003_v23  ;;  %v880_v37 = vmul.f32 %v879_v35, %v2015_v34  ;;  %v1078_v40 = vstv %s1746_s11  ;;  %v724_v41 = vstv %s1721_s13  ;;  %v2047_v1 = vld [vmem:[#allocation4] sm:$0x3f]  ;;  %s1737_s11 = sld [smem:[#allocation10 + $0x1f]]  ;;  %s1752_s13 = sld [smem:[#allocation10 + $0x51]] }
  0xcf   :  { %v1079_v42 = vmul.f32 %v1078_v40, %v2020_v38  ;;  %v725_v43 = vmul.f32 %v724_v41, %v2003_v23  ;;  %v1068_v46 = vstv %s1745_s16  ;;  %v899_v50 = vstv %s1733_s19  ;;  %s1764_s16 = sld [smem:[#allocation10 + $0x4b]]  ;;  %s1776_s19 = sld [smem:[#allocation10 + $0x45]] }
  0xd0   :  { %398 = vrot.lane.b32.xlu1 %v396_v45, %s1890_s18  ;;  %v2027_v45 = vld [vmem:[#allocation4] sm:$0x3f]  ;;  %v744_v54 = vstv %s1723_s22  ;;  %v1273_v60 = vstv %s1760_s24  ;;  %v774_v6 = vstv %s1726_s27  ;;  %s1740_s22 = sld [smem:[#allocation10 + $0x57]]  ;;  %s1775_s24 = sld [smem:[#allocation10 + $0x14]] }
  0xd1   :  { %366 = vrot.lane.b32.xlu0 %v364_v44, %s1889_s15  ;;  %v909_v44 = vstv %s1734_s14  ;;  %v1118_v10 = vstv %s1750_s29  ;;  %v1293_v14 = vstv %s1762_s30  ;;  %s1727_s14 = sld [smem:[#allocation10 + $0x2c]]  ;;  %s1753_s27 = sld [smem:[#allocation10 + $0x27]] }
  0xd2   :  { %v910_v47 = vmul.f32 %v909_v44, %v2008_v28  ;;  %v1458_v29 = vstv %s1773_s8  ;;  %s1765_s29 = sld [smem:[#allocation10 + $0x21]]  ;;  %s1777_s30 = sld [smem:[#allocation10 + $0x1b]] }
  0xd3   :  { %s2139_s8 = sld [smem:[#allocation10 + $0x28]] }
  0xd4   :  { %419 = vrot.lane.b32.xlu1 %v417_v49, %s1891_s21  ;;  %v754_v49 = vstv %s1724_s17  ;;  %v939_v33 = vstv %s1737_s11  ;;  %s1751_s17 = sld [smem:[#allocation10 + $0x20]]  ;;  %s2144_s11 = sld [smem:[#allocation10 + $0x1]] }
  0xd5   :  { %387 = vrot.lane.b32.xlu0 %v385_v48, %s1890_s18  ;;  %v1069_v48 = vmul.f32 %v1068_v46, %v2027_v45  ;;  %v755_v51 = vmul.f32 %v754_v49, %v1996_v17  ;;  %v1488_v49 = vstv %s1776_s19  ;;  %s2167_s19 = sld [smem:[#allocation10 + $0x7]] }
  0xd7   :  { %v784_v40 = vstv %s1727_s14  ;;  %s2151_s14 = sld [smem:[#allocation10 + $0x60]] }
  0xd8   :  { %440 = vrot.lane.b32.xlu1 %v438_v53, %s1892_s23  ;;  %v1098_v53 = vstv %s1748_s20  ;;  %s1763_s20 = sld [smem:[#allocation10 + $0x1a]] }
  0xd9   :  { %408 = vrot.lane.b32.xlu0 %v406_v52, %s1891_s21  ;;  %v900_v52 = vmul.f32 %v899_v50, %v2015_v34  ;;  %v1099_v56 = vmul.f32 %v1098_v53, %v2020_v38 }
  0xda   :  { %v1128_v44 = vstv %s1751_s17  ;;  %s2159_s17 = sld [smem:[#allocation10 + $0x29]] }
  0xdc   :  { %502 = vrot.lane.b32.xlu1 %v500_v58, %s1887_s9  ;;  %v2040_v58 = vld [vmem:[#allocation4 + $0x6] sm:$0x3f] }
  0xdd   :  { %429 = vrot.lane.b32.xlu0 %v427_v57, %s1892_s23  ;;  %v745_v57 = vmul.f32 %v744_v54, %v2003_v23  ;;  %v969_v54 = vstv %s1740_s22  ;;  %s2191_s22 = sld [smem:[#allocation10 + $0x30]] }
  0xde   :  { %v1303_v50 = vstv %s1763_s20  ;;  %s2187_s20 = sld [smem:[#allocation10 + $0x61]] }
  0xdf   :  { %v1304_v53 = vmul.f32 %v1303_v50, %v2047_v1 }
  0xe0   :  { %522 = vrot.lane.b32.xlu1 %v520_v63, %s1888_s12  ;;  %v1089_v63 = vmul.f32 %v1088_v61, %v2027_v45 }
  0xe1   :  { %492 = vrot.lane.b32.xlu0 %v490_v62, %s1887_s9  ;;  %v1274_v62 = vmul.f32 %v1273_v60, %v2040_v58  ;;  %v970_v60 = vmul.f32 %v969_v54, %v2008_v28 }
  0xe4   :  { %542 = vrot.lane.b32.xlu1 %v540_v3, %s1889_s15  ;;  %v1263_v3 = vstv %s1759_s26  ;;  %s1766_s26 = sld [smem:[#allocation10 + $0x52]] }
  0xe5   :  { %512 = vrot.lane.b32.xlu0 %v510_v4, %s1888_s12  ;;  %v930_v4 = vmul.f32 %v929_v0, %v2008_v28  ;;  %v1264_v5 = vmul.f32 %v1263_v3, %v2047_v1  ;;  %v959_v0 = vstv %s1739_s25  ;;  %s1757_s25 = sld [smem:[#allocation10 + $0x5]] }
  0xe8   :  { %562 = vrot.lane.b32.xlu1 %v560_v7, %s1890_s18  ;;  %v919_v7 = vstv %s1735_s28  ;;  %s1778_s28 = sld [smem:[#allocation10 + $0x4c]] }
  0xe9   :  { %532 = vrot.lane.b32.xlu0 %v530_v8, %s1889_s15  ;;  %v775_v8 = vmul.f32 %v774_v6, %v1996_v17  ;;  %v920_v9 = vmul.f32 %v919_v7, %v2015_v34  ;;  %v960_v6 = vmul.f32 %v959_v0, %v2015_v34 }
  0xea   :  { %v1333_v7 = vstv %s1766_s26  ;;  %s1716_s26 = sld [smem:[#allocation10 + $0x33]] }
  0xec   :  { %582 = vrot.lane.b32.xlu1 %v580_v11, %s1891_s21  ;;  %v764_v11 = vstv %s1725_s0  ;;  %s1742_s0 = sld [smem:[#allocation10 + $0x5e]] }
  0xed   :  { %552 = vrot.lane.b32.xlu0 %v550_v12, %s1890_s18  ;;  %v1119_v12 = vmul.f32 %v1118_v10, %v2020_v38  ;;  %v765_v13 = vmul.f32 %v764_v11, %v2003_v23  ;;  %v1334_v10 = vmul.f32 %v1333_v7, %v2040_v58 }
  0xf0   :  { %602 = vrot.lane.b32.xlu1 %v600_v15, %s1892_s23  ;;  %v1108_v15 = vstv %s1749_s4  ;;  %s1741_s4 = sld [smem:[#allocation10 + $0x2d]] }
  0xf1   :  { %572 = vrot.lane.b32.xlu0 %v570_v16, %s1891_s21  ;;  %v1294_v16 = vmul.f32 %v1293_v14, %v2040_v58  ;;  %v1109_v18 = vmul.f32 %v1108_v15, %v2027_v45  ;;  %v1323_v14 = vstv %s1765_s29  ;;  %s2371_s29 = sld [smem:[#allocation10 + $0x37]] }
  0xf4   :  { %697 = vrot.lane.b32.xlu1 %v695_v20, %s1887_s9  ;;  %v1468_v20 = vstv %s1774_s5  ;;  %s2128_s5 = sld [smem:[#allocation10 + $0x59]] }
  0xf5   :  { %592 = vrot.lane.b32.xlu0 %v590_v21, %s1892_s23  ;;  %v1283_v21 = vstv %s1761_s6  ;;  %v1469_v22 = vmul.f32 %v1468_v20, %v2064_v19  ;;  %v1324_v20 = vmul.f32 %v1323_v14, %v2047_v1  ;;  %s1755_s6 = sld [smem:[#allocation10 + $0x2e]]  ;;  %v1538_v14 = vstv %s2159_s17 }
  0xf6   :  { %v1284_v24 = vmul.f32 %v1283_v21, %v2047_v1  ;;  %v989_v21 = vstv %s1742_s0  ;;  %s2380_s0 = sld [smem:[#allocation10 + $0x6]] }
  0xf8   :  { %717 = vrot.lane.b32.xlu1 %v715_v26, %s1888_s12  ;;  %v949_v26 = vstv %s1738_s7  ;;  %s2136_s7 = sld [smem:[#allocation10 + $0x53]] }
  0xf9   :  { %687 = vrot.lane.b32.xlu0 %v685_v27, %s1887_s9  ;;  %v2071_v27 = vld [vmem:[#allocation4] sm:$0x3f]  ;;  %v950_v30 = vmul.f32 %v949_v26, %v2008_v28  ;;  %v990_v26 = vmul.f32 %v989_v21, %v2008_v28 }
  0xfc   :  { %892 = vrot.lane.b32.xlu1 %v890_v31, %s1887_s9  ;;  %v1459_v31 = vmul.f32 %v1458_v29, %v2071_v27 }
  0xfd   :  { %707 = vrot.lane.b32.xlu0 %v705_v32, %s1888_s12  ;;  %v794_v32 = vstv %s1728_s10  ;;  %s2142_s10 = sld [smem:[#allocation10 + $0x32]] }
  0xfe   :  { %v795_v35 = vmul.f32 %v794_v32, %v1996_v17  ;;  %v979_v32 = vstv %s1741_s4  ;;  %s1897_s4 = smov 123  }
 0x100   :  { %737 = vrot.lane.b32.xlu1 %v735_v36, %s1889_s15  ;;  %v940_v36 = vmul.f32 %v939_v33, %v2015_v34 }
 0x101   :  { %882 = vrot.lane.b32.xlu0 %v880_v37, %s1887_s9  ;;  %v1138_v37 = vstv %s1752_s13  ;;  %s2149_s13 = sld [smem:[#allocation10 + $0x22]] }
 0x102   :  { %v1139_v41 = vmul.f32 %v1138_v37, %v2020_v38  ;;  %v980_v37 = vmul.f32 %v979_v32, %v2015_v34 }
 0x104   :  { %1081 = vrot.lane.b32.xlu1 %v1079_v42, %s1887_s9  ;;  %v785_v42 = vmul.f32 %v784_v40, %v2003_v23  ;;  %v1353_v40 = vstv %s2128_s5  ;;  %s1898_s5 = smov 122  }
 0x105   :  { %727 = vrot.lane.b32.xlu0 %v725_v43, %s1889_s15  ;;  %v1313_v43 = vstv %s1764_s16  ;;  %s2156_s16 = sld [smem:[#allocation10 + $0x5a]] }
 0x108   :  { %912 = vrot.lane.b32.xlu1 %v910_v47, %s1888_s12  ;;  %v1314_v47 = vmul.f32 %v1313_v43, %v2040_v58  ;;  %v1354_v43 = vmul.f32 %v1353_v40, %v2040_v58 }
 0x109   :  { %1071 = vrot.lane.b32.xlu0 %v1069_v48, %s1887_s9  ;;  %v1129_v48 = vmul.f32 %v1128_v44, %v2027_v45 }
 0x10c   :  { %757 = vrot.lane.b32.xlu1 %v755_v51, %s1890_s18 }
 0x10d   :  { %902 = vrot.lane.b32.xlu0 %v900_v52, %s1888_s12  ;;  %v1489_v52 = vmul.f32 %v1488_v49, %v2064_v19  ;;  %v1343_v49 = vstv %s2139_s8 }
 0x10e   :  { %v1344_v0 = vmul.f32 %v1343_v49, %v2047_v1 }
 0x110   :  { %1101 = vrot.lane.b32.xlu1 %v1099_v56, %s1888_s12  ;;  %v1478_v56 = vstv %s1775_s24  ;;  %s1729_s24 = sld [smem:[#allocation10 + $0x3]] }
 0x111   :  { %747 = vrot.lane.b32.xlu0 %v745_v57, %s1890_s18 }
 0x114   :  { %1276 = vrot.lane.b32.xlu1 %v1274_v62, %s1887_s9  ;;  %v1479_v62 = vmul.f32 %v1478_v56, %v2071_v27 }
 0x115   :  { %1091 = vrot.lane.b32.xlu0 %v1089_v63, %s1888_s12  ;;  %v1158_v63 = vstv %s1754_s1  ;;  %s1758_s1 = sld [smem:[#allocation10 + $0x36]] }
 0x118   :  { %932 = vrot.lane.b32.xlu1 %v930_v4, %s1889_s15  ;;  %v1159_v4 = vmul.f32 %v1158_v63, %v2020_v38 }
 0x119   :  { %1266 = vrot.lane.b32.xlu0 %v1264_v5, %s1887_s9 }
 0x11c   :  { %777 = vrot.lane.b32.xlu1 %v775_v8, %s1891_s21  ;;  %v1148_v8 = vstv %s1753_s27  ;;  %s1715_s27 = sld [smem:[#allocation10 + $0x2]] }
 0x11d   :  { %922 = vrot.lane.b32.xlu0 %v920_v9, %s1889_s15 }
 0x120   :  { %1121 = vrot.lane.b32.xlu1 %v1119_v12, %s1889_s15  ;;  %v1149_v12 = vmul.f32 %v1148_v8, %v2027_v45 }
 0x121   :  { %767 = vrot.lane.b32.xlu0 %v765_v13, %s1891_s21  ;;  %v1508_v13 = vstv %s1778_s28  ;;  %s1894_s28 = smov 126  }
 0x124   :  { %1296 = vrot.lane.b32.xlu1 %v1294_v16, %s1888_s12  ;;  %v1509_v16 = vmul.f32 %v1508_v13, %v2064_v19 }
 0x125   :  { %1111 = vrot.lane.b32.xlu0 %v1109_v18, %s1889_s15 }
 0x128   :  { %1471 = vrot.lane.b32.xlu1 %v1469_v22, %s1887_s9  ;;  %v1498_v22 = vstv %s1777_s30  ;;  %s1895_s30 = smov 125  }
 0x129   :  { %1286 = vrot.lane.b32.xlu0 %v1284_v24, %s1888_s12 }
 0x12c   :  { %952 = vrot.lane.b32.xlu1 %v950_v30, %s1890_s18  ;;  %v1499_v30 = vmul.f32 %v1498_v22, %v2071_v27 }
 0x12d   :  { %1461 = vrot.lane.b32.xlu0 %v1459_v31, %s1887_s9 }
 0x130   :  { %797 = vrot.lane.b32.xlu1 %v795_v35, %s1892_s23 }
 0x131   :  { %942 = vrot.lane.b32.xlu0 %v940_v36, %s1890_s18 }
 0x134   :  { %1141 = vrot.lane.b32.xlu1 %v1139_v41, %s1890_s18  ;;  %v1168_v41 = vstv %s1755_s6  ;;  %s308_s6 = sld [smem:[#allocation10]] }
 0x135   :  { %787 = vrot.lane.b32.xlu0 %v785_v42, %s1892_s23 }
 0x136   :  { %v2086_v46 = vpop.permute.xlu1 %335 }
 0x138   :  { %1316 = vrot.lane.b32.xlu1 %v1314_v47, %s1889_s15  ;;  %v1169_v47 = vmul.f32 %v1168_v41, %v2027_v45  ;;  %v320_v41 = vstv %s2167_s19 }
 0x139   :  { %1131 = vrot.lane.b32.xlu0 %v1129_v48, %s1890_s18  ;;  %v1528_v48 = vstv %s2136_s7  ;;  %s1688_s7 = sld [smem:[#allocation10 + $0x31]] }
 0x13a   :  { %v2092_v51 = vpop.permute.xlu1 %356 }
 0x13c   :  { %1491 = vrot.lane.b32.xlu1 %v1489_v52, %s1888_s12  ;;  %v485_v52 = vstv %s2142_s10 }
 0x13d   :  { %1306 = vrot.lane.b32.xlu0 %v1304_v53, %s1889_s15  ;;  %v480_v53 = vstv %s2144_s11 }
 0x13e   :  { %v2098_v57 = vpop.permute.xlu1 %377 }
 0x13f   :  { %v2101_v61 = vpop.permute.xlu0 %345 }
 0x140   :  { %972 = vrot.lane.b32.xlu1 %v970_v60, %s1891_s21  ;;  %v1529_v60 = vmul.f32 %v1528_v48, %v2064_v19 }
 0x141   :  { %1481 = vrot.lane.b32.xlu0 %v1479_v62, %s1888_s12  ;;  %s1756_s12 = sld [smem:[#allocation10 + $0x5f]] }
 0x142   :  { %v2106_v3 = vpop.permute.xlu1 %398 }
 0x143   :  { %v2109_v5 = vpop.permute.xlu0 %366 }
 0x144   :  { %1161 = vrot.lane.b32.xlu1 %v1159_v4, %s1891_s21  ;;  %v1518_v4 = vstv %s2149_s13 }
 0x145   :  { %962 = vrot.lane.b32.xlu0 %v960_v6, %s1891_s21  ;;  %v1373_v6 = vstv %s2151_s14 }
 0x146   :  { %v2114_v9 = vpop.permute.xlu1 %419 }
 0x147   :  { %v2117_v11 = vpop.permute.xlu0 %387  ;;  %v1178_v31 = vstv %s1756_s12  ;;  %s1896_s12 = smov 124  }
 0x148   :  { %2790 = vst [vmem:[#allocation15_spill] sm:$0xff] %v2117_v11  ;;  %1336 = vrot.lane.b32.xlu1 %v1334_v10, %s1890_s18  ;;  %v1179_v35 = vmul.f32 %v1178_v31, %v2020_v38  ;;  %v1548_v10 = vstv %s2156_s16 }
 0x149   :  { %1151 = vrot.lane.b32.xlu0 %v1149_v12, %s1891_s21  ;;  %v1549_v49 = vmul.f32 %v1548_v10, %v2064_v19 }
 0x14a   :  { %v2122_v15 = vpop.permute.xlu1 %440 }
 0x14b   :  { %v2125_v18 = vpop.permute.xlu0 %408 }
 0x14c   :  { %2791 = vst [vmem:[#allocation16_spill] sm:$0xff] %v2125_v18  ;;  %1511 = vrot.lane.b32.xlu1 %v1509_v16, %s1889_s15  ;;  %v486_v16 = vmul.f32 %v485_v52, %v1968_v55 }
 0x14d   :  { %1326 = vrot.lane.b32.xlu0 %v1324_v20, %s1890_s18 }
 0x14e   :  { %v503_v24 = vpop.permute.xlu1 %502 }
 0x14f   :  { %v2133_v29 = vpop.permute.xlu0 %429  ;;  %v504_v50 = vrot.slane %v503_v24, 2 }
 0x150   :  { %2792 = vst [vmem:[#allocation17_spill] sm:$0xff] %v2133_v29  ;;  %992 = vrot.lane.b32.xlu1 %v990_v26, %s1892_s23  ;;  %v1374_v26 = vmul.f32 %v1373_v6, %v2040_v58 }
 0x151   :  { %1501 = vrot.lane.b32.xlu0 %v1499_v30, %s1889_s15  ;;  %s2154_s15 = sld [smem:[#allocation10 + $0x2f]]  ;;  %v505_v12 = vsel %vm326_vm13, %v503_v24, %v504_v50  ;;  %v481_v30 = vmul.f32 %v480_v53, %v1974_v59  ;;  %v1519_v24 = vmul.f32 %v1518_v4, %v2071_v27 }
 0x152   :  { %v523_v33 = vpop.permute.xlu1 %522 }
 0x153   :  { %v493_v36 = vpop.permute.xlu0 %492  ;;  %v524_v62 = vrot.slane %v523_v33, 2 }
 0x154   :  { %1181 = vrot.lane.b32.xlu1 %v1179_v35, %s1892_s23  ;;  %v494_v54 = vrot.slane %v493_v36, 2 }
 0x155   :  { %982 = vrot.lane.b32.xlu0 %v980_v37, %s1892_s23  ;;  %v525_v31 = vsel %vm348_vm14, %v523_v33, %v524_v62  ;;  %v507_v37 = vadd.f32 %v505_v12, %v486_v16  ;;  %v1568_v16 = vstv %s2187_s20 }
 0x156   :  { %v543_v42 = vpop.permute.xlu1 %542  ;;  %v495_v20 = vsel %vm326_vm13, %v493_v36, %v494_v54 }
 0x157   :  { %v513_v44 = vpop.permute.xlu0 %512  ;;  %v1363_v8 = vstv %s2154_s15  ;;  %v544_v13 = vrot.slane %v543_v42, 2  ;;  %v497_v40 = vadd.f32 %v495_v20, %v481_v30 }
 0x158   :  { %1356 = vrot.lane.b32.xlu1 %v1354_v43, %s1891_s21  ;;  %v514_v7 = vrot.slane %v513_v44, 2  ;;  %v527_v43 = vadd.f32 %v525_v31, %v507_v37  ;;  %v1364_v53 = vmul.f32 %v1363_v8, %v2047_v1 }
 0x159   :  { %1171 = vrot.lane.b32.xlu0 %v1169_v47, %s1892_s23  ;;  %v545_v59 = vsel %vm369_vm15, %v543_v42, %v544_v13  ;;  %v1539_v13 = vmul.f32 %v1538_v14, %v2071_v27 }
 0x15a   :  { %v563_v56 = vpop.permute.xlu1 %562  ;;  %v515_v55 = vsel %vm348_vm14, %v513_v44, %v514_v7  ;;  %v547_v42 = vadd.f32 %v545_v59, %v527_v43  ;;  %v321_v7 = vmul.f32 %v320_v41, %v1956_v39 }
 0x15b   :  { %v533_v63 = vpop.permute.xlu0 %532  ;;  %v564_v32 = vrot.slane %v563_v56, 2  ;;  %v517_v44 = vadd.f32 %v515_v55, %v497_v40 }
 0x15c   :  { %1531 = vrot.lane.b32.xlu1 %v1529_v60, %s1890_s18  ;;  %v534_v21 = vrot.slane %v533_v63, 2 }
 0x15d   :  { %1346 = vrot.lane.b32.xlu0 %v1344_v0, %s1891_s21  ;;  %v565_v50 = vsel %vm390_vm0, %v563_v56, %v564_v32  ;;  %v1569_v32 = vmul.f32 %v1568_v16, %v2064_v19 }
 0x15e   :  { %v583_v22 = vpop.permute.xlu1 %582  ;;  %v535_v47 = vsel %vm369_vm15, %v533_v63, %v534_v21  ;;  %v567_v56 = vadd.f32 %v565_v50, %v547_v42 }
 0x15f   :  { %v553_v35 = vpop.permute.xlu0 %552  ;;  %v584_v33 = vrot.slane %v583_v22, 2  ;;  %v537_v0 = vadd.f32 %v535_v47, %v517_v44 }
 0x160   :  { %v554_v36 = vrot.slane %v553_v35, 2  ;;  %1376 = vrot.lane.b32.xlu1 %v1374_v26, %s1892_s23 }
 0x161   :  { %1521 = vrot.lane.b32.xlu0 %v1519_v24, %s1890_s18  ;;  %v585_v63 = vsel %vm411_vm1, %v583_v22, %v584_v33  ;;  %s2204_s18 = sld [smem:[#allocation10 + $0x34]]  ;;  %v1558_v22 = vstv %s2191_s22 }
 0x162   :  { %v603_v48 = vpop.permute.xlu1 %602  ;;  %v555_v60 = vsel %vm390_vm0, %v553_v35, %v554_v36  ;;  %v587_v20 = vadd.f32 %v585_v63, %v567_v56  ;;  %v1559_v24 = vmul.f32 %v1558_v22, %v2071_v27 }
 0x163   :  { %v573_v52 = vpop.permute.xlu0 %572  ;;  %v604_v54 = vrot.slane %v603_v48, 2  ;;  %v557_v8 = vadd.f32 %v555_v60, %v537_v0 }
 0x164   :  { %v574_v62 = vrot.slane %v573_v52, 2  ;;  %1551 = vrot.lane.b32.xlu1 %v1549_v49, %s1891_s21 }
 0x165   :  { %1366 = vrot.lane.b32.xlu0 %v1364_v53, %s1892_s23  ;;  %v605_v10 = vsel %vm432_vm2, %v603_v48, %v604_v54  ;;  %v870_v48 = vstv %s1729_s24 }
 0x166   :  { %v575_v4 = vsel %vm411_vm1, %v573_v52, %v574_v62  ;;  %v2207_v6 = vpop.permute.xlu1 %697  ;;  %v2216_v30 = vadd.f32 %v605_v10, %v587_v20  ;;  %v871_v53 = vmul.f32 %v870_v48, %v2015_v34 }
 0x167   :  { %v593_v12 = vpop.permute.xlu0 %592  ;;  %v577_v26 = vadd.f32 %v575_v4, %v557_v8  ;;  %v875_v37 = vstv %s2204_s18 }
 0x168   :  { %v594_v21 = vrot.slane %v593_v12, 2  ;;  %323 = vrot.lane.b32.xlu1 %v321_v7, %s1887_s9  ;;  %s1744_s9 = sld [smem:[#allocation10 + $0x35]]  ;;  %v650_v36 = vrot.slane %v2216_v30, %v1942_v25  ;;  %v876_v41 = vmul.f32 %v875_v37, %v2008_v28 }
 0x169   :  { %1541 = vrot.lane.b32.xlu0 %v1539_v13, %s1891_s21  ;;  %s1893_s21 = smov 127  }
 0x16a   :  { %v595_v39 = vsel %vm432_vm2, %v593_v12, %v594_v21  ;;  %v2219_v31 = vpop.permute.xlu1 %717  ;;  %v658_v50 = vcombine.high %v650_v36, %v650_v36 }
 0x16b   :  { %v2222_v14 = vadd.f32 %v595_v39, %v577_v26  ;;  %v2224_v35 = vpop.permute.xlu0 %687 }
 0x16c   :  { %1571 = vrot.lane.b32.xlu1 %v1569_v32, %s1892_s23 }
 0x16d   :  { %1561 = vrot.lane.b32.xlu0 %v1559_v24, %s1892_s23  ;;  %v2236_v59 = vrot.slane %v2222_v14, %v1942_v25  ;;  %s1743_s23 = sld [smem:[#allocation10 + $0x4]] }
 0x16e   :  { %v893_v55 = vpop.permute.xlu1 %892  ;;  %v1064_v28 = vstv %s1744_s9 }
 0x16f   :  { %v2232_v40 = vpop.permute.xlu0 %707  ;;  %v894_v33 = vrot.slane %v893_v55, 2  ;;  %v1065_v63 = vmul.f32 %v1064_v28, %v2020_v38 }
 0x170   :  { %659 = vrot.lane.b32.xlu1 %v650_v36, %s1893_s21 }
 0x171   :  { %627 = vrot.lane.b32.xlu0 %v2236_v59, %s1893_s21  ;;  %v895_v43 = vsel %vm326_vm13, %v893_v55, %v894_v33 }
 0x172   :  { %v897_v47 = vadd.f32 %v895_v43, %v876_v41  ;;  %v2243_v49 = vpop.permute.xlu1 %737 }
 0x173   :  { %v883_v44 = vpop.permute.xlu0 %882  ;;  %v1059_v7 = vstv %s1743_s23 }
 0x174   :  { %v884_v52 = vrot.slane %v883_v44, 2  ;;  %v1060_v13 = vmul.f32 %v1059_v7, %v2027_v45  ;;  %v1259_v45 = vstv %s1758_s1 }
 0x175   :  { %661 = vrot.lane.b32.xlu0 %v658_v50, %s1893_s21 }
 0x176   :  { %v885_v54 = vsel %vm326_vm13, %v883_v44, %v884_v52  ;;  %v1082_v42 = vpop.permute.xlu1 %1081  ;;  %v1254_v52 = vstv %s1757_s25 }
 0x177   :  { %v887_v60 = vadd.f32 %v885_v54, %v871_v53  ;;  %v2248_v62 = vpop.permute.xlu0 %727  ;;  %v1083_v0 = vrot.slane %v1082_v42, 2 }
 0x179   :  { %v1084_v56 = vsel %vm326_vm13, %v1082_v42, %v1083_v0 }
 0x17a   :  { %v2252_v4 = vadd.f32 %v1084_v56, %v1065_v63  ;;  %v913_v8 = vpop.permute.xlu1 %912 }
 0x17b   :  { %v1072_v10 = vpop.permute.xlu0 %1071  ;;  %v914_v34 = vrot.slane %v913_v8, 2 }
 0x17c   :  { %v1073_v12 = vrot.slane %v1072_v10, 2 }
 0x17d   :  { %v915_v16 = vsel %vm348_vm14, %v913_v8, %v914_v34 }
 0x17e   :  { %v1074_v20 = vsel %vm326_vm13, %v1072_v10, %v1073_v12  ;;  %v2257_v21 = vadd.f32 %v915_v16, %v897_v47  ;;  %v758_v22 = vpop.permute.xlu1 %757  ;;  %v1260_v47 = vmul.f32 %v1259_v45, %v2040_v58  ;;  %v699_v10 = vrot.slane %v2207_v6, 2 }
 0x17f   :  { %v1076_v38 = vadd.f32 %v1074_v20, %v1060_v13  ;;  %v903_v26 = vpop.permute.xlu0 %902  ;;  %v680_v12 = vstv %s1716_s26  ;;  %v719_v13 = vrot.slane %v2219_v31, 2  ;;  %v739_v20 = vrot.slane %v2243_v49, 2 }
 0x180   :  { %v904_v39 = vrot.slane %v903_v26, 2  ;;  %v700_v16 = vsel %vm326_vm13, %v2207_v6, %v699_v10  ;;  %v759_v45 = vrot.slane %v758_v22, 2 }
 0x181   :  { %v740_v6 = vsel %vm369_vm15, %v2243_v49, %v739_v20 }
 0x182   :  { %v905_v32 = vsel %vm348_vm14, %v903_v26, %v904_v39  ;;  %v2260_v24 = vpop.permute.xlu1 %1101  ;;  %v689_v26 = vrot.slane %v2224_v35, 2 }
 0x183   :  { %v2262_v37 = vadd.f32 %v905_v32, %v887_v60  ;;  %v748_v55 = vpop.permute.xlu0 %747  ;;  %v1255_v60 = vmul.f32 %v1254_v52, %v2047_v1  ;;  %v720_v32 = vsel %vm348_vm14, %v2219_v31, %v719_v13 }
 0x184   :  { %v749_v10 = vrot.slane %v748_v55, 2 }
 0x186   :  { %v1277_v36 = vpop.permute.xlu1 %1276 }
 0x187   :  { %v1092_v33 = vpop.permute.xlu0 %1091  ;;  %v1278_v41 = vrot.slane %v1277_v36, 2 }
 0x188   :  { %v1093_v43 = vrot.slane %v1092_v33, 2 }
 0x189   :  { %v1279_v48 = vsel %vm326_vm13, %v1277_v36, %v1278_v41  ;;  %v675_v41 = vstv %s1715_s27 }
 0x18a   :  { %v1094_v44 = vsel %vm348_vm14, %v1092_v33, %v1093_v43  ;;  %v2267_v50 = vadd.f32 %v1279_v48, %v1260_v47  ;;  %v2269_v53 = vpop.permute.xlu1 %932  ;;  %v709_v43 = vrot.slane %v2232_v40, 2  ;;  %v676_v31 = vmul.f32 %v675_v41, %v2003_v23 }
 0x18b   :  { %v2271_v28 = vadd.f32 %v1094_v44, %v1076_v38  ;;  %v1267_v54 = vpop.permute.xlu0 %1266  ;;  %v681_v38 = vmul.f32 %v680_v12, %v1996_v17  ;;  %v690_v17 = vsel %vm326_vm13, %v2224_v35, %v689_v26  ;;  %v729_v44 = vrot.slane %v2248_v62, 2 }
 0x18c   :  { %v1268_v42 = vrot.slane %v1267_v54, 2  ;;  %v692_v49 = vadd.f32 %v690_v17, %v676_v31 }
 0x18d   :  { %v702_v33 = vadd.f32 %v700_v16, %v681_v38  ;;  %v730_v35 = vsel %vm369_vm15, %v2248_v62, %v729_v44 }
 0x18e   :  { %v1269_v0 = vsel %vm326_vm13, %v1267_v54, %v1268_v42  ;;  %v778_v63 = vpop.permute.xlu1 %777  ;;  %v760_v54 = vsel %vm390_vm0, %v758_v22, %v759_v45  ;;  %v750_v22 = vsel %vm390_vm0, %v748_v55, %v749_v10 }
 0x18f   :  { %v2275_v58 = vadd.f32 %v1269_v0, %v1255_v60  ;;  %v2277_v56 = vpop.permute.xlu0 %922  ;;  %v779_v47 = vrot.slane %v778_v63, 2  ;;  %v722_v48 = vadd.f32 %v720_v32, %v702_v33  ;;  %v710_v60 = vsel %vm348_vm14, %v2232_v40, %v709_v43 }
 0x190   :  { %v712_v38 = vadd.f32 %v710_v60, %v692_v49 }
 0x191   :  { %v742_v0 = vadd.f32 %v740_v6, %v722_v48  ;;  %v780_v12 = vsel %vm411_vm1, %v778_v63, %v779_v47 }
 0x192   :  { %v2279_v7 = vpop.permute.xlu1 %1121  ;;  %v732_v45 = vadd.f32 %v730_v35, %v712_v38 }
 0x193   :  { %v768_v8 = vpop.permute.xlu0 %767  ;;  %v762_v13 = vadd.f32 %v760_v54, %v742_v0 }
 0x194   :  { %v769_v16 = vrot.slane %v768_v8, 2  ;;  %v752_v43 = vadd.f32 %v750_v22, %v732_v45 }
 0x195   :  { %v782_v32 = vadd.f32 %v780_v12, %v762_v13  ;;  %v934_v13 = vrot.slane %v2269_v53, 2 }
 0x196   :  { %v2282_v34 = vpop.permute.xlu1 %1296  ;;  %v770_v33 = vsel %vm411_vm1, %v768_v8, %v769_v16 }
 0x197   :  { %v2285_v1 = vpop.permute.xlu0 %1111  ;;  %v772_v17 = vadd.f32 %v770_v33, %v752_v43  ;;  %v935_v22 = vsel %vm369_vm15, %v2269_v53, %v934_v13 }
 0x19a   :  { %v2292_v39 = vpop.permute.xlu1 %1471 }
 0x19b   :  { %v2296_v36 = vpop.permute.xlu0 %1286 }
 0x19e   :  { %v953_v52 = vpop.permute.xlu1 %952 }
 0x19f   :  { %v2306_v42 = vpop.permute.xlu0 %1461  ;;  %v954_v38 = vrot.slane %v953_v52, 2 }
 0x1a2   :  { %v798_v20 = vpop.permute.xlu1 %797 }
 0x1a3   :  { %v943_v23 = vpop.permute.xlu0 %942  ;;  %v799_v26 = vrot.slane %v798_v20, 2 }
 0x1a5   :  { %v800_v40 = vsel %vm432_vm2, %v798_v20, %v799_v26  ;;  %v1103_v20 = vrot.slane %v2260_v24, 2 }
 0x1a6   :  { %v2316_v41 = vadd.f32 %v800_v40, %v782_v32  ;;  %v1142_v63 = vpop.permute.xlu1 %1141  ;;  %v1123_v32 = vrot.slane %v2279_v7, 2  ;;  %v924_v40 = vrot.slane %v2277_v56, 2 }
 0x1a7   :  { %v788_v6 = vpop.permute.xlu0 %787  ;;  %v1104_v43 = vsel %vm348_vm14, %v2260_v24, %v1103_v20 }
 0x1a8   :  { %v789_v62 = vrot.slane %v788_v6, 2  ;;  %v845_v47 = vrot.slane %v2316_v41, %v1942_v25  ;;  %v1124_v53 = vsel %vm369_vm15, %v2279_v7, %v1123_v32  ;;  %v1106_v2 = vadd.f32 %v1104_v43, %v2252_v4 }
 0x1a9   :  { %v925_v29 = vsel %vm369_vm15, %v2277_v56, %v924_v40 }
 0x1aa   :  { %v790_v48 = vsel %vm432_vm2, %v788_v6, %v789_v62  ;;  %v2321_v44 = vpop.permute.xlu1 %1316  ;;  %854 = vrot.lane.b32.xlu1 %v845_v47, %s1894_s28  ;;  %v853_v0 = vcombine.high %v845_v47, %v845_v47  ;;  %v955_v6 = vsel %vm390_vm0, %v953_v52, %v954_v38  ;;  %v1143_v62 = vrot.slane %v1142_v63, 2 }
 0x1ab   :  { %v2324_v55 = vadd.f32 %v790_v48, %v772_v17  ;;  %v2326_v8 = vpop.permute.xlu0 %1131  ;;  %v937_v17 = vadd.f32 %v935_v22, %v2257_v21  ;;  %v944_v48 = vrot.slane %v943_v23, 2  ;;  %v1113_v38 = vrot.slane %v2285_v1, 2 }
 0x1ac   :  { %v1144_v18 = vsel %vm390_vm0, %v1142_v63, %v1143_v62  ;;  %v1126_v11 = vadd.f32 %v1124_v53, %v1106_v2  ;;  %v927_v32 = vadd.f32 %v925_v29, %v2262_v37  ;;  %v1133_v40 = vrot.slane %v2326_v8, 2 }
 0x1ad   :  { %v2330_v31 = vrot.slane %v2324_v55, %v1942_v25  ;;  %v957_v24 = vadd.f32 %v955_v6, %v937_v17  ;;  %v945_v7 = vsel %vm390_vm0, %v943_v23, %v944_v48  ;;  %v1114_v2 = vsel %vm369_vm15, %v2285_v1, %v1113_v38 }
 0x1ae   :  { %v2332_v54 = vpop.permute.xlu1 %1491  ;;  %v1298_v23 = vrot.slane %v2282_v34, 2  ;;  %v947_v29 = vadd.f32 %v945_v7, %v927_v32  ;;  %v1134_v1 = vsel %vm390_vm0, %v2326_v8, %v1133_v40  ;;  %v1288_v8 = vrot.slane %v2296_v36, 2 }
 0x1af   :  { %822 = vrot.lane.b32.xlu0 %v2330_v31, %s1894_s28  ;;  %v2336_v60 = vpop.permute.xlu0 %1306 }
 0x1b2   :  { %v973_v10 = vpop.permute.xlu1 %972 }
 0x1b3   :  { %856 = vrot.lane.b32.xlu0 %v853_v0, %s1894_s28  ;;  %v2339_v49 = vpop.permute.xlu0 %1481  ;;  %v974_v45 = vrot.slane %v973_v10, 2 }
 0x1b5   :  { %v975_v0 = vsel %vm411_vm1, %v973_v10, %v974_v45  ;;  %v1146_v45 = vadd.f32 %v1144_v18, %v1126_v11 }
 0x1b6   :  { %v1162_v12 = vpop.permute.xlu1 %1161  ;;  %v977_v10 = vadd.f32 %v975_v0, %v957_v24 }
 0x1b7   :  { %v963_v35 = vpop.permute.xlu0 %962  ;;  %v1163_v13 = vrot.slane %v1162_v12, 2 }
 0x1b8   :  { %v964_v20 = vrot.slane %v963_v35, 2 }
 0x1b9   :  { %v1164_v4 = vsel %vm411_vm1, %v1162_v12, %v1163_v13 }
 0x1ba   :  { %v2342_v16 = vpop.permute.xlu1 %1336  ;;  %v965_v63 = vsel %vm411_vm1, %v963_v35, %v964_v20  ;;  %v1166_v62 = vadd.f32 %v1164_v4, %v1146_v45  ;;  %v1318_v35 = vrot.slane %v2321_v44, 2  ;;  %v1116_v20 = vadd.f32 %v1114_v2, %v2271_v28 }
 0x1bb   :  { %v1152_v26 = vpop.permute.xlu0 %1151  ;;  %v967_v48 = vadd.f32 %v965_v63, %v947_v29  ;;  %v1338_v38 = vrot.slane %v2342_v16, 2  ;;  %v1454_v63 = vstv %s2371_s29 }
 0x1bc   :  { %v1153_v17 = vrot.slane %v1152_v26, 2  ;;  %v1319_v28 = vsel %vm369_vm15, %v2321_v44, %v1318_v35  ;;  %v1473_v44 = vrot.slane %v2292_v39, 2  ;;  %v1455_v35 = vmul.f32 %v1454_v63, %v2064_v19 }
 0x1bd   :  { %v1493_v19 = vrot.slane %v2332_v54, 2 }
 0x1be   :  { %v2349_v33 = vpop.permute.xlu1 %1511 }
 0x1bf   :  { %v2354_v47 = vpop.permute.xlu0 %1326 }
 0x1c2   :  { %v993_v52 = vpop.permute.xlu1 %992 }
 0x1c3   :  { %v2365_v21 = vpop.permute.xlu0 %1501  ;;  %v994_v22 = vrot.slane %v993_v52, 2 }
 0x1c5   :  { %v995_v56 = vsel %vm432_vm2, %v993_v52, %v994_v22  ;;  %v1299_v52 = vsel %vm348_vm14, %v2282_v34, %v1298_v23  ;;  %v1449_v23 = vstv %s2380_s0 }
 0x1c6   :  { %v2375_v43 = vadd.f32 %v995_v56, %v977_v10  ;;  %v1182_v6 = vpop.permute.xlu1 %1181  ;;  %v1154_v10 = vsel %vm411_vm1, %v1152_v26, %v1153_v17  ;;  %v1136_v56 = vadd.f32 %v1134_v1, %v1116_v20  ;;  %v1301_v40 = vadd.f32 %v1299_v52, %v2267_v50 }
 0x1c7   :  { %v983_v37 = vpop.permute.xlu0 %982  ;;  %v1183_v12 = vrot.slane %v1182_v6, 2 }
 0x1c8   :  { %v984_v11 = vrot.slane %v983_v37, 2  ;;  %v1036_v18 = vrot.slane %v2375_v43, %v1942_v25  ;;  %v1156_v29 = vadd.f32 %v1154_v10, %v1136_v56  ;;  %v1321_v17 = vadd.f32 %v1319_v28, %v1301_v40 }
 0x1c9   :  { %v1184_v53 = vsel %vm432_vm2, %v1182_v6, %v1183_v12  ;;  %v1308_v6 = vrot.slane %v2336_v60, 2  ;;  %v1289_v12 = vsel %vm348_vm14, %v2296_v36, %v1288_v8 }
 0x1ca   :  { %v985_v0 = vsel %vm432_vm2, %v983_v37, %v984_v11  ;;  %v2389_v13 = vadd.f32 %v1184_v53, %v1166_v62  ;;  %v1357_v24 = vpop.permute.xlu1 %1356  ;;  %1045 = vrot.lane.b32.xlu1 %v1036_v18, %s1895_s30  ;;  %v1339_v37 = vsel %vm390_vm0, %v2342_v16, %v1338_v38  ;;  %v1463_v62 = vrot.slane %v2306_v42, 2 }
 0x1cb   :  { %v2396_v22 = vadd.f32 %v985_v0, %v967_v48  ;;  %v1172_v7 = vpop.permute.xlu0 %1171  ;;  %v1358_v34 = vrot.slane %v1357_v24, 2  ;;  %v1328_v11 = vrot.slane %v2354_v47, 2  ;;  %v1044_v1 = vcombine.high %v1036_v18, %v1036_v18 }
 0x1cc   :  { %v1173_v32 = vrot.slane %v1172_v7, 2  ;;  %v2402_v4 = vrot.slane %v2389_v13, %v1942_v25  ;;  %v1450_v16 = vmul.f32 %v1449_v23, %v2071_v27  ;;  %v1309_v0 = vsel %vm369_vm15, %v2336_v60, %v1308_v6 }
 0x1cd   :  { %v2408_v45 = vrot.slane %v2396_v22, %v1942_v25  ;;  %v1359_v53 = vsel %vm411_vm1, %v1357_v24, %v1358_v34  ;;  %v1341_v20 = vadd.f32 %v1339_v37, %v1321_v17  ;;  %v1291_v38 = vadd.f32 %v1289_v12, %v2275_v58 }
 0x1ce   :  { %v1174_v26 = vsel %vm432_vm2, %v1172_v7, %v1173_v32  ;;  %v2414_v2 = vpop.permute.xlu1 %1531  ;;  %1238 = vrot.lane.b32.xlu1 %v2402_v4, %s1896_s12  ;;  %v1474_v7 = vsel %vm326_vm13, %v2292_v39, %v1473_v44  ;;  %v1464_v27 = vsel %vm326_vm13, %v2306_v42, %v1463_v62  ;;  %v1483_v18 = vrot.slane %v2339_v49, 2 }
 0x1cf   :  { %1015 = vrot.lane.b32.xlu0 %v2408_v45, %s1895_s30  ;;  %v1347_v50 = vpop.permute.xlu0 %1346  ;;  %v2429_v48 = vadd.f32 %v1174_v26, %v1156_v29  ;;  %v1329_v60 = vsel %vm390_vm0, %v2354_v47, %v1328_v11  ;;  %v1361_v10 = vadd.f32 %v1359_v53, %v1341_v20  ;;  %v1311_v32 = vadd.f32 %v1309_v0, %v1291_v38 }
 0x1d0   :  { %v1348_v52 = vrot.slane %v1347_v50, 2  ;;  %v1513_v58 = vrot.slane %v2349_v33, 2  ;;  %v1476_v28 = vadd.f32 %v1474_v7, %v1455_v35  ;;  %v1503_v34 = vrot.slane %v2365_v21, 2 }
 0x1d1   :  { %v2448_v39 = vrot.slane %v2429_v48, %v1942_v25  ;;  %v1466_v6 = vadd.f32 %v1464_v27, %v1450_v16  ;;  %v1494_v47 = vsel %vm348_vm14, %v2332_v54, %v1493_v19  ;;  %v1331_v26 = vadd.f32 %v1329_v60, %v1311_v32 }
 0x1d2   :  { %v1377_v36 = vpop.permute.xlu1 %1376  ;;  %v1349_v42 = vsel %vm411_vm1, %v1347_v50, %v1348_v52  ;;  %v1533_v44 = vrot.slane %v2414_v2, 2  ;;  %v1484_v29 = vsel %vm348_vm14, %v2339_v49, %v1483_v18  ;;  %v1514_v62 = vsel %vm369_vm15, %v2349_v33, %v1513_v58 }
 0x1d3   :  { %1047 = vrot.lane.b32.xlu0 %v1044_v1, %s1895_s30  ;;  %v1522_v8 = vpop.permute.xlu0 %1521  ;;  %v1378_v24 = vrot.slane %v1377_v36, 2  ;;  %v1351_v17 = vadd.f32 %v1349_v42, %v1331_v26  ;;  %v1237_v54 = vcombine.high %v2402_v4, %v2402_v4  ;;  %v1496_v35 = vadd.f32 %v1494_v47, %v1476_v28 }
 0x1d4   :  { %v1523_v37 = vrot.slane %v1522_v8, 2  ;;  %v1504_v53 = vsel %vm369_vm15, %v2365_v21, %v1503_v34  ;;  %v1486_v16 = vadd.f32 %v1484_v29, %v1466_v6  ;;  %v1534_v33 = vsel %vm390_vm0, %v2414_v2, %v1533_v44 }
 0x1d5   :  { %v1379_v56 = vsel %vm432_vm2, %v1377_v36, %v1378_v24  ;;  %v1516_v20 = vadd.f32 %v1514_v62, %v1496_v35  ;;  %v611_v47 = vcombine.high %v2222_v14, %v2222_v14  ;;  %v838_v44 = vcombine.high %v2316_v41, %v2316_v41 }
 0x1d6   :  { %v2453_v40 = vadd.f32 %v1379_v56, %v1361_v10  ;;  %v1552_v63 = vpop.permute.xlu1 %1551  ;;  %v1524_v52 = vsel %vm390_vm0, %v1522_v8, %v1523_v37  ;;  %v1506_v21 = vadd.f32 %v1504_v53, %v1486_v16  ;;  %v1029_v37 = vcombine.high %v2375_v43, %v2375_v43 }
 0x1d7   :  { %1206 = vrot.lane.b32.xlu0 %v2448_v39, %s1896_s12  ;;  %v1367_v23 = vpop.permute.xlu0 %1366  ;;  %v1553_v11 = vrot.slane %v1552_v63, 2  ;;  %v1536_v19 = vadd.f32 %v1534_v33, %v1516_v20  ;;  %v625_v29 = vrot.slane %v611_v47, %v1942_v25  ;;  %v852_v14 = vrot.slane %v838_v44, %v1942_v25 }
 0x1d8   :  { %v1368_v12 = vrot.slane %v1367_v23, 2  ;;  %v1424_v50 = vrot.slane %v2453_v40, %v1942_v25  ;;  %v1526_v18 = vadd.f32 %v1524_v52, %v1506_v21  ;;  %v999_v41 = vcombine.high %v2396_v22, %v2396_v22 }
 0x1d9   :  { %v1554_v7 = vsel %vm411_vm1, %v1552_v63, %v1553_v11  ;;  %v643_v63 = vcombine.high %v2216_v30, %v2216_v30  ;;  %v806_v30 = vcombine.high %v2324_v55, %v2324_v55  ;;  %v1043_v55 = vrot.slane %v1029_v37, %v1942_v25 }
 0x1da   :  { %v1369_v1 = vsel %vm432_vm2, %v1367_v23, %v1368_v12  ;;  %1433 = vrot.lane.b32.xlu1 %v1424_v50, %s1897_s4  ;;  %v2472_v49 = vpop.permute.xlu1 %323  ;;  %v1556_v10 = vadd.f32 %v1554_v7, %v1536_v19  ;;  %v1432_v58 = vcombine.high %v1424_v50, %v1424_v50  ;;  %v1222_v50 = vcombine.high %v2389_v13, %v2389_v13 }
 0x1db   :  { %v1371_v0 = vadd.f32 %v1369_v1, %v1351_v17  ;;  %1240 = vrot.lane.b32.xlu0 %v1237_v54, %s1896_s12  ;;  %v1542_v4 = vpop.permute.xlu0 %1541  ;;  %v657_v23 = vrot.slane %v643_v63, %v1942_v25  ;;  %v820_v12 = vrot.slane %v806_v30, %v1942_v25  ;;  %v1013_v62 = vrot.slane %v999_v41, %v1942_v25  ;;  %v314_v63 = vld [vmem:[#allocation4 + $0x6] sm:$0xf] }
 0x1dc   :  { %v1543_v36 = vrot.slane %v1542_v4, 2  ;;  %v1190_v17 = vcombine.high %v2429_v48, %v2429_v48  ;;  %v1236_v43 = vrot.slane %v1222_v50, %v1942_v25  ;;  %v1417_v22 = vcombine.high %v2453_v40, %v2453_v40 }
 0x1dd   :  { %v2479_v38 = vrot.slane %v1371_v0, %v1942_v25  ;;  %v1385_v11 = vcombine.high %v1371_v0, %v1371_v0  ;;  %v626_v53 = vcombine.high %v2236_v59, %v2236_v59  ;;  %v821_v1 = vcombine.high %v2330_v31, %v2330_v31 }
 0x1de   :  { %v1544_v24 = vsel %vm411_vm1, %v1542_v4, %v1543_v36  ;;  %v1572_v27 = vpop.permute.xlu1 %1571  ;;  %v1204_v54 = vrot.slane %v1190_v17, %v1942_v25  ;;  %v1431_v13 = vrot.slane %v1417_v22, %v1942_v25  ;;  %v1014_v33 = vcombine.high %v2408_v45, %v2408_v45 }
 0x1df   :  { %1401 = vrot.lane.b32.xlu0 %v2479_v38, %s1897_s4  ;;  %v1562_v2 = vpop.permute.xlu0 %1561  ;;  %v1573_v60 = vrot.slane %v1572_v27, 2  ;;  %v1546_v8 = vadd.f32 %v1544_v24, %v1526_v18  ;;  %v1399_v48 = vrot.slane %v1385_v11, %v1942_v25  ;;  %v1205_v59 = vcombine.high %v2448_v39, %v2448_v39 }
 0x1e0   :  { %v1563_v32 = vrot.slane %v1562_v2, 2  ;;  %v1400_v0 = vcombine.high %v2479_v38, %v2479_v38  ;;  %v379_v30 = vrot.slane %v2098_v57, 2  ;;  %v368_v17 = vrot.slane %v2109_v5, 2 }
 0x1e1   :  { %v1574_v56 = vsel %vm432_vm2, %v1572_v27, %v1573_v60 }
 0x1e2   :  { %v1564_v28 = vsel %vm432_vm2, %v1562_v2, %v1563_v32  ;;  %v1576_v34 = vadd.f32 %v1574_v56, %v1556_v10  ;;  %v2561_v38 = vpop.permute.xlu1 %659  ;;  %v325_v32 = vrot.slane %v2472_v49, 2  ;;  %v310_v56 = vstv %s308_s6 }
 0x1e3   :  { %v1566_v42 = vadd.f32 %v1564_v28, %v1546_v8  ;;  %1435 = vrot.lane.b32.xlu0 %v1432_v58, %s1897_s4  ;;  %v2551_v45 = vpop.permute.xlu0 %627  ;;  %v337_v58 = vrot.slane %v2086_v46, 2  ;;  %v309_v28 = vld [vmem:[#allocation4] sm:$0xf] }
 0x1e4   :  { %v1619_v6 = vrot.slane %v1576_v34, %v1942_v25  ;;  %v1612_v4 = vcombine.high %v1576_v34, %v1576_v34  ;;  %v327_v47 = vsel %vm326_vm13, %v2472_v49, %v325_v32  ;;  %v311_v44 = vmul.f32 %v310_v56, %v309_v28 }
 0x1e5   :  { %v1587_v26 = vrot.slane %v1566_v42, %v1942_v25  ;;  %v1580_v35 = vcombine.high %v1566_v42, %v1566_v42  ;;  %v315_v42 = vstv %s1688_s7 }
 0x1e6   :  { %1628 = vrot.lane.b32.xlu1 %v1619_v6, %s1898_s5  ;;  %v1627_v16 = vcombine.high %v1619_v6, %v1619_v6  ;;  %v1626_v20 = vrot.slane %v1612_v4, %v1942_v25  ;;  %v358_v6 = vrot.slane %v2092_v51, 2  ;;  %v329_v37 = vadd.f32 %v327_v47, %v311_v44 }
 0x1e7   :  { %1596 = vrot.lane.b32.xlu0 %v1587_v26, %s1898_s5  ;;  %v1594_v40 = vrot.slane %v1580_v35, %v1942_v25  ;;  %v1595_v31 = vcombine.high %v1587_v26, %v1587_v26  ;;  %v2553_v52 = vpop.permute.xlu0 %661 }
 0x1e8   :  { %v359_v41 = vsel %vm348_vm14, %v2092_v51, %v358_v6 }
 0x1ea   :  { %663 = vrot.lane.b32.xlu1 %v657_v23, %s1893_s21  ;;  %v338_v23 = vsel %vm326_vm13, %v2086_v46, %v337_v58  ;;  %v380_v46 = vsel %vm369_vm15, %v2098_v57, %v379_v30  ;;  %v2793_v57 = vld [vmem:[#allocation15_spill] sm:$0xff]  ;;  %vm1407_vm13 = vcmask 1006592  }
 0x1eb   :  { %631 = vrot.lane.b32.xlu0 %v625_v29, %s1893_s21  ;;  %v347_v29 = vrot.slane %v2101_v61, 2 }
 0x1ee   :  { %858 = vrot.lane.b32.xlu1 %v852_v14, %s1894_s28  ;;  %v316_v14 = vmul.f32 %v315_v42, %v314_v63  ;;  %v2796_v63 = vld [vmem:[#allocation17_spill] sm:$0xff] }
 0x1ef   :  { %826 = vrot.lane.b32.xlu0 %v820_v12, %s1894_s28 }
 0x1f0   :  { %v340_v50 = vadd.f32 %v338_v23, %v316_v14 }
 0x1f2   :  { %1049 = vrot.lane.b32.xlu1 %v1043_v55, %s1895_s30  ;;  %v400_v55 = vrot.slane %v2106_v3, 2  ;;  %v361_v22 = vadd.f32 %v359_v41, %v340_v50 }
 0x1f3   :  { %1019 = vrot.lane.b32.xlu0 %v1013_v62, %s1895_s30  ;;  %v349_v62 = vsel %vm348_vm14, %v2101_v61, %v347_v29  ;;  %v370_v61 = vsel %vm369_vm15, %v2109_v5, %v368_v17 }
 0x1f4   :  { %v401_v51 = vsel %vm390_vm0, %v2106_v3, %v400_v55  ;;  %v382_v35 = vadd.f32 %v380_v46, %v361_v22 }
 0x1f6   :  { %1242 = vrot.lane.b32.xlu1 %v1236_v43, %s1896_s12  ;;  %v421_v43 = vrot.slane %v2114_v9, 2 }
 0x1f7   :  { %1210 = vrot.lane.b32.xlu0 %v1204_v54, %s1896_s12  ;;  %v351_v54 = vadd.f32 %v349_v62, %v329_v37  ;;  %v665_v62 = vsel %vm633_vm3, %v2561_v38, %v2553_v52 }
 0x1fa   :  { %1437 = vrot.lane.b32.xlu1 %v1431_v13, %s1897_s4  ;;  %v442_v13 = vrot.slane %v2122_v15, 2 }
 0x1fb   :  { %1405 = vrot.lane.b32.xlu0 %v1399_v48, %s1897_s4 }
 0x1fc   :  { %v443_v3 = vsel %vm432_vm2, %v2122_v15, %v442_v13  ;;  %v431_v15 = vrot.slane %v2796_v63, 2 }
 0x1fe   :  { %629 = vrot.lane.b32.xlu1 %v626_v53, %s1893_s21  ;;  %v389_v53 = vrot.slane %v2793_v57, 2  ;;  %v433_v14 = vsel %vm432_vm2, %v2796_v63, %v431_v15 }
 0x1ff   :  { %1600 = vrot.lane.b32.xlu0 %v1594_v40, %s1898_s5  ;;  %v422_v40 = vsel %vm411_vm1, %v2114_v9, %v421_v43 }
 0x200   :  { %v391_v5 = vsel %vm390_vm0, %v2793_v57, %v389_v53 }
 0x202   :  { %824 = vrot.lane.b32.xlu1 %v821_v1, %s1894_s28  ;;  %v403_v1 = vadd.f32 %v401_v51, %v382_v35 }
 0x203   :  { %1630 = vrot.lane.b32.xlu0 %v1627_v16, %s1898_s5  ;;  %v372_v16 = vadd.f32 %v370_v61, %v351_v54 }
 0x204   :  { %v424_v4 = vadd.f32 %v422_v40, %v403_v1 }
 0x205   :  { %v393_v56 = vadd.f32 %v391_v5, %v372_v16 }
 0x206   :  { %1017 = vrot.lane.b32.xlu1 %v1014_v33, %s1895_s30  ;;  %v445_v58 = vadd.f32 %v443_v3, %v424_v4 }
 0x208   :  { %v470_v47 = vrot.slane %v445_v58, %v1942_v25 }
 0x20a   :  { %1208 = vrot.lane.b32.xlu1 %v1205_v59, %s1896_s12  ;;  %v2794_v59 = vlaneseq  ;;  %v471_v37 = vcombine.high %v470_v47, %v470_v47 }
 0x20e   :  { %1403 = vrot.lane.b32.xlu1 %v1400_v0, %s1897_s4  ;;  %v282_v0 = vand.u32 127, %v2794_v59 }
 0x210   :  { %v283_v28 = vadd.s32 128, %v282_v0  ;;  %v2639_v29 = vand.u32 15, %v282_v0 }
 0x212   :  { %1598 = vrot.lane.b32.xlu1 %v1595_v31, %s1898_s5  ;;  %v2641_v30 = vand.u32 15, %v283_v28  ;;  %vm446_vm4 = vcmp.ge.s32.totalorder %v2639_v29, 3  ;;  %vm608_vm6 = vcmp.ge.s32.totalorder %v2639_v29, 2  ;;  %vm803_vm8 = vcmp.ge.s32.totalorder %v2639_v29, 1 }
 0x213   :  { %v474_v46 = vsel %vm446_vm4, %v470_v47, 0.0  ;;  %v669_v54 = vsel %vm608_vm6, %v665_v62, 0.0  ;;  %vm1187_vm10 = vcmp.lt.s32.totalorder %v2639_v29, 15  ;;  %vm1382_vm12 = vcmp.lt.s32.totalorder %v2639_v29, 14 }
 0x214   :  { %vm447_vm5 = vcmp.ge.s32.totalorder %v2641_v30, 3  ;;  %vm609_vm14 = vcmp.ge.s32.totalorder %v2641_v30, 2  ;;  %vm804_vm15 = vcmp.ge.s32.totalorder %v2641_v30, 1  ;;  %vm1188_vm0 = vcmp.lt.s32.totalorder %v2641_v30, 15 }
 0x215   :  { %v475_v17 = vsel %vm447_vm5, %v471_v37, 0.0  ;;  %vm1577_vm2 = vcmp.lt.s32.totalorder %v2639_v29, 13 }
 0x216   :  { %1632 = vrot.lane.b32.xlu1 %v1626_v20, %s1898_s5  ;;  %v2795_v20 = vld [vmem:[#allocation16_spill] sm:$0xff] }
 0x217   :  { %v410_v32 = vrot.slane %v2795_v20, 2 }
 0x219   :  { %v412_v42 = vsel %vm411_vm1, %v2795_v20, %v410_v32  ;;  %vm1602_vm1 = vcmask 998400  }
 0x21a   :  { %v414_v23 = vadd.f32 %v412_v42, %v393_v56 }
 0x21c   :  { %v2565_v19 = vpop.permute.xlu1 %854  ;;  %v435_v55 = vadd.f32 %v433_v14, %v414_v23 }
 0x21e   :  { %v455_v43 = vrot.slane %v435_v55, %v1942_v25 }
 0x220   :  { %v456_v61 = vcombine.high %v455_v43, %v455_v43 }
 0x221   :  { %v2555_v39 = vpop.permute.xlu0 %822 }
 0x222   :  { %v460_v56 = vsel %vm447_vm5, %v456_v61, 0.0 }
 0x225   :  { %v2557_v36 = vpop.permute.xlu0 %856 }
 0x226   :  { %v860_v51 = vsel %vm828_vm7, %v2565_v19, %v2557_v36 }
 0x227   :  { %v864_v35 = vsel %vm803_vm8, %v860_v51, 0.0 }
 0x23c   :  { %v2569_v27 = vpop.permute.xlu1 %1045 }
 0x240   :  { %v2573_v2 = vpop.permute.xlu1 %1238 }
 0x241   :  { %v2559_v21 = vpop.permute.xlu0 %1015 }
 0x245   :  { %v2563_v7 = vpop.permute.xlu0 %1047 }
 0x246   :  { %v1051_v1 = vsel %vm1021_vm9, %v2569_v27, %v2563_v7 }
 0x249   :  { %v2567_v24 = vpop.permute.xlu0 %1206 }
 0x24c   :  { %v2577_v10 = vpop.permute.xlu1 %1433 }
 0x24d   :  { %v2571_v18 = vpop.permute.xlu0 %1240 }
 0x251   :  { %v2575_v60 = vpop.permute.xlu0 %1401 }
 0x255   :  { %v2580_v8 = vpop.permute.xlu0 %1435 }
 0x256   :  { %v1439_v27 = vsel %vm1407_vm13, %v2577_v10, %v2580_v8 }
 0x257   :  { %v1443_v63 = vsel %vm1382_vm12, %v1439_v27, 0.0 }
 0x258   :  { %v2583_v34 = vpop.permute.xlu1 %1628 }
 0x259   :  { %v2588_v26 = vpop.permute.xlu0 %1596 }
 0x25c   :  { %v2594_v12 = vpop.permute.xlu1 %663 }
 0x25d   :  { %v2599_v49 = vpop.permute.xlu0 %631  ;;  %v666_v25 = vsel %vm633_vm3, %v2553_v52, %v2594_v12  ;;  %v1244_v52 = vsel %vm1212_vm11, %v2573_v2, %v2571_v18 }
 0x25e   :  { %v670_v16 = vsel %vm609_vm14, %v666_v25, 0.0 }
 0x25f   :  { %v672_v20 = vadd.f32 %v670_v16, %v475_v17 }
 0x260   :  { %v2607_v11 = vpop.permute.xlu1 %858 }
 0x261   :  { %v2612_v48 = vpop.permute.xlu0 %826  ;;  %v861_v12 = vsel %vm828_vm7, %v2557_v36, %v2607_v11 }
 0x262   :  { %v865_v59 = vsel %vm804_vm15, %v861_v12, 0.0 }
 0x263   :  { %v867_v15 = vadd.f32 %v865_v59, %v672_v20 }
 0x264   :  { %v2619_v33 = vpop.permute.xlu1 %1049 }
 0x265   :  { %v2624_v31 = vpop.permute.xlu0 %1019 }
 0x268   :  { %v2629_v9 = vpop.permute.xlu1 %1242 }
 0x269   :  { %v2634_v6 = vpop.permute.xlu0 %1210  ;;  %v1245_v23 = vsel %vm1212_vm11, %v2571_v18, %v2629_v9 }
 0x26a   :  { %v1249_v17 = vsel %vm1188_vm0, %v1245_v23, 0.0 }
 0x26c   :  { %v2637_v44 = vpop.permute.xlu1 %1437 }
 0x26d   :  { %v2647_v50 = vpop.permute.xlu0 %1405 }
 0x270   :  { %v630_v41 = vpop.permute.xlu1 %629 }
 0x271   :  { %v634_v38 = vsel %vm633_vm3, %v2551_v45, %v630_v41  ;;  %v2673_v13 = vpop.permute.xlu0 %1600  ;;  %v671_v45 = vadd.f32 %v669_v54, %v474_v46  ;;  %v635_v40 = vsel %vm633_vm3, %v630_v41, %v2599_v49  ;;  %v1248_v49 = vsel %vm1187_vm10, %v1244_v52, 0.0 }
 0x272   :  { %v638_v57 = vsel %vm608_vm6, %v634_v38, 0.0  ;;  %v639_v0 = vsel %vm609_vm14, %v635_v40, 0.0  ;;  %vm1383_vm3 = vcmp.lt.s32.totalorder %v2641_v30, 14 }
 0x273   :  { %v866_v3 = vadd.f32 %v864_v35, %v671_v45  ;;  %v641_v47 = vadd.f32 %v639_v0, %v460_v56 }
 0x274   :  { %v825_v22 = vpop.permute.xlu1 %824 }
 0x275   :  { %v829_v19 = vsel %vm828_vm7, %v2555_v39, %v825_v22  ;;  %v459_v39 = vsel %vm446_vm4, %v455_v43, 0.0  ;;  %v830_v11 = vsel %vm828_vm7, %v825_v22, %v2612_v48  ;;  %v1055_v5 = vadd.f32 %v1051_v1, %v866_v3  ;;  %v1631_v32 = vpop.permute.xlu0 %1630 }
 0x276   :  { %v833_v2 = vsel %vm803_vm8, %v829_v19, 0.0  ;;  %v640_v36 = vadd.f32 %v638_v57, %v459_v39  ;;  %v834_v10 = vsel %vm804_vm15, %v830_v11, 0.0  ;;  %v1634_v14 = vsel %vm1602_vm1, %v2583_v34, %v1631_v32 }
 0x277   :  { %v1250_v42 = vadd.f32 %v1248_v49, %v1055_v5  ;;  %v836_v41 = vadd.f32 %v834_v10, %v641_v47  ;;  %vm1578_vm4 = vcmp.lt.s32.totalorder %v2641_v30, 13 }
 0x278   :  { %v1018_v53 = vpop.permute.xlu1 %1017  ;;  %v835_v58 = vadd.f32 %v833_v2, %v640_v36 }
 0x279   :  { %v1022_v28 = vsel %vm1021_vm9, %v2559_v21, %v1018_v53  ;;  %v1445_v34 = vadd.f32 %v1443_v63, %v1250_v42 }
 0x27a   :  { %v1026_v55 = vadd.f32 %v1022_v28, %v835_v58 }
 0x27c   :  { %v1209_v4 = vpop.permute.xlu1 %1208 }
 0x27d   :  { %v1213_v48 = vsel %vm1212_vm11, %v2567_v24, %v1209_v4  ;;  %v1052_v24 = vsel %vm1021_vm9, %v2563_v7, %v2619_v33  ;;  %v1214_v62 = vsel %vm1212_vm11, %v1209_v4, %v2634_v6  ;;  %v1023_v7 = vsel %vm1021_vm9, %v1018_v53, %v2624_v31 }
 0x27e   :  { %v1217_v21 = vsel %vm1187_vm10, %v1213_v48, 0.0  ;;  %v1440_v33 = vsel %vm1407_vm13, %v2580_v8, %v2637_v44  ;;  %v1638_v31 = vsel %vm1577_vm2, %v1634_v14, 0.0  ;;  %v1218_v43 = vsel %vm1188_vm0, %v1214_v62, 0.0 }
 0x27f   :  { %v1219_v9 = vadd.f32 %v1217_v21, %v1026_v55  ;;  %v1027_v54 = vadd.f32 %v1023_v7, %v836_v41  ;;  %v1640_v45 = vadd.f32 %v1638_v31, %v1445_v34 }
 0x280   :  { %v1404_v37 = vpop.permute.xlu1 %1403 }
 0x281   :  { %v1408_v46 = vsel %vm1407_vm13, %v2575_v60, %v1404_v37  ;;  %v1409_v6 = vsel %vm1407_vm13, %v1404_v37, %v2647_v50  ;;  %v1056_v60 = vadd.f32 %v1052_v24, %v867_v15  ;;  %v1444_v50 = vsel %vm1383_vm3, %v1440_v33, 0.0 }
 0x282   :  { %v1412_v18 = vsel %vm1382_vm12, %v1408_v46, 0.0  ;;  %v1413_v38 = vsel %vm1383_vm3, %v1409_v6, 0.0  ;;  %v1220_v35 = vadd.f32 %v1218_v43, %v1027_v54 }
 0x283   :  { %v1414_v51 = vadd.f32 %v1412_v18, %v1219_v9  ;;  %v1251_v19 = vadd.f32 %v1249_v17, %v1056_v60 }
 0x284   :  { %v1599_v22 = vpop.permute.xlu1 %1598  ;;  %v1415_v52 = vadd.f32 %v1413_v38, %v1220_v35 }
 0x285   :  { %v1603_v8 = vsel %vm1602_vm1, %v2588_v26, %v1599_v22  ;;  %v1604_v44 = vsel %vm1602_vm1, %v1599_v22, %v2673_v13  ;;  %v1645_v26 = vstv %s2784_s2  ;;  %v1446_v53 = vadd.f32 %v1444_v50, %v1251_v19  ;;  %s1899_s2 = smov [#allocation11]  }
 0x286   :  { %v1607_v25 = vsel %vm1577_vm2, %v1603_v8, 0.0  ;;  %v1608_v13 = vsel %vm1578_vm4, %v1604_v44, 0.0  ;;  %s1678_s11 = sshll.u32 %s1899_s2, 4  ;;  %s1679_s11 = int_to_ptr.vmem [resolvable:$true] %s1678_s11 }
 0x287   :  { %v1609_v61 = vadd.f32 %v1607_v25, %v1414_v51  ;;  %v1610_v40 = vadd.f32 %v1608_v13, %v1415_v52  ;;  %s1852_s13 = scalar_lea.vmem %s1679_s11, 64  ;;  %p1857_p0 = scmp.lt.s32.totalorder %s1679_s11, %s1679_s11 }
 0x288   :  { %v1633_v57 = vpop.permute.xlu1 %1632  ;;  %p1853_p13 = scmp.ne.s32.totalorder %s1679_s11, %s1852_s13  ;;  %p1858_p1 = scmp.lt.s32.totalorder %s1852_s13, %s1852_s13 }
 0x289   :  { %v1642_v12 = vadd.f32 %v1640_v45, %v1609_v61  ;;  %v1635_v39 = vsel %vm1602_vm1, %v1631_v32, %v1633_v57 }
 0x28a   :  { %v1639_v29 = vsel %vm1578_vm4, %v1635_v39, 0.0  ;;  %p1859_p2 = por %p1858_p1, %p1857_p0 }
 0x28b   :  { %v1646_v1 = vadd.f32 %v1645_v26, %v1642_v12  ;;  %v1641_v16 = vadd.f32 %v1639_v29, %v1446_v53 }
 0x28c   :  { %p1860_p3 = pnand %p1859_p2, %p1853_p13 }
 0x28d   :  { %v1785_v2 = vmul.f32 -1.442695, %v1646_v1  ;;  %v1643_v3 = vadd.f32 %v1641_v16, %v1610_v40 }
 0x28f   :  { %1810 = vpow2.f32 %v1785_v2  ;;  %v1647_v36 = vadd.f32 %v1645_v26, %v1643_v3 }
 0x291   :  { %v1786_v11 = vmul.f32 -1.442695, %v1647_v36 }
 0x293   :  { %1812 = vpow2.f32 %v1786_v11 }
 0x299   :  { %v1811_v49 = vpop.eup %1810 }
 0x29a   :  { %v1654_v27 = vadd.f32 1.0, %v1811_v49 }
 0x29c   :  { %1814 = vrcp.f32 %v1654_v27 }
 0x29d   :  { %v1813_v59 = vpop.eup %1812 }
 0x29e   :  { %v1655_v0 = vadd.f32 1.0, %v1813_v59 }
 0x2a0   :  { %1816 = vrcp.f32 %v1655_v0 }
 0x2a6   :  { %v1815_v4 = vpop.eup %1814 }
 0x2aa   :  { %v1817_v30 = vpop.eup %1816 }
 0x2ab   :  { %v1662_v5 = vcombine.low %v1815_v4, %v1817_v30 }
 0x2ad   :  { %1787 = vst.sshfl [vmem:[#allocation11] sm:$0x33 pattern:$0x76325410] %v1662_v5 }
 0x2ae   :  { %1863 = shalt.err (!%p1860_p3)
}
 0x2af   :  { %s1864_s16 = scalar_lea.hbm %s2785_s3, 64 }
 0x2b0   :  { %p1865_p4 = scmp.ne.s32.totalorder %s2785_s3, %s1864_s16  ;;  %p1868_p5 = scmp.lt.u32.totalorder %s1864_s16, %s2785_s3 }
 0x2b2   :  { %p1870_p6 = pnand %p1868_p5, %p1865_p4 }
 0x2b4   :  { %1873 = shalt.err (!%p1870_p6)
}
 0x2b5   :  { %1681 = dma.vmem_to_hbm [thread:$0]  %s1679_s11, 64, %s2785_s3, [#allocation8]  }
 0x2b6   :  { %1878 = dma.done.wait [#allocation8], 64  }
 0x2b7   :  { %1879 = vsyncadd [#allocation8], 4294967232 }
 0x2b8   :  { %1685 = vsyncpa [#allocation7], 1 }
 0x2b9   :  { %1686 = vsyncpa [#allocation8], 1 }
 0x2ba   :  { %1687 = vsyncpa [#allocation9], 1 }

</bundles_post_ra>
